<compile_context>
chip_gen: v6e
topology: v6e:2x2x1
jax: 0.10.0
libtpu: 0.0.40
codegen_flags: <defaults>
</compile_context>

<pallas_src>
import jax
import jax.numpy as jnp
from jax.experimental import pallas as pl
from jax.experimental.pallas import tpu as pltpu

MAX_BN = 32  # max batch rows per grid step (multiple of the f32 sublane tile)


# ---------------------------------------------------------------------------
# Fused kernel: conv1 -> pool1 -> conv2 -> pool2 -> fc1 -> fc2 -> fc3 -> logsoftmax
# ---------------------------------------------------------------------------
def _make_cnn_kernel(bn):
    """Builds the fused forward kernel for a batch tile of `bn` samples."""

    def kernel(x_ref, a_ref, b1_ref, s1e_ref, s1o_ref,
               m_ref, b2_ref, s2e_ref, s2o_ref,
               fw1_ref, fb1_ref, fw2_ref, fb2_ref, fw3_ref, fb3_ref,
               o_ref):
        f32 = jnp.float32
        x = x_ref[...]                                    # (28, bn, 28)  [h, b, w]

        # ---- conv1 (1->6, k=5): 5 banded matmuls, channels packed in lanes -
        c1 = jnp.zeros((24 * bn, 6 * 24), f32)            # rows=(oh,b), lanes=(oc,ow)
        for i in range(5):
            lhs = x[i:i + 24].reshape(24 * bn, 28)        # (24*bn, 28)
            c1 = c1 + jnp.dot(lhs, a_ref[i], preferred_element_type=f32)
        c1 = c1 + b1_ref[...]                             # (1, 144) broadcast

        # ---- maxpool 2x2 #1 -------------------------------------------------
        c1 = c1.reshape(12, 2, bn, 144)                   # split H into (m, parity)
        c1 = jnp.maximum(c1[:, 0], c1[:, 1])              # (12, bn, 144)  pool H
        c1 = c1.reshape(12 * bn, 144)
        p1 = jnp.maximum(                                 # pool W via 0/1 selection
            jnp.dot(c1, s1e_ref[...], preferred_element_type=f32),
            jnp.dot(c1, s1o_ref[...], preferred_element_type=f32))  # (12*bn, 72)
        p1 = p1.reshape(12, bn, 72)                       # lanes = (ic, w)

        # ---- conv2 (6->16, k=5) ----------------------------------------------
        c2 = jnp.zeros((8 * bn, 128), f32)                # rows=(oh,b), lanes=(oc,ow)
        for i in range(5):
            lhs = p1[i:i + 8].reshape(8 * bn, 72)
            c2 = c2 + jnp.dot(lhs, m_ref[i], preferred_element_type=f32)
        c2 = c2 + b2_ref[...]                             # (1, 128) broadcast

        # ---- maxpool 2x2 #2 ---------------------------------------------------
        c2 = c2.reshape(4, 2, bn, 128)
        c2 = jnp.maximum(c2[:, 0], c2[:, 1])              # (4, bn, 128)   pool H
        c2 = c2.reshape(4 * bn, 128)
        p2 = jnp.maximum(
            jnp.dot(c2, s2e_ref[...], preferred_element_type=f32),
            jnp.dot(c2, s2o_ref[...], preferred_element_type=f32))  # (4*bn, 64)
        p2 = p2.reshape(4, bn, 64)                        # leading=h, lanes=(c, w)

        # ---- fc1 (256->120 pad 128): consume pool2 per spatial-row block ----
        h = jnp.zeros((bn, 128), f32) + fb1_ref[...]
        for s in range(4):
            h = h + jnp.dot(p2[s], fw1_ref[s], preferred_element_type=f32)

        # ---- fc2 (120->84 pad 128), fc3 (84->10 pad 128) ---------------------
        h = jnp.dot(h, fw2_ref[...], preferred_element_type=f32) + fb2_ref[...]
        logits = jnp.dot(h, fw3_ref[...], preferred_element_type=f32) + fb3_ref[...]

        # ---- log_softmax over the 10 real classes (mask the padded lanes) ----
        lane = jax.lax.broadcasted_iota(jnp.int32, (bn, 128), 1)
        logits = jnp.where(lane < 10, logits, -1e30)
        m = jnp.max(logits, axis=1, keepdims=True)
        shifted = logits - m
        lse = jnp.log(jnp.sum(jnp.exp(shifted), axis=1, keepdims=True))
        o_ref[...] = shifted - lse                        # (bn, 128) lane-dense store

    return kernel


# ---------------------------------------------------------------------------
# Parameter init (PyTorch conventions) and one-time packing for the kernel
# ---------------------------------------------------------------------------
def init_cnn_params(key):
    ks = jax.random.split(key, 10)

    def u(k, shape, fan_in):
        b = 1.0 / jnp.sqrt(jnp.float32(fan_in))
        return jax.random.uniform(k, shape, jnp.float32, -b, b)

    return {
        "conv1": (u(ks[0], (6, 1, 5, 5), 25), u(ks[1], (6,), 25)),
        "conv2": (u(ks[2], (16, 6, 5, 5), 150), u(ks[3], (16,), 150)),
        "fc": [(u(ks[4], (120, 256), 256), u(ks[5], (120,), 256)),
               (u(ks[6], (84, 120), 120), u(ks[7], (84,), 120)),
               (u(ks[8], (10, 84), 84), u(ks[9], (10,), 84))],
    }


def pack_params(params):
    """Precompute banded conv matrices, pool selection matrices and padded FC
    weights in the lane-packed layouts the fused kernel expects."""
    f32 = jnp.float32
    w1, b1 = params["conv1"]                      # (6,1,5,5), (6,)
    w2, b2 = params["conv2"]                      # (16,6,5,5), (16,)
    (fw1, fb1), (fw2, fb2), (fw3, fb3) = params["fc"]

    # conv1 banded matrices A[i] : (28, 6*24), col = oc*24 + ow
    w_idx = jnp.arange(28)[:, None]
    o_idx = jnp.arange(24)[None, :]
    diff = w_idx - o_idx
    valid = (diff >= 0) & (diff <= 4)
    dcl = jnp.clip(diff, 0, 4)
    A = []
    for i in range(5):
        tap = w1[:, 0, i, :]                      # (6, 5)
        vals = jnp.where(valid[None], tap[:, dcl], 0.0)          # (6, 28, 24)
        A.append(jnp.transpose(vals, (1, 0, 2)).reshape(28, 6 * 24))
    A = jnp.stack(A).astype(f32)                  # (5, 28, 144)
    b1p = jnp.repeat(b1, 24).reshape(1, 144).astype(f32)

    # pool-1 lane selection (144 -> 72)
    r = jnp.arange(144)[:, None]
    c = jnp.arange(72)[None, :]
    same = (r // 24) == (c // 12)
    S1e = (same & ((r % 24) == 2 * (c % 12))).astype(f32)
    S1o = (same & ((r % 24) == 2 * (c % 12) + 1)).astype(f32)

    # conv2 banded matrices M[i] : (6*12, 16*8), row = ic*12+w, col = oc*8+ow
    w_idx = jnp.arange(12)[:, None]
    o_idx = jnp.arange(8)[None, :]
    diff = w_idx - o_idx
    valid = (diff >= 0) & (diff <= 4)
    dcl = jnp.clip(diff, 0, 4)
    M = []
    for i in range(5):
        tap = w2[:, :, i, :]                      # (16, 6, 5)
        vals = jnp.where(valid[None, None], tap[:, :, dcl], 0.0)  # (16, 6, 12, 8)
        M.append(jnp.transpose(vals, (1, 2, 0, 3)).reshape(6 * 12, 16 * 8))
    M = jnp.stack(M).astype(f32)                  # (5, 72, 128)
    b2p = jnp.repeat(b2, 8).reshape(1, 128).astype(f32)

    # pool-2 lane selection (128 -> 64)
    r = jnp.arange(128)[:, None]
    c = jnp.arange(64)[None, :]
    same = (r // 8) == (c // 4)
    S2e = (same & ((r % 8) == 2 * (c % 4))).astype(f32)
    S2o = (same & ((r % 8) == 2 * (c % 4) + 1)).astype(f32)

    # fc1: permuted to accept the kernel's (h-block s, lane=c*4+w) layout,
    # output dim padded 120 -> 128.  PyTorch flatten order is (c, h, w).
    fw1p = jnp.zeros((128, 256), f32).at[:120].set(fw1)           # (o, c*16+h*4+w)
    fw1blk = jnp.transpose(fw1p.reshape(128, 16, 4, 4),
                           (2, 1, 3, 0)).reshape(4, 64, 128)      # [s, c*4+w, o]
    fb1p = jnp.zeros((1, 128), f32).at[0, :120].set(fb1)

    fw2p = jnp.zeros((128, 128), f32).at[:120, :84].set(fw2.T)
    fb2p = jnp.zeros((1, 128), f32).at[0, :84].set(fb2)
    fw3p = jnp.zeros((128, 128), f32).at[:84, :10].set(fw3.T)
    fb3p = jnp.zeros((1, 128), f32).at[0, :10].set(fb3)

    return (A, b1p, S1e, S1o, M, b2p, S2e, S2o, fw1blk, fb1p, fw2p, fb2p, fw3p, fb3p)


# ---------------------------------------------------------------------------
# Forward wrapper
# ---------------------------------------------------------------------------
def _replicated_spec(shape):
    zeros = (0,) * len(shape)
    return pl.BlockSpec(shape, lambda i, _z=zeros: _z)


def cnn_forward(packed, x):
    # x: (N, 1, 28, 28) float32 -> (N, 10) log-probabilities
    N = x.shape[0]
    assert x.shape[1:] == (1, 28, 28), x.shape

    # Batch rows per grid step: multiple of 8, big enough to amortize per-step
    # pipeline overhead, small enough not to over-pad tiny batches.
    bn = min(MAX_BN, ((N + 7) // 8) * 8)
    NP = ((N + bn - 1) // bn) * bn

    # (N,1,28,28) -> (28, N, 28): H leading, batch in sublanes, W in lanes.
    xh = jnp.transpose(x.reshape(N, 28, 28).astype(jnp.float32), (1, 0, 2))
    if NP != N:
        xh = jnp.pad(xh, ((0, 0), (0, NP - N), (0, 0)))

    in_specs = [pl.BlockSpec((28, bn, 28), lambda i: (0, i, 0))]
    in_specs += [_replicated_spec(a.shape) for a in packed]

    out = pl.pallas_call(
        _make_cnn_kernel(bn),
        out_shape=jax.ShapeDtypeStruct((NP, 128), jnp.float32),
        grid=(NP // bn,),
        in_specs=in_specs,
        out_specs=pl.BlockSpec((bn, 128), lambda i: (i, 0)),
        compiler_params=pltpu.CompilerParams(
            dimension_semantics=("parallel",)),
    )(xh, *packed)
    return out[:N, :10]


# ---------------------------------------------------------------------------
# Pure-JAX reference (mirrors the PyTorch module) for a correctness check
# ---------------------------------------------------------------------------
def cnn_reference(params, x):
    hi = jax.lax.Precision.HIGHEST
    w1, b1 = params["conv1"]
    w2, b2 = params["conv2"]
    (fw1, fb1), (fw2, fb2), (fw3, fb3) = params["fc"]
    dn = ("NCHW", "OIHW", "NCHW")
    y = jax.lax.conv_general_dilated(x, w1, (1, 1), "VALID",
                                     dimension_numbers=dn, precision=hi)
    y = y + b1[None, :, None, None]
    y = jax.lax.reduce_window(y, -jnp.inf, jax.lax.max,
                              (1, 1, 2, 2), (1, 1, 2, 2), "VALID")
    y = jax.lax.conv_general_dilated(y, w2, (1, 1), "VALID",
                                     dimension_numbers=dn, precision=hi)
    y = y + b2[None, :, None, None]
    y = jax.lax.reduce_window(y, -jnp.inf, jax.lax.max,
                              (1, 1, 2, 2), (1, 1, 2, 2), "VALID")
    y = y.reshape(y.shape[0], -1)
    y = jnp.dot(y, fw1.T, precision=hi) + fb1
    y = jnp.dot(y, fw2.T, precision=hi) + fb2
    y = jnp.dot(y, fw3.T, precision=hi) + fb3
    return jax.nn.log_softmax(y, axis=1)


if __name__ == "__main__":
    key = jax.random.PRNGKey(0)
    pkey, xkey = jax.random.split(key)
    params = init_cnn_params(pkey)
    packed = pack_params(params)

    fwd = jax.jit(cnn_forward)

    # Primary small-shape check (batch=2) plus one padded/multi-row-tile check.
    for n in (2, 20):
        x = jax.random.normal(jax.random.fold_in(xkey, n),
                              (n, 1, 28, 28), dtype=jnp.float32)
        out = jax.block_until_ready(fwd(packed, x))
        assert out.shape == (n, 10), out.shape
        # log_softmax rows must exponentiate-sum to ~1
        row_sums = jnp.exp(out).sum(axis=1)
        assert bool(jnp.all(jnp.abs(row_sums - 1.0) < 1e-3)), row_sums
        # match the pure-JAX reference of the PyTorch module
        ref = cnn_reference(params, x)
        err = float(jnp.max(jnp.abs(out - ref)))
        assert err < 1e-1, err
    print("KERNEL_OK")
</pallas_src>

<mosaic_0001>
module attributes {stable_mosaic.version = 11 : i64} {
  func.func @kernel(%arg0: i32, %arg1: memref<28x8x28xf32, #tpu.memory_space<vmem>>, %arg2: memref<5x28x144xf32, #tpu.memory_space<vmem>>, %arg3: memref<1x144xf32, #tpu.memory_space<vmem>>, %arg4: memref<144x72xf32, #tpu.memory_space<vmem>>, %arg5: memref<144x72xf32, #tpu.memory_space<vmem>>, %arg6: memref<5x72x128xf32, #tpu.memory_space<vmem>>, %arg7: memref<1x128xf32, #tpu.memory_space<vmem>>, %arg8: memref<128x64xf32, #tpu.memory_space<vmem>>, %arg9: memref<128x64xf32, #tpu.memory_space<vmem>>, %arg10: memref<4x64x128xf32, #tpu.memory_space<vmem>>, %arg11: memref<1x128xf32, #tpu.memory_space<vmem>>, %arg12: memref<128x128xf32, #tpu.memory_space<vmem>>, %arg13: memref<1x128xf32, #tpu.memory_space<vmem>>, %arg14: memref<128x128xf32, #tpu.memory_space<vmem>>, %arg15: memref<1x128xf32, #tpu.memory_space<vmem>>, %arg16: memref<8x128xf32, #tpu.memory_space<vmem>>) attributes {dimension_semantics = [#tpu.dimension_semantics<parallel>], iteration_bounds = array<i64: 1>, scalar_prefetch = 0 : i64, scratch_operands = 0 : i64, tpu.core_type = #tpu.core_type<tc>, window_params = [{transform_indices = @transform_0, window_bounds = array<i64: 28, 8, 28>}, {pipeline_mode = #tpu.pipeline_mode<synchronous>, transform_indices = @transform_1, window_bounds = array<i64: 5, 28, 144>}, {pipeline_mode = #tpu.pipeline_mode<synchronous>, transform_indices = @transform_2, window_bounds = array<i64: 1, 144>}, {pipeline_mode = #tpu.pipeline_mode<synchronous>, transform_indices = @transform_3, window_bounds = array<i64: 144, 72>}, {pipeline_mode = #tpu.pipeline_mode<synchronous>, transform_indices = @transform_4, window_bounds = array<i64: 144, 72>}, {pipeline_mode = #tpu.pipeline_mode<synchronous>, transform_indices = @transform_5, window_bounds = array<i64: 5, 72, 128>}, {pipeline_mode = #tpu.pipeline_mode<synchronous>, transform_indices = @transform_6, window_bounds = array<i64: 1, 128>}, {pipeline_mode = #tpu.pipeline_mode<synchronous>, transform_indices = @transform_7, window_bounds = array<i64: 128, 64>}, {pipeline_mode = #tpu.pipeline_mode<synchronous>, transform_indices = @transform_8, window_bounds = array<i64: 128, 64>}, {pipeline_mode = #tpu.pipeline_mode<synchronous>, transform_indices = @transform_9, window_bounds = array<i64: 4, 64, 128>}, {pipeline_mode = #tpu.pipeline_mode<synchronous>, transform_indices = @transform_10, window_bounds = array<i64: 1, 128>}, {pipeline_mode = #tpu.pipeline_mode<synchronous>, transform_indices = @transform_11, window_bounds = array<i64: 128, 128>}, {pipeline_mode = #tpu.pipeline_mode<synchronous>, transform_indices = @transform_12, window_bounds = array<i64: 1, 128>}, {pipeline_mode = #tpu.pipeline_mode<synchronous>, transform_indices = @transform_13, window_bounds = array<i64: 128, 128>}, {pipeline_mode = #tpu.pipeline_mode<synchronous>, transform_indices = @transform_14, window_bounds = array<i64: 1, 128>}, {transform_indices = @transform_15, window_bounds = array<i64: 8, 128>}]} {
    %c0 = arith.constant 0 : index
    %c0_0 = arith.constant 0 : index
    %c0_1 = arith.constant 0 : index
    %0 = vector.load %arg1[%c0, %c0_0, %c0_1] : memref<28x8x28xf32, #tpu.memory_space<vmem>>, vector<28x8x28xf32>
    %cst = arith.constant 0.000000e+00 : f32
    %1 = vector.broadcast %cst : f32 to vector<192x144xf32>
    %2 = vector.extract_strided_slice %0 {offsets = [0, 0, 0], sizes = [24, 8, 28], strides = [1, 1, 1]} : vector<28x8x28xf32> to vector<24x8x28xf32>
    %3 = vector.shape_cast %2 : vector<24x8x28xf32> to vector<192x28xf32>
    %c0_2 = arith.constant 0 : index
    %c0_3 = arith.constant 0 : index
    %c0_4 = arith.constant 0 : index
    %4 = vector.load %arg2[%c0_2, %c0_3, %c0_4] : memref<5x28x144xf32, #tpu.memory_space<vmem>>, vector<1x28x144xf32>
    %5 = vector.shape_cast %4 : vector<1x28x144xf32> to vector<28x144xf32>
    %cst_5 = arith.constant dense<0.000000e+00> : vector<192x144xf32>
    %6 = tpu.matmul %3, %5, %cst_5 {dimension_numbers = #tpu.dot_dimension_numbers<[1], [0], [0], [1], [0, 0, 1, 1], [], []>} : vector<192x28xf32>, vector<28x144xf32>, vector<192x144xf32> -> vector<192x144xf32>
    %7 = arith.addf %1, %6 : vector<192x144xf32>
    %8 = vector.extract_strided_slice %0 {offsets = [1, 0, 0], sizes = [24, 8, 28], strides = [1, 1, 1]} : vector<28x8x28xf32> to vector<24x8x28xf32>
    %9 = vector.shape_cast %8 : vector<24x8x28xf32> to vector<192x28xf32>
    %c1 = arith.constant 1 : index
    %c0_6 = arith.constant 0 : index
    %c0_7 = arith.constant 0 : index
    %10 = vector.load %arg2[%c1, %c0_6, %c0_7] : memref<5x28x144xf32, #tpu.memory_space<vmem>>, vector<1x28x144xf32>
    %11 = vector.shape_cast %10 : vector<1x28x144xf32> to vector<28x144xf32>
    %cst_8 = arith.constant dense<0.000000e+00> : vector<192x144xf32>
    %12 = tpu.matmul %9, %11, %cst_8 {dimension_numbers = #tpu.dot_dimension_numbers<[1], [0], [0], [1], [0, 0, 1, 1], [], []>} : vector<192x28xf32>, vector<28x144xf32>, vector<192x144xf32> -> vector<192x144xf32>
    %13 = arith.addf %7, %12 : vector<192x144xf32>
    %14 = vector.extract_strided_slice %0 {offsets = [2, 0, 0], sizes = [24, 8, 28], strides = [1, 1, 1]} : vector<28x8x28xf32> to vector<24x8x28xf32>
    %15 = vector.shape_cast %14 : vector<24x8x28xf32> to vector<192x28xf32>
    %c2 = arith.constant 2 : index
    %c0_9 = arith.constant 0 : index
    %c0_10 = arith.constant 0 : index
    %16 = vector.load %arg2[%c2, %c0_9, %c0_10] : memref<5x28x144xf32, #tpu.memory_space<vmem>>, vector<1x28x144xf32>
    %17 = vector.shape_cast %16 : vector<1x28x144xf32> to vector<28x144xf32>
    %cst_11 = arith.constant dense<0.000000e+00> : vector<192x144xf32>
    %18 = tpu.matmul %15, %17, %cst_11 {dimension_numbers = #tpu.dot_dimension_numbers<[1], [0], [0], [1], [0, 0, 1, 1], [], []>} : vector<192x28xf32>, vector<28x144xf32>, vector<192x144xf32> -> vector<192x144xf32>
    %19 = arith.addf %13, %18 : vector<192x144xf32>
    %20 = vector.extract_strided_slice %0 {offsets = [3, 0, 0], sizes = [24, 8, 28], strides = [1, 1, 1]} : vector<28x8x28xf32> to vector<24x8x28xf32>
    %21 = vector.shape_cast %20 : vector<24x8x28xf32> to vector<192x28xf32>
    %c3 = arith.constant 3 : index
    %c0_12 = arith.constant 0 : index
    %c0_13 = arith.constant 0 : index
    %22 = vector.load %arg2[%c3, %c0_12, %c0_13] : memref<5x28x144xf32, #tpu.memory_space<vmem>>, vector<1x28x144xf32>
    %23 = vector.shape_cast %22 : vector<1x28x144xf32> to vector<28x144xf32>
    %cst_14 = arith.constant dense<0.000000e+00> : vector<192x144xf32>
    %24 = tpu.matmul %21, %23, %cst_14 {dimension_numbers = #tpu.dot_dimension_numbers<[1], [0], [0], [1], [0, 0, 1, 1], [], []>} : vector<192x28xf32>, vector<28x144xf32>, vector<192x144xf32> -> vector<192x144xf32>
    %25 = arith.addf %19, %24 : vector<192x144xf32>
    %26 = vector.extract_strided_slice %0 {offsets = [4, 0, 0], sizes = [24, 8, 28], strides = [1, 1, 1]} : vector<28x8x28xf32> to vector<24x8x28xf32>
    %27 = vector.shape_cast %26 : vector<24x8x28xf32> to vector<192x28xf32>
    %c4 = arith.constant 4 : index
    %c0_15 = arith.constant 0 : index
    %c0_16 = arith.constant 0 : index
    %28 = vector.load %arg2[%c4, %c0_15, %c0_16] : memref<5x28x144xf32, #tpu.memory_space<vmem>>, vector<1x28x144xf32>
    %29 = vector.shape_cast %28 : vector<1x28x144xf32> to vector<28x144xf32>
    %cst_17 = arith.constant dense<0.000000e+00> : vector<192x144xf32>
    %30 = tpu.matmul %27, %29, %cst_17 {dimension_numbers = #tpu.dot_dimension_numbers<[1], [0], [0], [1], [0, 0, 1, 1], [], []>} : vector<192x28xf32>, vector<28x144xf32>, vector<192x144xf32> -> vector<192x144xf32>
    %31 = arith.addf %25, %30 : vector<192x144xf32>
    %c0_18 = arith.constant 0 : index
    %c0_19 = arith.constant 0 : index
    %32 = vector.load %arg3[%c0_18, %c0_19] : memref<1x144xf32, #tpu.memory_space<vmem>>, vector<1x144xf32>
    %33 = vector.broadcast %32 : vector<1x144xf32> to vector<192x144xf32>
    %34 = arith.addf %31, %33 : vector<192x144xf32>
    %35 = vector.shape_cast %34 : vector<192x144xf32> to vector<12x2x8x144xf32>
    %36 = vector.extract_strided_slice %35 {offsets = [0, 0, 0, 0], sizes = [12, 1, 8, 144], strides = [1, 1, 1, 1]} : vector<12x2x8x144xf32> to vector<12x1x8x144xf32>
    %37 = vector.shape_cast %36 : vector<12x1x8x144xf32> to vector<12x8x144xf32>
    %38 = vector.extract_strided_slice %35 {offsets = [0, 1, 0, 0], sizes = [12, 1, 8, 144], strides = [1, 1, 1, 1]} : vector<12x2x8x144xf32> to vector<12x1x8x144xf32>
    %39 = vector.shape_cast %38 : vector<12x1x8x144xf32> to vector<12x8x144xf32>
    %40 = arith.maximumf %37, %39 : vector<12x8x144xf32>
    %41 = vector.shape_cast %40 : vector<12x8x144xf32> to vector<96x144xf32>
    %c0_20 = arith.constant 0 : index
    %c0_21 = arith.constant 0 : index
    %42 = vector.load %arg4[%c0_20, %c0_21] : memref<144x72xf32, #tpu.memory_space<vmem>>, vector<144x72xf32>
    %cst_22 = arith.constant dense<0.000000e+00> : vector<96x72xf32>
    %43 = tpu.matmul %41, %42, %cst_22 {dimension_numbers = #tpu.dot_dimension_numbers<[1], [0], [0], [1], [0, 0, 1, 1], [], []>} : vector<96x144xf32>, vector<144x72xf32>, vector<96x72xf32> -> vector<96x72xf32>
    %c0_23 = arith.constant 0 : index
    %c0_24 = arith.constant 0 : index
    %44 = vector.load %arg5[%c0_23, %c0_24] : memref<144x72xf32, #tpu.memory_space<vmem>>, vector<144x72xf32>
    %cst_25 = arith.constant dense<0.000000e+00> : vector<96x72xf32>
    %45 = tpu.matmul %41, %44, %cst_25 {dimension_numbers = #tpu.dot_dimension_numbers<[1], [0], [0], [1], [0, 0, 1, 1], [], []>} : vector<96x144xf32>, vector<144x72xf32>, vector<96x72xf32> -> vector<96x72xf32>
    %46 = arith.maximumf %43, %45 : vector<96x72xf32>
    %47 = vector.shape_cast %46 : vector<96x72xf32> to vector<12x8x72xf32>
    %cst_26 = arith.constant 0.000000e+00 : f32
    %48 = vector.broadcast %cst_26 : f32 to vector<64x128xf32>
    %49 = vector.extract_strided_slice %47 {offsets = [0, 0, 0], sizes = [8, 8, 72], strides = [1, 1, 1]} : vector<12x8x72xf32> to vector<8x8x72xf32>
    %50 = vector.shape_cast %49 : vector<8x8x72xf32> to vector<64x72xf32>
    %c0_27 = arith.constant 0 : index
    %c0_28 = arith.constant 0 : index
    %c0_29 = arith.constant 0 : index
    %51 = vector.load %arg6[%c0_27, %c0_28, %c0_29] : memref<5x72x128xf32, #tpu.memory_space<vmem>>, vector<1x72x128xf32>
    %52 = vector.shape_cast %51 : vector<1x72x128xf32> to vector<72x128xf32>
    %cst_30 = arith.constant dense<0.000000e+00> : vector<64x128xf32>
    %53 = tpu.matmul %50, %52, %cst_30 {dimension_numbers = #tpu.dot_dimension_numbers<[1], [0], [0], [1], [0, 0, 1, 1], [], []>} : vector<64x72xf32>, vector<72x128xf32>, vector<64x128xf32> -> vector<64x128xf32>
    %54 = arith.addf %48, %53 : vector<64x128xf32>
    %55 = vector.extract_strided_slice %47 {offsets = [1, 0, 0], sizes = [8, 8, 72], strides = [1, 1, 1]} : vector<12x8x72xf32> to vector<8x8x72xf32>
    %56 = vector.shape_cast %55 : vector<8x8x72xf32> to vector<64x72xf32>
    %c1_31 = arith.constant 1 : index
    %c0_32 = arith.constant 0 : index
    %c0_33 = arith.constant 0 : index
    %57 = vector.load %arg6[%c1_31, %c0_32, %c0_33] : memref<5x72x128xf32, #tpu.memory_space<vmem>>, vector<1x72x128xf32>
    %58 = vector.shape_cast %57 : vector<1x72x128xf32> to vector<72x128xf32>
    %cst_34 = arith.constant dense<0.000000e+00> : vector<64x128xf32>
    %59 = tpu.matmul %56, %58, %cst_34 {dimension_numbers = #tpu.dot_dimension_numbers<[1], [0], [0], [1], [0, 0, 1, 1], [], []>} : vector<64x72xf32>, vector<72x128xf32>, vector<64x128xf32> -> vector<64x128xf32>
    %60 = arith.addf %54, %59 : vector<64x128xf32>
    %61 = vector.extract_strided_slice %47 {offsets = [2, 0, 0], sizes = [8, 8, 72], strides = [1, 1, 1]} : vector<12x8x72xf32> to vector<8x8x72xf32>
    %62 = vector.shape_cast %61 : vector<8x8x72xf32> to vector<64x72xf32>
    %c2_35 = arith.constant 2 : index
    %c0_36 = arith.constant 0 : index
    %c0_37 = arith.constant 0 : index
    %63 = vector.load %arg6[%c2_35, %c0_36, %c0_37] : memref<5x72x128xf32, #tpu.memory_space<vmem>>, vector<1x72x128xf32>
    %64 = vector.shape_cast %63 : vector<1x72x128xf32> to vector<72x128xf32>
    %cst_38 = arith.constant dense<0.000000e+00> : vector<64x128xf32>
    %65 = tpu.matmul %62, %64, %cst_38 {dimension_numbers = #tpu.dot_dimension_numbers<[1], [0], [0], [1], [0, 0, 1, 1], [], []>} : vector<64x72xf32>, vector<72x128xf32>, vector<64x128xf32> -> vector<64x128xf32>
    %66 = arith.addf %60, %65 : vector<64x128xf32>
    %67 = vector.extract_strided_slice %47 {offsets = [3, 0, 0], sizes = [8, 8, 72], strides = [1, 1, 1]} : vector<12x8x72xf32> to vector<8x8x72xf32>
    %68 = vector.shape_cast %67 : vector<8x8x72xf32> to vector<64x72xf32>
    %c3_39 = arith.constant 3 : index
    %c0_40 = arith.constant 0 : index
    %c0_41 = arith.constant 0 : index
    %69 = vector.load %arg6[%c3_39, %c0_40, %c0_41] : memref<5x72x128xf32, #tpu.memory_space<vmem>>, vector<1x72x128xf32>
    %70 = vector.shape_cast %69 : vector<1x72x128xf32> to vector<72x128xf32>
    %cst_42 = arith.constant dense<0.000000e+00> : vector<64x128xf32>
    %71 = tpu.matmul %68, %70, %cst_42 {dimension_numbers = #tpu.dot_dimension_numbers<[1], [0], [0], [1], [0, 0, 1, 1], [], []>} : vector<64x72xf32>, vector<72x128xf32>, vector<64x128xf32> -> vector<64x128xf32>
    %72 = arith.addf %66, %71 : vector<64x128xf32>
    %73 = vector.extract_strided_slice %47 {offsets = [4, 0, 0], sizes = [8, 8, 72], strides = [1, 1, 1]} : vector<12x8x72xf32> to vector<8x8x72xf32>
    %74 = vector.shape_cast %73 : vector<8x8x72xf32> to vector<64x72xf32>
    %c4_43 = arith.constant 4 : index
    %c0_44 = arith.constant 0 : index
    %c0_45 = arith.constant 0 : index
    %75 = vector.load %arg6[%c4_43, %c0_44, %c0_45] : memref<5x72x128xf32, #tpu.memory_space<vmem>>, vector<1x72x128xf32>
    %76 = vector.shape_cast %75 : vector<1x72x128xf32> to vector<72x128xf32>
    %cst_46 = arith.constant dense<0.000000e+00> : vector<64x128xf32>
    %77 = tpu.matmul %74, %76, %cst_46 {dimension_numbers = #tpu.dot_dimension_numbers<[1], [0], [0], [1], [0, 0, 1, 1], [], []>} : vector<64x72xf32>, vector<72x128xf32>, vector<64x128xf32> -> vector<64x128xf32>
    %78 = arith.addf %72, %77 : vector<64x128xf32>
    %c0_47 = arith.constant 0 : index
    %c0_48 = arith.constant 0 : index
    %79 = vector.load %arg7[%c0_47, %c0_48] : memref<1x128xf32, #tpu.memory_space<vmem>>, vector<1x128xf32>
    %80 = vector.broadcast %79 : vector<1x128xf32> to vector<64x128xf32>
    %81 = arith.addf %78, %80 : vector<64x128xf32>
    %82 = vector.shape_cast %81 : vector<64x128xf32> to vector<4x2x8x128xf32>
    %83 = vector.extract_strided_slice %82 {offsets = [0, 0, 0, 0], sizes = [4, 1, 8, 128], strides = [1, 1, 1, 1]} : vector<4x2x8x128xf32> to vector<4x1x8x128xf32>
    %84 = vector.shape_cast %83 : vector<4x1x8x128xf32> to vector<4x8x128xf32>
    %85 = vector.extract_strided_slice %82 {offsets = [0, 1, 0, 0], sizes = [4, 1, 8, 128], strides = [1, 1, 1, 1]} : vector<4x2x8x128xf32> to vector<4x1x8x128xf32>
    %86 = vector.shape_cast %85 : vector<4x1x8x128xf32> to vector<4x8x128xf32>
    %87 = arith.maximumf %84, %86 : vector<4x8x128xf32>
    %88 = vector.shape_cast %87 : vector<4x8x128xf32> to vector<32x128xf32>
    %c0_49 = arith.constant 0 : index
    %c0_50 = arith.constant 0 : index
    %89 = vector.load %arg8[%c0_49, %c0_50] : memref<128x64xf32, #tpu.memory_space<vmem>>, vector<128x64xf32>
    %cst_51 = arith.constant dense<0.000000e+00> : vector<32x64xf32>
    %90 = tpu.matmul %88, %89, %cst_51 {dimension_numbers = #tpu.dot_dimension_numbers<[1], [0], [0], [1], [0, 0, 1, 1], [], []>} : vector<32x128xf32>, vector<128x64xf32>, vector<32x64xf32> -> vector<32x64xf32>
    %c0_52 = arith.constant 0 : index
    %c0_53 = arith.constant 0 : index
    %91 = vector.load %arg9[%c0_52, %c0_53] : memref<128x64xf32, #tpu.memory_space<vmem>>, vector<128x64xf32>
    %cst_54 = arith.constant dense<0.000000e+00> : vector<32x64xf32>
    %92 = tpu.matmul %88, %91, %cst_54 {dimension_numbers = #tpu.dot_dimension_numbers<[1], [0], [0], [1], [0, 0, 1, 1], [], []>} : vector<32x128xf32>, vector<128x64xf32>, vector<32x64xf32> -> vector<32x64xf32>
    %93 = arith.maximumf %90, %92 : vector<32x64xf32>
    %94 = vector.shape_cast %93 : vector<32x64xf32> to vector<4x8x64xf32>
    %cst_55 = arith.constant 0.000000e+00 : f32
    %95 = vector.broadcast %cst_55 : f32 to vector<8x128xf32>
    %c0_56 = arith.constant 0 : index
    %c0_57 = arith.constant 0 : index
    %96 = vector.load %arg11[%c0_56, %c0_57] : memref<1x128xf32, #tpu.memory_space<vmem>>, vector<1x128xf32>
    %97 = vector.broadcast %96 : vector<1x128xf32> to vector<8x128xf32>
    %98 = arith.addf %95, %97 : vector<8x128xf32>
    %99 = vector.extract_strided_slice %94 {offsets = [0, 0, 0], sizes = [1, 8, 64], strides = [1, 1, 1]} : vector<4x8x64xf32> to vector<1x8x64xf32>
    %100 = vector.shape_cast %99 : vector<1x8x64xf32> to vector<8x64xf32>
    %c0_58 = arith.constant 0 : index
    %c0_59 = arith.constant 0 : index
    %c0_60 = arith.constant 0 : index
    %101 = vector.load %arg10[%c0_58, %c0_59, %c0_60] : memref<4x64x128xf32, #tpu.memory_space<vmem>>, vector<1x64x128xf32>
    %102 = vector.shape_cast %101 : vector<1x64x128xf32> to vector<64x128xf32>
    %cst_61 = arith.constant dense<0.000000e+00> : vector<8x128xf32>
    %103 = tpu.matmul %100, %102, %cst_61 {dimension_numbers = #tpu.dot_dimension_numbers<[1], [0], [0], [1], [0, 0, 1, 1], [], []>} : vector<8x64xf32>, vector<64x128xf32>, vector<8x128xf32> -> vector<8x128xf32>
    %104 = arith.addf %98, %103 : vector<8x128xf32>
    %105 = vector.extract_strided_slice %94 {offsets = [1, 0, 0], sizes = [1, 8, 64], strides = [1, 1, 1]} : vector<4x8x64xf32> to vector<1x8x64xf32>
    %106 = vector.shape_cast %105 : vector<1x8x64xf32> to vector<8x64xf32>
    %c1_62 = arith.constant 1 : index
    %c0_63 = arith.constant 0 : index
    %c0_64 = arith.constant 0 : index
    %107 = vector.load %arg10[%c1_62, %c0_63, %c0_64] : memref<4x64x128xf32, #tpu.memory_space<vmem>>, vector<1x64x128xf32>
    %108 = vector.shape_cast %107 : vector<1x64x128xf32> to vector<64x128xf32>
    %cst_65 = arith.constant dense<0.000000e+00> : vector<8x128xf32>
    %109 = tpu.matmul %106, %108, %cst_65 {dimension_numbers = #tpu.dot_dimension_numbers<[1], [0], [0], [1], [0, 0, 1, 1], [], []>} : vector<8x64xf32>, vector<64x128xf32>, vector<8x128xf32> -> vector<8x128xf32>
    %110 = arith.addf %104, %109 : vector<8x128xf32>
    %111 = vector.extract_strided_slice %94 {offsets = [2, 0, 0], sizes = [1, 8, 64], strides = [1, 1, 1]} : vector<4x8x64xf32> to vector<1x8x64xf32>
    %112 = vector.shape_cast %111 : vector<1x8x64xf32> to vector<8x64xf32>
    %c2_66 = arith.constant 2 : index
    %c0_67 = arith.constant 0 : index
    %c0_68 = arith.constant 0 : index
    %113 = vector.load %arg10[%c2_66, %c0_67, %c0_68] : memref<4x64x128xf32, #tpu.memory_space<vmem>>, vector<1x64x128xf32>
    %114 = vector.shape_cast %113 : vector<1x64x128xf32> to vector<64x128xf32>
    %cst_69 = arith.constant dense<0.000000e+00> : vector<8x128xf32>
    %115 = tpu.matmul %112, %114, %cst_69 {dimension_numbers = #tpu.dot_dimension_numbers<[1], [0], [0], [1], [0, 0, 1, 1], [], []>} : vector<8x64xf32>, vector<64x128xf32>, vector<8x128xf32> -> vector<8x128xf32>
    %116 = arith.addf %110, %115 : vector<8x128xf32>
    %117 = vector.extract_strided_slice %94 {offsets = [3, 0, 0], sizes = [1, 8, 64], strides = [1, 1, 1]} : vector<4x8x64xf32> to vector<1x8x64xf32>
    %118 = vector.shape_cast %117 : vector<1x8x64xf32> to vector<8x64xf32>
    %c3_70 = arith.constant 3 : index
    %c0_71 = arith.constant 0 : index
    %c0_72 = arith.constant 0 : index
    %119 = vector.load %arg10[%c3_70, %c0_71, %c0_72] : memref<4x64x128xf32, #tpu.memory_space<vmem>>, vector<1x64x128xf32>
    %120 = vector.shape_cast %119 : vector<1x64x128xf32> to vector<64x128xf32>
    %cst_73 = arith.constant dense<0.000000e+00> : vector<8x128xf32>
    %121 = tpu.matmul %118, %120, %cst_73 {dimension_numbers = #tpu.dot_dimension_numbers<[1], [0], [0], [1], [0, 0, 1, 1], [], []>} : vector<8x64xf32>, vector<64x128xf32>, vector<8x128xf32> -> vector<8x128xf32>
    %122 = arith.addf %116, %121 : vector<8x128xf32>
    %c0_74 = arith.constant 0 : index
    %c0_75 = arith.constant 0 : index
    %123 = vector.load %arg12[%c0_74, %c0_75] : memref<128x128xf32, #tpu.memory_space<vmem>>, vector<128x128xf32>
    %cst_76 = arith.constant dense<0.000000e+00> : vector<8x128xf32>
    %124 = tpu.matmul %122, %123, %cst_76 {dimension_numbers = #tpu.dot_dimension_numbers<[1], [0], [0], [1], [0, 0, 1, 1], [], []>} : vector<8x128xf32>, vector<128x128xf32>, vector<8x128xf32> -> vector<8x128xf32>
    %c0_77 = arith.constant 0 : index
    %c0_78 = arith.constant 0 : index
    %125 = vector.load %arg13[%c0_77, %c0_78] : memref<1x128xf32, #tpu.memory_space<vmem>>, vector<1x128xf32>
    %126 = vector.broadcast %125 : vector<1x128xf32> to vector<8x128xf32>
    %127 = arith.addf %124, %126 : vector<8x128xf32>
    %c0_79 = arith.constant 0 : index
    %c0_80 = arith.constant 0 : index
    %128 = vector.load %arg14[%c0_79, %c0_80] : memref<128x128xf32, #tpu.memory_space<vmem>>, vector<128x128xf32>
    %cst_81 = arith.constant dense<0.000000e+00> : vector<8x128xf32>
    %129 = tpu.matmul %127, %128, %cst_81 {dimension_numbers = #tpu.dot_dimension_numbers<[1], [0], [0], [1], [0, 0, 1, 1], [], []>} : vector<8x128xf32>, vector<128x128xf32>, vector<8x128xf32> -> vector<8x128xf32>
    %c0_82 = arith.constant 0 : index
    %c0_83 = arith.constant 0 : index
    %130 = vector.load %arg15[%c0_82, %c0_83] : memref<1x128xf32, #tpu.memory_space<vmem>>, vector<1x128xf32>
    %131 = vector.broadcast %130 : vector<1x128xf32> to vector<8x128xf32>
    %132 = arith.addf %129, %131 : vector<8x128xf32>
    %133 = tpu.iota {dimensions = array<i32: 1>} : vector<8x128xi32>
    %c10_i32 = arith.constant 10 : i32
    %134 = vector.broadcast %c10_i32 : i32 to vector<8x128xi32>
    %135 = arith.cmpi slt, %133, %134 : vector<8x128xi32>
    %cst_84 = arith.constant -1.000000e+30 : f32
    %136 = vector.broadcast %cst_84 : f32 to vector<8x128xf32>
    %137 = arith.select %135, %132, %136 : vector<8x128xi1>, vector<8x128xf32>
    %cst_85 = arith.constant dense<0xFF800000> : vector<8xf32>
    %138 = vector.multi_reduction <maximumf>, %137, %cst_85 [1] : vector<8x128xf32> to vector<8xf32>
    %139 = vector.shape_cast %138 : vector<8xf32> to vector<8x1xf32>
    %140 = vector.broadcast %139 : vector<8x1xf32> to vector<8x128xf32>
    %141 = arith.subf %137, %140 : vector<8x128xf32>
    %142 = math.exp %141 : vector<8x128xf32>
    %cst_86 = arith.constant dense<0.000000e+00> : vector<8xf32>
    %143 = vector.multi_reduction <add>, %142, %cst_86 [1] : vector<8x128xf32> to vector<8xf32>
    %144 = vector.shape_cast %143 : vector<8xf32> to vector<8x1xf32>
    %145 = math.log %144 : vector<8x1xf32>
    %146 = vector.broadcast %145 : vector<8x1xf32> to vector<8x128xf32>
    %147 = arith.subf %141, %146 : vector<8x128xf32>
    %c0_87 = arith.constant 0 : index
    %c0_88 = arith.constant 0 : index
    %148 = vector.load %arg16[%c0_87, %c0_88] : memref<8x128xf32, #tpu.memory_space<vmem>>, vector<8x128xf32>
    tpu.vector_store %arg16[%c0_87, %c0_88], %147 {strides = array<i32>} : memref<8x128xf32, #tpu.memory_space<vmem>>, vector<8x128xf32>,
    return
  }
  func.func @transform_0(%arg0: i32) -> (i32, i32, i32) {
    %c0_i32 = arith.constant 0 : i32
    %c0_i32_0 = arith.constant 0 : i32
    %c0_i32_1 = arith.constant 0 : i32
    return %c0_i32, %arg0, %c0_i32_0 : i32, i32, i32
  }
  func.func @transform_1(%arg0: i32) -> (i32, i32, i32) {
    %c0_i32 = arith.constant 0 : i32
    %c0_i32_0 = arith.constant 0 : i32
    %c0_i32_1 = arith.constant 0 : i32
    %c0_i32_2 = arith.constant 0 : i32
    return %c0_i32, %c0_i32_0, %c0_i32_1 : i32, i32, i32
  }
  func.func @transform_2(%arg0: i32) -> (i32, i32) {
    %c0_i32 = arith.constant 0 : i32
    %c0_i32_0 = arith.constant 0 : i32
    %c0_i32_1 = arith.constant 0 : i32
    return %c0_i32, %c0_i32_0 : i32, i32
  }
  func.func @transform_3(%arg0: i32) -> (i32, i32) {
    %c0_i32 = arith.constant 0 : i32
    %c0_i32_0 = arith.constant 0 : i32
    %c0_i32_1 = arith.constant 0 : i32
    return %c0_i32, %c0_i32_0 : i32, i32
  }
  func.func @transform_4(%arg0: i32) -> (i32, i32) {
    %c0_i32 = arith.constant 0 : i32
    %c0_i32_0 = arith.constant 0 : i32
    %c0_i32_1 = arith.constant 0 : i32
    return %c0_i32, %c0_i32_0 : i32, i32
  }
  func.func @transform_5(%arg0: i32) -> (i32, i32, i32) {
    %c0_i32 = arith.constant 0 : i32
    %c0_i32_0 = arith.constant 0 : i32
    %c0_i32_1 = arith.constant 0 : i32
    %c0_i32_2 = arith.constant 0 : i32
    return %c0_i32, %c0_i32_0, %c0_i32_1 : i32, i32, i32
  }
  func.func @transform_6(%arg0: i32) -> (i32, i32) {
    %c0_i32 = arith.constant 0 : i32
    %c0_i32_0 = arith.constant 0 : i32
    %c0_i32_1 = arith.constant 0 : i32
    return %c0_i32, %c0_i32_0 : i32, i32
  }
  func.func @transform_7(%arg0: i32) -> (i32, i32) {
    %c0_i32 = arith.constant 0 : i32
    %c0_i32_0 = arith.constant 0 : i32
    %c0_i32_1 = arith.constant 0 : i32
    return %c0_i32, %c0_i32_0 : i32, i32
  }
  func.func @transform_8(%arg0: i32) -> (i32, i32) {
    %c0_i32 = arith.constant 0 : i32
    %c0_i32_0 = arith.constant 0 : i32
    %c0_i32_1 = arith.constant 0 : i32
    return %c0_i32, %c0_i32_0 : i32, i32
  }
  func.func @transform_9(%arg0: i32) -> (i32, i32, i32) {
    %c0_i32 = arith.constant 0 : i32
    %c0_i32_0 = arith.constant 0 : i32
    %c0_i32_1 = arith.constant 0 : i32
    %c0_i32_2 = arith.constant 0 : i32
    return %c0_i32, %c0_i32_0, %c0_i32_1 : i32, i32, i32
  }
  func.func @transform_10(%arg0: i32) -> (i32, i32) {
    %c0_i32 = arith.constant 0 : i32
    %c0_i32_0 = arith.constant 0 : i32
    %c0_i32_1 = arith.constant 0 : i32
    return %c0_i32, %c0_i32_0 : i32, i32
  }
  func.func @transform_11(%arg0: i32) -> (i32, i32) {
    %c0_i32 = arith.constant 0 : i32
    %c0_i32_0 = arith.constant 0 : i32
    %c0_i32_1 = arith.constant 0 : i32
    return %c0_i32, %c0_i32_0 : i32, i32
  }
  func.func @transform_12(%arg0: i32) -> (i32, i32) {
    %c0_i32 = arith.constant 0 : i32
    %c0_i32_0 = arith.constant 0 : i32
    %c0_i32_1 = arith.constant 0 : i32
    return %c0_i32, %c0_i32_0 : i32, i32
  }
  func.func @transform_13(%arg0: i32) -> (i32, i32) {
    %c0_i32 = arith.constant 0 : i32
    %c0_i32_0 = arith.constant 0 : i32
    %c0_i32_1 = arith.constant 0 : i32
    return %c0_i32, %c0_i32_0 : i32, i32
  }
  func.func @transform_14(%arg0: i32) -> (i32, i32) {
    %c0_i32 = arith.constant 0 : i32
    %c0_i32_0 = arith.constant 0 : i32
    %c0_i32_1 = arith.constant 0 : i32
    return %c0_i32, %c0_i32_0 : i32, i32
  }
  func.func @transform_15(%arg0: i32) -> (i32, i32) {
    %c0_i32 = arith.constant 0 : i32
    %c0_i32_0 = arith.constant 0 : i32
    return %arg0, %c0_i32 : i32, i32
  }
}

</mosaic_0001>

<bundles_post_ra>
// kernel: cnn_forward.1
= control target key start
LH: loop header
LB: loop body
LE: loop exit
PB: predicated region body
PF: predicated region fallthrough
CT: control target
= control target key end

     0   :  { %20 = vsyncpa [#allocation3], 0  ;;  %s6117_s0 = inlined_call_operand.vmem [shape: f32[28,8,28], index: 0, kind: input, shape index: {}]   ;;  %s6118_s1 = inlined_call_operand.vmem [shape: f32[5,28,144], index: 1, kind: input, shape index: {}]   ;;  %s6119_s2 = inlined_call_operand.vmem [shape: f32[1,144], index: 2, kind: input, shape index: {}]   ;;  %s6120_s3 = inlined_call_operand.hbm [shape: f32[144,72], index: 3, kind: input, shape index: {}]   ;;  %s6121_s4 = inlined_call_operand.hbm [shape: f32[144,72], index: 4, kind: input, shape index: {}]   ;;  %s6122_s5 = inlined_call_operand.vmem [shape: f32[5,72,128], index: 5, kind: input, shape index: {}]   ;;  %s6123_s6 = inlined_call_operand.vmem [shape: f32[1,128], index: 6, kind: input, shape index: {}]   ;;  %s6124_s7 = inlined_call_operand.vmem [shape: f32[128,64], index: 7, kind: input, shape index: {}]   ;;  %s6125_s8 = inlined_call_operand.vmem [shape: f32[128,64], index: 8, kind: input, shape index: {}]   ;;  %s6126_s9 = inlined_call_operand.hbm [shape: f32[4,64,128], index: 9, kind: input, shape index: {}]   ;;  %s6127_s10 = inlined_call_operand.vmem [shape: f32[1,128], index: 10, kind: input, shape index: {}]   ;;  %s6128_s11 = inlined_call_operand.hbm [shape: f32[128,128], index: 11, kind: input, shape index: {}]   ;;  %s6129_s12 = inlined_call_operand.vmem [shape: f32[1,128], index: 12, kind: input, shape index: {}]   ;;  %s6130_s13 = inlined_call_operand.hbm [shape: f32[128,128], index: 13, kind: input, shape index: {}]   ;;  %s6131_s14 = inlined_call_operand.vmem [shape: f32[1,128], index: 14, kind: input, shape index: {}]   ;;  %s6132_s15 = inlined_call_operand.vmem [shape: f32[8,128], index: 15, kind: output, shape index: {}]  }
   0x1   :  { %21 = vsyncpa [#allocation5], 0 }
   0x2   :  { %22 = vsyncpa [#allocation8], 0  ;;  %s4278_s18 = smov [#allocation4]   ;;  %s4279_s20 = smov [#allocation7]  }
   0x3   :  { %s46_s19 = sshll.u32 %s4278_s18, 4  ;;  %s80_s21 = sshll.u32 %s4279_s20, 4  ;;  %s47_s19 = int_to_ptr.vmem [resolvable:$true] %s46_s19  ;;  %s81_s21 = int_to_ptr.vmem [resolvable:$true] %s80_s21 }
   0x4   :  { %s4180_s22 = scalar_lea.vmem %s47_s19, 2304  ;;  %p4185_p1 = scmp.lt.s32.totalorder %s47_s19, %s47_s19 }
   0x5   :  { %p4181_p0 = scmp.ne.s32.totalorder %s47_s19, %s4180_s22  ;;  %p4186_p2 = scmp.lt.s32.totalorder %s4180_s22, %s4180_s22 }
   0x7   :  { %p4187_p3 = por %p4186_p2, %p4185_p1 }
   0x9   :  { %p4188_p4 = pnand %p4187_p3, %p4181_p0 }
   0xb   :  { %4191 = shalt.err (!%p4188_p4)
}
   0xc   :  { %s4280_s23 = smov 128   ;;  %s4281_s24 = smov 8  }
   0xd   :  { %52 = dma.hbm_to_vmem [thread:$0]  %s6121_s4, 2304, %s47_s19, [#allocation5], %s4280_s23, %s4280_s23, %s4281_s24  }
   0xe   :  { %s4200_s27 = scalar_lea.vmem %s81_s21, 2048  ;;  %p4205_p6 = scmp.lt.s32.totalorder %s81_s21, %s81_s21 }
   0xf   :  { %p4201_p5 = scmp.ne.s32.totalorder %s81_s21, %s4200_s27  ;;  %p4206_p7 = scmp.lt.s32.totalorder %s4200_s27, %s4200_s27 }
  0x11   :  { %p4207_p8 = por %p4206_p7, %p4205_p6 }
  0x13   :  { %p4208_p9 = pnand %p4207_p8, %p4201_p5 }
  0x15   :  { %4211 = shalt.err (!%p4208_p9)
}
  0x16   :  { %86 = dma.hbm_to_vmem [thread:$0]  %s6128_s11, 2048, %s81_s21, [#allocation8], %s4280_s23, %s4280_s23, %s4281_s24  }
  0x17   :  { %s4282_s30 = smov [#allocation2]   ;;  %s4283_s17 = smov [#allocation6]  }
  0x18   :  { %s34_s16 = sshll.u32 %s4282_s30, 4  ;;  %s66_s18 = sshll.u32 %s4283_s17, 4  ;;  %s35_s16 = int_to_ptr.vmem [resolvable:$true] %s34_s16  ;;  %s67_s18 = int_to_ptr.vmem [resolvable:$true] %s66_s18 }
  0x19   :  { %s4220_s4 = scalar_lea.vmem %s35_s16, 2304  ;;  %p4225_p11 = scmp.lt.s32.totalorder %s35_s16, %s35_s16 }
  0x1a   :  { %p4221_p10 = scmp.ne.s32.totalorder %s35_s16, %s4220_s4  ;;  %p4226_p12 = scmp.lt.s32.totalorder %s4220_s4, %s4220_s4 }
  0x1c   :  { %p4227_p13 = por %p4226_p12, %p4225_p11 }
  0x1e   :  { %p4228_p0 = pnand %p4227_p13, %p4221_p10 }
  0x20   :  { %4231 = shalt.err (!%p4228_p0)
}
  0x21   :  { %40 = dma.hbm_to_vmem [thread:$0]  %s6120_s3, 2304, %s35_s16, [#allocation3], %s4280_s23, %s4280_s23, %s4281_s24  }
  0x22   :  { %s4240_s11 = scalar_lea.vmem %s67_s18, 4096  ;;  %p4245_p2 = scmp.lt.s32.totalorder %s67_s18, %s67_s18 }
  0x23   :  { %p4241_p1 = scmp.ne.s32.totalorder %s67_s18, %s4240_s11  ;;  %p4246_p3 = scmp.lt.s32.totalorder %s4240_s11, %s4240_s11 }
  0x25   :  { %p4247_p4 = por %p4246_p3, %p4245_p2 }
  0x27   :  { %p4248_p5 = pnand %p4247_p4, %p4241_p1 }
  0x29   :  { %4251 = shalt.err (!%p4248_p5)
}
  0x2a   :  { %72 = dma.hbm_to_vmem [thread:$0]  %s6126_s9, 4096, %s67_s18, [#allocation5], %s4280_s23, %s4280_s23, %s4281_s24  }
  0x2b   :  { %s4284_s25 = smov [#allocation9]  }
  0x2c   :  { %s94_s26 = sshll.u32 %s4284_s25, 4  ;;  %s95_s26 = int_to_ptr.vmem [resolvable:$true] %s94_s26 }
  0x2d   :  { %s4260_s27 = scalar_lea.vmem %s95_s26, 2048  ;;  %p4265_p7 = scmp.lt.s32.totalorder %s95_s26, %s95_s26 }
  0x2e   :  { %p4261_p6 = scmp.ne.s32.totalorder %s95_s26, %s4260_s27  ;;  %p4266_p8 = scmp.lt.s32.totalorder %s4260_s27, %s4260_s27 }
  0x30   :  { %p4267_p9 = por %p4266_p8, %p4265_p7 }
  0x32   :  { %p4268_p10 = pnand %p4267_p9, %p4261_p6 }
  0x34   :  { %4271 = shalt.err (!%p4268_p10)
}
  0x35   :  { %100 = dma.hbm_to_vmem [thread:$0]  %s6130_s13, 2048, %s95_s26, [#allocation8], %s4280_s23, %s4280_s23, %s4281_s24  }
  0x36   :  { %4272 = dma.done.wait [#allocation3], 2304  }
  0x37   :  { %4273 = vsyncadd [#allocation3], 4294964992 }
  0x38   :  { %4274 = dma.done.wait [#allocation5], 6400  }
  0x39   :  { %4275 = vsyncadd [#allocation5], 4294960896 }
  0x3a   :  { %4276 = dma.done.wait [#allocation8], 4096  }
  0x3b   :  { %4277 = vsyncadd [#allocation8], 4294963200  ;;  %v6133_v0 = vmov 0.0   ;;  %vm236_vm0 = vcmask 1043456   ;;  %v3329_v1 = vld [vmem:[%s6118_s1 + $0x78] sm:$0xf] }
  0x3c   :  { %307 = vmatprep.mubr.f32.mxu0 %v6133_v0  ;;  %525 = vmatprep.mubr.f32.mxu1 %v6133_v0  ;;  %v153_v2 = vld [vmem:[%s6118_s1 + $0x38] sm:$0xf]  ;;  %v3328_v3 = vld [vmem:[%s6118_s1 + $0x70] sm:$0xf]  ;;  %v3327_v5 = vld [vmem:[%s6118_s1 + $0x68] sm:$0xff]  ;;  %vm163_vm1 = vcmask 228352  }
  0x3d   :  { %3330 = vmatprep.subr.msk.mxu0 %vm236_vm0, %v3329_v1  ;;  %3356 = vmatprep.subr.msk.mxu1 %vm236_vm0, %v153_v2  ;;  %v152_v4 = vld [vmem:[%s6118_s1 + $0x30] sm:$0xf]  ;;  %v151_v6 = vld [vmem:[%s6118_s1 + $0x28] sm:$0xff]  ;;  %v3326_v7 = vld [vmem:[%s6118_s1 + $0x60] sm:$0xff]  ;;  %vm1597_vm2 = vcmask 130048   ;;  %vm1933_vm3 = vcmask 588800  }
  0x3e   :  { %3331 = vmatpush1.msk.msra.mxu0 %vm236_vm0, %v3328_v3  ;;  %3357 = vmatpush1.msk.msra.mxu1 %vm236_vm0, %v152_v4  ;;  %v150_v8 = vld [vmem:[%s6118_s1 + $0x20] sm:$0xff]  ;;  %v3325_v9 = vld [vmem:[%s6118_s1 + $0x58] sm:$0xff]  ;;  %v3324_v11 = vld [vmem:[%s6118_s1 + $0x50] sm:$0xff]  ;;  %vm4286_vm4 = vmmov 0   ;;  %vm2790_vm5 = vcmask 523264  }
  0x3f   :  { %269 = vmatprep.subr.mxu0 %v3327_v5  ;;  %487 = vmatprep.subr.mxu1 %v151_v6  ;;  %v149_v10 = vld [vmem:[%s6118_s1 + $0x18] sm:$0xff]  ;;  %v148_v12 = vld [vmem:[%s6118_s1 + $0x10] sm:$0xff]  ;;  %v3323_v13 = vld [vmem:[%s6118_s1 + $0x48] sm:$0xff] }
  0x40   :  { %270 = vmatpush1.msra.mxu0 %v3326_v7  ;;  %488 = vmatpush1.msra.mxu1 %v150_v8  ;;  %v147_v14 = vld [vmem:[%s6118_s1 + $0x8] sm:$0xff]  ;;  %v3322_v15 = vld [vmem:[%s6118_s1 + $0x40] sm:$0xff]  ;;  %v3389_v19 = vld [vmem:[%s6118_s1 + $0xb8] sm:$0xf] }
  0x41   :  { %271 = vmatprep.subr.mxu0 %v3325_v9  ;;  %489 = vmatprep.subr.mxu1 %v149_v10  ;;  %v146_v16 = vld [vmem:[%s6118_s1] sm:$0xff]  ;;  %v119_v17 = vld [vmem:[%s6117_s0 + $0x8] sm:$0xff]  ;;  %v3388_v20 = vld [vmem:[%s6118_s1 + $0xb0] sm:$0xf] }
  0x42   :  { %272 = vmatpush1.msra.mxu0 %v3324_v11  ;;  %490 = vmatpush1.msra.mxu1 %v148_v12  ;;  %v118_v18 = vld [vmem:[%s6117_s0] sm:$0xff]  ;;  %v3387_v21 = vld [vmem:[%s6118_s1 + $0xa8] sm:$0xff]  ;;  %v4473_v22 = vld [vmem:[%s6117_s0 + $0x10] sm:$0xff] }
  0x43   :  { %273 = vmatprep.subr.mxu0 %v3323_v13  ;;  %491 = vmatprep.subr.mxu1 %v147_v14  ;;  %v3386_v23 = vld [vmem:[%s6118_s1 + $0xa0] sm:$0xff]  ;;  %v3385_v24 = vld [vmem:[%s6118_s1 + $0x98] sm:$0xff]  ;;  %v3384_v26 = vld [vmem:[%s6118_s1 + $0x90] sm:$0xff] }
  0x44   :  { %274 = vmatpush1.msra.mxu0 %v3322_v15  ;;  %492 = vmatpush1.msra.mxu1 %v146_v16  ;;  %v4491_v25 = vld [vmem:[%s6117_s0 + $0x18] sm:$0xff]  ;;  %v3383_v28 = vld [vmem:[%s6118_s1 + $0x88] sm:$0xff]  ;;  %v3422_v29 = vld [vmem:[%s6118_s1 + $0xf0] sm:$0xf] }
  0x45   :  { %3332 = vmatmul.mubr.msk.f32.vlgmr.msra.gmra.mxu0 %vm163_vm1, %v119_v17  ;;  %3358 = vmatmul.mubr.msk.f32.vlgmr.msra.gmra.mxu1 %vm163_vm1, %v118_v18  ;;  %v3423_v27 = vld [vmem:[%s6118_s1 + $0xf8] sm:$0xf]  ;;  %v4514_v30 = vld [vmem:[%s6117_s0 + $0x20] sm:$0xff]  ;;  %v3421_v32 = vld [vmem:[%s6118_s1 + $0xe8] sm:$0xff] }
  0x46   :  { %3390 = vmatprep.subr.msk.mxu0 %vm236_vm0, %v3389_v19  ;;  %313 = vmatprep.mubr.f32.mxu0 %v6133_v0  ;;  %v3382_v31 = vld [vmem:[%s6118_s1 + $0x80] sm:$0xff]  ;;  %v3457_v34 = vld [vmem:[%s6118_s1 + $0x138] sm:$0xf]  ;;  %v4539_v35 = vld [vmem:[%s6117_s0 + $0x28] sm:$0xff] }
  0x47   :  { %3391 = vmatpush1.msk.msra.mxu0 %vm236_vm0, %v3388_v20  ;;  %531 = vmatprep.mubr.f32.mxu1 %v6133_v0  ;;  %v3420_v33 = vld [vmem:[%s6118_s1 + $0xe0] sm:$0xff]  ;;  %v3419_v36 = vld [vmem:[%s6118_s1 + $0xd8] sm:$0xff]  ;;  %v3418_v37 = vld [vmem:[%s6118_s1 + $0xd0] sm:$0xff] }
  0x48   :  { %714 = vmatprep.subr.mxu0 %v3387_v21  ;;  %3424 = vmatprep.subr.msk.mxu1 %vm236_vm0, %v3423_v27  ;;  %v4557_v38 = vld [vmem:[%s6117_s0 + $0x30] sm:$0xff]  ;;  %v3417_v39 = vld [vmem:[%s6118_s1 + $0xc8] sm:$0xff]  ;;  %v3416_v40 = vld [vmem:[%s6118_s1 + $0xc0] sm:$0xff] }
  0x49   :  { %3333 = vmatmul.mubr.msk.f32.gmra.mxu0 %vm163_vm1, %v4473_v22  ;;  %3359 = vmatmul.mubr.msk.f32.gmra.mxu1 %vm163_vm1, %v119_v17  ;;  %v4574_v41 = vld [vmem:[%s6117_s0 + $0x38] sm:$0xff]  ;;  %v4585_v42 = vld [vmem:[%s6117_s0 + $0x40] sm:$0xff]  ;;  %v4597_v43 = vld [vmem:[%s6117_s0 + $0x48] sm:$0xff] }
  0x4a   :  { %319 = vmatprep.mubr.f32.mxu0 %v6133_v0  ;;  %537 = vmatprep.mubr.f32.mxu1 %v6133_v0  ;;  %v4608_v44 = vld [vmem:[%s6117_s0 + $0x50] sm:$0xff]  ;;  %v4619_v45 = vld [vmem:[%s6117_s0 + $0x58] sm:$0xff]  ;;  %v4630_v46 = vld [vmem:[%s6117_s0 + $0x60] sm:$0xff] }
  0x4b   :  { %715 = vmatpush1.msra.mxu0 %v3386_v23  ;;  %3425 = vmatpush1.msk.msra.mxu1 %vm236_vm0, %v3422_v29  ;;  %v4641_v47 = vld [vmem:[%s6117_s0 + $0x68] sm:$0xff]  ;;  %v4652_v48 = vld [vmem:[%s6117_s0 + $0x70] sm:$0xff]  ;;  %v4663_v49 = vld [vmem:[%s6117_s0 + $0x78] sm:$0xff] }
  0x4c   :  { %716 = vmatprep.subr.mxu0 %v3385_v24  ;;  %989 = vmatprep.subr.mxu1 %v3421_v32  ;;  %v4674_v50 = vld [vmem:[%s6117_s0 + $0x80] sm:$0xff]  ;;  %v4685_v51 = vld [vmem:[%s6117_s0 + $0x88] sm:$0xff]  ;;  %v4696_v52 = vld [vmem:[%s6117_s0 + $0x90] sm:$0xff] }
  0x4d   :  { %3334 = vmatmul.mubr.msk.f32.gmra.mxu0 %vm163_vm1, %v4491_v25  ;;  %3360 = vmatmul.mubr.msk.f32.gmra.mxu1 %vm163_vm1, %v4473_v22  ;;  %v4707_v53 = vld [vmem:[%s6117_s0 + $0x98] sm:$0xff]  ;;  %v4718_v54 = vld [vmem:[%s6117_s0 + $0xa0] sm:$0xff]  ;;  %v4729_v55 = vld [vmem:[%s6117_s0 + $0xa8] sm:$0xff] }
  0x4e   :  { %325 = vmatprep.mubr.f32.mxu0 %v6133_v0  ;;  %543 = vmatprep.mubr.f32.mxu1 %v6133_v0  ;;  %v4740_v56 = vld [vmem:[%s6117_s0 + $0xb0] sm:$0xff]  ;;  %v4751_v57 = vld [vmem:[%s6117_s0 + $0xb8] sm:$0xff]  ;;  %v4762_v58 = vld [vmem:[%s6117_s0 + $0xc0] sm:$0xff] }
  0x4f   :  { %717 = vmatpush1.msra.mxu0 %v3384_v26  ;;  %990 = vmatpush1.msra.mxu1 %v3420_v33  ;;  %v3456_v59 = vld [vmem:[%s6118_s1 + $0x130] sm:$0xf]  ;;  %v3455_v60 = vld [vmem:[%s6118_s1 + $0x128] sm:$0xff]  ;;  %v3454_v61 = vld [vmem:[%s6118_s1 + $0x120] sm:$0xff] }
  0x50   :  { %718 = vmatprep.subr.mxu0 %v3383_v28  ;;  %991 = vmatprep.subr.mxu1 %v3419_v36  ;;  %v3453_v62 = vld [vmem:[%s6118_s1 + $0x118] sm:$0xff]  ;;  %v3452_v63 = vld [vmem:[%s6118_s1 + $0x110] sm:$0xff]  ;;  %v3451_v1 = vld [vmem:[%s6118_s1 + $0x108] sm:$0xff] }
  0x51   :  { %3335 = vmatmul.mubr.msk.f32.gmra.mxu0 %vm163_vm1, %v4514_v30  ;;  %3361 = vmatmul.mubr.msk.f32.gmra.mxu1 %vm163_vm1, %v4491_v25  ;;  %v3450_v2 = vld [vmem:[%s6118_s1 + $0x100] sm:$0xff]  ;;  %v4927_v3 = vld [vmem:[%s6117_s0 + $0xc8] sm:$0xff]  ;;  %v4938_v4 = vld [vmem:[%s6117_s0 + $0xd0] sm:$0xff] }
  0x52   :  { %331 = vmatprep.mubr.f32.mxu0 %v6133_v0  ;;  %549 = vmatprep.mubr.f32.mxu1 %v6133_v0 }
  0x53   :  { %719 = vmatpush1.msra.mxu0 %v3382_v31  ;;  %992 = vmatpush1.msra.mxu1 %v3418_v37 }
  0x54   :  { %3458 = vmatprep.subr.msk.mxu0 %vm236_vm0, %v3457_v34  ;;  %993 = vmatprep.subr.mxu1 %v3417_v39 }
  0x55   :  { %3336 = vmatmul.mubr.msk.f32.gmra.mxu0 %vm163_vm1, %v4539_v35  ;;  %3362 = vmatmul.mubr.msk.f32.gmra.mxu1 %vm163_vm1, %v4514_v30 }
  0x56   :  { %337 = vmatprep.mubr.f32.mxu0 %v6133_v0  ;;  %555 = vmatprep.mubr.f32.mxu1 %v6133_v0 }
  0x57   :  { %994 = vmatpush1.msra.mxu1 %v3416_v40  ;;  %v1594_v40 = vld [vmem:[#allocation2 + $0x78] sm:$0xff] }
  0x58   :  { %1634 = vmatprep.subr.mxu1 %v6133_v0 }
  0x59   :  { %3337 = vmatmul.mubr.msk.f32.gmra.mxu0 %vm163_vm1, %v4557_v38  ;;  %3363 = vmatmul.mubr.msk.f32.gmra.mxu1 %vm163_vm1, %v4539_v35 }
  0x5a   :  { %343 = vmatprep.mubr.f32.mxu0 %v6133_v0  ;;  %561 = vmatprep.mubr.f32.mxu1 %v6133_v0 }
  0x5d   :  { %3338 = vmatmul.mubr.msk.f32.gmra.mxu0 %vm163_vm1, %v4574_v41  ;;  %3364 = vmatmul.mubr.msk.f32.gmra.mxu1 %vm163_vm1, %v4557_v38 }
  0x5e   :  { %349 = vmatprep.mubr.f32.mxu0 %v6133_v0  ;;  %567 = vmatprep.mubr.f32.mxu1 %v6133_v0 }
  0x61   :  { %3339 = vmatmul.mubr.msk.f32.gmra.mxu0 %vm163_vm1, %v4585_v42  ;;  %3365 = vmatmul.mubr.msk.f32.gmra.mxu1 %vm163_vm1, %v4574_v41 }
  0x62   :  { %355 = vmatprep.mubr.f32.mxu0 %v6133_v0  ;;  %573 = vmatprep.mubr.f32.mxu1 %v6133_v0 }
  0x65   :  { %3340 = vmatmul.mubr.msk.f32.gmra.mxu0 %vm163_vm1, %v4597_v43  ;;  %3366 = vmatmul.mubr.msk.f32.gmra.mxu1 %vm163_vm1, %v4585_v42 }
  0x66   :  { %361 = vmatprep.mubr.f32.mxu0 %v6133_v0  ;;  %579 = vmatprep.mubr.f32.mxu1 %v6133_v0 }
  0x69   :  { %3341 = vmatmul.mubr.msk.f32.gmra.mxu0 %vm163_vm1, %v4608_v44  ;;  %3367 = vmatmul.mubr.msk.f32.gmra.mxu1 %vm163_vm1, %v4597_v43 }
  0x6a   :  { %367 = vmatprep.mubr.f32.mxu0 %v6133_v0  ;;  %585 = vmatprep.mubr.f32.mxu1 %v6133_v0 }
  0x6d   :  { %3342 = vmatmul.mubr.msk.f32.gmra.mxu0 %vm163_vm1, %v4619_v45  ;;  %3368 = vmatmul.mubr.msk.f32.gmra.mxu1 %vm163_vm1, %v4608_v44 }
  0x6e   :  { %373 = vmatprep.mubr.f32.mxu0 %v6133_v0  ;;  %591 = vmatprep.mubr.f32.mxu1 %v6133_v0 }
  0x71   :  { %3343 = vmatmul.mubr.msk.f32.gmra.mxu0 %vm163_vm1, %v4630_v46  ;;  %3369 = vmatmul.mubr.msk.f32.gmra.mxu1 %vm163_vm1, %v4619_v45 }
  0x72   :  { %379 = vmatprep.mubr.f32.mxu0 %v6133_v0  ;;  %597 = vmatprep.mubr.f32.mxu1 %v6133_v0 }
  0x75   :  { %3344 = vmatmul.mubr.msk.f32.gmra.mxu0 %vm163_vm1, %v4641_v47  ;;  %3370 = vmatmul.mubr.msk.f32.gmra.mxu1 %vm163_vm1, %v4630_v46 }
  0x76   :  { %385 = vmatprep.mubr.f32.mxu0 %v6133_v0  ;;  %603 = vmatprep.mubr.f32.mxu1 %v6133_v0 }
  0x79   :  { %3345 = vmatmul.mubr.msk.f32.gmra.mxu0 %vm163_vm1, %v4652_v48  ;;  %3371 = vmatmul.mubr.msk.f32.gmra.mxu1 %vm163_vm1, %v4641_v47 }
  0x7a   :  { %391 = vmatprep.mubr.f32.mxu0 %v6133_v0  ;;  %609 = vmatprep.mubr.f32.mxu1 %v6133_v0 }
  0x7d   :  { %3346 = vmatmul.mubr.msk.f32.gmra.mxu0 %vm163_vm1, %v4663_v49  ;;  %3372 = vmatmul.mubr.msk.f32.gmra.mxu1 %vm163_vm1, %v4652_v48 }
  0x7e   :  { %397 = vmatprep.mubr.f32.mxu0 %v6133_v0  ;;  %615 = vmatprep.mubr.f32.mxu1 %v6133_v0 }
  0x81   :  { %3347 = vmatmul.mubr.msk.f32.gmra.mxu0 %vm163_vm1, %v4674_v50  ;;  %3373 = vmatmul.mubr.msk.f32.gmra.mxu1 %vm163_vm1, %v4663_v49 }
  0x82   :  { %403 = vmatprep.mubr.f32.mxu0 %v6133_v0  ;;  %621 = vmatprep.mubr.f32.mxu1 %v6133_v0 }
  0x85   :  { %3348 = vmatmul.mubr.msk.f32.gmra.mxu0 %vm163_vm1, %v4685_v51  ;;  %3374 = vmatmul.mubr.msk.f32.gmra.mxu1 %vm163_vm1, %v4674_v50 }
  0x86   :  { %409 = vmatprep.mubr.f32.mxu0 %v6133_v0  ;;  %627 = vmatprep.mubr.f32.mxu1 %v6133_v0 }
  0x89   :  { %3349 = vmatmul.mubr.msk.f32.gmra.mxu0 %vm163_vm1, %v4696_v52  ;;  %3375 = vmatmul.mubr.msk.f32.gmra.mxu1 %vm163_vm1, %v4685_v51 }
  0x8a   :  { %415 = vmatprep.mubr.f32.mxu0 %v6133_v0  ;;  %633 = vmatprep.mubr.f32.mxu1 %v6133_v0 }
  0x8d   :  { %3350 = vmatmul.mubr.msk.f32.gmra.mxu0 %vm163_vm1, %v4707_v53  ;;  %3376 = vmatmul.mubr.msk.f32.gmra.mxu1 %vm163_vm1, %v4696_v52 }
  0x8e   :  { %421 = vmatprep.mubr.f32.mxu0 %v6133_v0  ;;  %639 = vmatprep.mubr.f32.mxu1 %v6133_v0 }
  0x91   :  { %3351 = vmatmul.mubr.msk.f32.gmra.mxu0 %vm163_vm1, %v4718_v54  ;;  %3377 = vmatmul.mubr.msk.f32.gmra.mxu1 %vm163_vm1, %v4707_v53 }
  0x92   :  { %427 = vmatprep.mubr.f32.mxu0 %v6133_v0  ;;  %645 = vmatprep.mubr.f32.mxu1 %v6133_v0 }
  0x95   :  { %3352 = vmatmul.mubr.msk.f32.gmra.mxu0 %vm163_vm1, %v4729_v55  ;;  %3378 = vmatmul.mubr.msk.f32.gmra.mxu1 %vm163_vm1, %v4718_v54 }
  0x96   :  { %433 = vmatprep.mubr.f32.mxu0 %v6133_v0  ;;  %651 = vmatprep.mubr.f32.mxu1 %v6133_v0 }
  0x99   :  { %3353 = vmatmul.mubr.msk.f32.gmra.mxu0 %vm163_vm1, %v4740_v56  ;;  %3379 = vmatmul.mubr.msk.f32.gmra.mxu1 %vm163_vm1, %v4729_v55 }
  0x9a   :  { %439 = vmatprep.mubr.f32.mxu0 %v6133_v0  ;;  %657 = vmatprep.mubr.f32.mxu1 %v6133_v0 }
  0x9d   :  { %3354 = vmatmul.mubr.msk.f32.gmra.mxu0 %vm163_vm1, %v4751_v57  ;;  %3380 = vmatmul.mubr.msk.f32.gmra.mxu1 %vm163_vm1, %v4740_v56 }
  0x9e   :  { %445 = vmatprep.mubr.f32.mxu0 %v6133_v0  ;;  %663 = vmatprep.mubr.f32.mxu1 %v6133_v0 }
  0xa1   :  { %3355 = vmatmul.mubr.msk.f32.gmra.mxu0 %vm163_vm1, %v4762_v58  ;;  %3381 = vmatmul.mubr.msk.f32.gmra.mxu1 %vm163_vm1, %v4751_v57 }
  0xa2   :  { %752 = vmatprep.mubr.f32.mxu0 %v6133_v0  ;;  %1027 = vmatprep.mubr.f32.mxu1 %v6133_v0 }
  0xa5   :  { %3392 = vmatmul.mubr.msk.f32.vlgmr.msra.gmra.mxu0 %vm163_vm1, %v4473_v22  ;;  %3426 = vmatmul.mubr.msk.f32.vlgmr.msra.gmra.mxu1 %vm163_vm1, %v4491_v25 }
  0xa6   :  { %3459 = vmatpush1.msk.msra.mxu0 %vm236_vm0, %v3456_v59  ;;  %758 = vmatprep.mubr.f32.mxu0 %v6133_v0 }
  0xa7   :  { %1033 = vmatprep.mubr.f32.mxu1 %v6133_v0  ;;  %1264 = vmatprep.subr.mxu0 %v3455_v60 }
  0xa8   :  { %1265 = vmatpush1.msra.mxu0 %v3454_v61  ;;  %1635 = vmatpush1.msra.mxu1 %v1594_v40 }
  0xa9   :  { %3393 = vmatmul.mubr.msk.f32.gmra.mxu0 %vm163_vm1, %v4491_v25  ;;  %3427 = vmatmul.mubr.msk.f32.gmra.mxu1 %vm163_vm1, %v4514_v30 }
  0xaa   :  { %764 = vmatprep.mubr.f32.mxu0 %v6133_v0  ;;  %1039 = vmatprep.mubr.f32.mxu1 %v6133_v0 }
  0xab   :  { %1266 = vmatprep.subr.mxu0 %v3453_v62  ;;  %1636 = vmatprep.subr.mxu1 %v6133_v0 }
  0xac   :  { %1267 = vmatpush1.msra.mxu0 %v3452_v63 }
  0xad   :  { %3394 = vmatmul.mubr.msk.f32.gmra.mxu0 %vm163_vm1, %v4514_v30  ;;  %3428 = vmatmul.mubr.msk.f32.gmra.mxu1 %vm163_vm1, %v4539_v35 }
  0xae   :  { %770 = vmatprep.mubr.f32.mxu0 %v6133_v0  ;;  %1045 = vmatprep.mubr.f32.mxu1 %v6133_v0 }
  0xaf   :  { %1268 = vmatprep.subr.mxu0 %v3451_v1 }
  0xb0   :  { %1269 = vmatpush1.msra.mxu0 %v3450_v2 }
  0xb1   :  { %3395 = vmatmul.mubr.msk.f32.gmra.mxu0 %vm163_vm1, %v4539_v35  ;;  %3429 = vmatmul.mubr.msk.f32.gmra.mxu1 %vm163_vm1, %v4557_v38 }
  0xb2   :  { %776 = vmatprep.mubr.f32.mxu0 %v6133_v0  ;;  %1051 = vmatprep.mubr.f32.mxu1 %v6133_v0 }
  0xb5   :  { %3396 = vmatmul.mubr.msk.f32.gmra.mxu0 %vm163_vm1, %v4557_v38  ;;  %3430 = vmatmul.mubr.msk.f32.gmra.mxu1 %vm163_vm1, %v4574_v41 }
  0xb6   :  { %782 = vmatprep.mubr.f32.mxu0 %v6133_v0  ;;  %1057 = vmatprep.mubr.f32.mxu1 %v6133_v0 }
  0xb9   :  { %3397 = vmatmul.mubr.msk.f32.gmra.mxu0 %vm163_vm1, %v4574_v41  ;;  %3431 = vmatmul.mubr.msk.f32.gmra.mxu1 %vm163_vm1, %v4585_v42 }
  0xba   :  { %788 = vmatprep.mubr.f32.mxu0 %v6133_v0  ;;  %1063 = vmatprep.mubr.f32.mxu1 %v6133_v0 }
  0xbd   :  { %3398 = vmatmul.mubr.msk.f32.gmra.mxu0 %vm163_vm1, %v4585_v42  ;;  %3432 = vmatmul.mubr.msk.f32.gmra.mxu1 %vm163_vm1, %v4597_v43 }
  0xbe   :  { %794 = vmatprep.mubr.f32.mxu0 %v6133_v0  ;;  %1069 = vmatprep.mubr.f32.mxu1 %v6133_v0 }
  0xc1   :  { %3399 = vmatmul.mubr.msk.f32.gmra.mxu0 %vm163_vm1, %v4597_v43  ;;  %3433 = vmatmul.mubr.msk.f32.gmra.mxu1 %vm163_vm1, %v4608_v44 }
  0xc2   :  { %800 = vmatprep.mubr.f32.mxu0 %v6133_v0  ;;  %1075 = vmatprep.mubr.f32.mxu1 %v6133_v0 }
  0xc5   :  { %3400 = vmatmul.mubr.msk.f32.gmra.mxu0 %vm163_vm1, %v4608_v44  ;;  %3434 = vmatmul.mubr.msk.f32.gmra.mxu1 %vm163_vm1, %v4619_v45 }
  0xc6   :  { %806 = vmatprep.mubr.f32.mxu0 %v6133_v0  ;;  %1081 = vmatprep.mubr.f32.mxu1 %v6133_v0 }
  0xc9   :  { %3401 = vmatmul.mubr.msk.f32.gmra.mxu0 %vm163_vm1, %v4619_v45  ;;  %3435 = vmatmul.mubr.msk.f32.gmra.mxu1 %vm163_vm1, %v4630_v46 }
  0xca   :  { %812 = vmatprep.mubr.f32.mxu0 %v6133_v0  ;;  %1087 = vmatprep.mubr.f32.mxu1 %v6133_v0 }
  0xcd   :  { %3402 = vmatmul.mubr.msk.f32.gmra.mxu0 %vm163_vm1, %v4630_v46  ;;  %3436 = vmatmul.mubr.msk.f32.gmra.mxu1 %vm163_vm1, %v4641_v47 }
  0xce   :  { %818 = vmatprep.mubr.f32.mxu0 %v6133_v0  ;;  %1093 = vmatprep.mubr.f32.mxu1 %v6133_v0 }
  0xd1   :  { %3403 = vmatmul.mubr.msk.f32.gmra.mxu0 %vm163_vm1, %v4641_v47  ;;  %3437 = vmatmul.mubr.msk.f32.gmra.mxu1 %vm163_vm1, %v4652_v48 }
  0xd2   :  { %824 = vmatprep.mubr.f32.mxu0 %v6133_v0  ;;  %1099 = vmatprep.mubr.f32.mxu1 %v6133_v0 }
  0xd5   :  { %3404 = vmatmul.mubr.msk.f32.gmra.mxu0 %vm163_vm1, %v4652_v48  ;;  %3438 = vmatmul.mubr.msk.f32.gmra.mxu1 %vm163_vm1, %v4663_v49 }
  0xd6   :  { %830 = vmatprep.mubr.f32.mxu0 %v6133_v0  ;;  %1105 = vmatprep.mubr.f32.mxu1 %v6133_v0 }
  0xd9   :  { %3405 = vmatmul.mubr.msk.f32.gmra.mxu0 %vm163_vm1, %v4663_v49  ;;  %3439 = vmatmul.mubr.msk.f32.gmra.mxu1 %vm163_vm1, %v4674_v50 }
  0xda   :  { %836 = vmatprep.mubr.f32.mxu0 %v6133_v0  ;;  %1111 = vmatprep.mubr.f32.mxu1 %v6133_v0 }
  0xdd   :  { %3406 = vmatmul.mubr.msk.f32.gmra.mxu0 %vm163_vm1, %v4674_v50  ;;  %3440 = vmatmul.mubr.msk.f32.gmra.mxu1 %vm163_vm1, %v4685_v51 }
  0xde   :  { %842 = vmatprep.mubr.f32.mxu0 %v6133_v0  ;;  %1117 = vmatprep.mubr.f32.mxu1 %v6133_v0 }
  0xe1   :  { %3407 = vmatmul.mubr.msk.f32.gmra.mxu0 %vm163_vm1, %v4685_v51  ;;  %3441 = vmatmul.mubr.msk.f32.gmra.mxu1 %vm163_vm1, %v4696_v52 }
  0xe2   :  { %848 = vmatprep.mubr.f32.mxu0 %v6133_v0  ;;  %1123 = vmatprep.mubr.f32.mxu1 %v6133_v0 }
  0xe5   :  { %3408 = vmatmul.mubr.msk.f32.gmra.mxu0 %vm163_vm1, %v4696_v52  ;;  %3442 = vmatmul.mubr.msk.f32.gmra.mxu1 %vm163_vm1, %v4707_v53 }
  0xe6   :  { %854 = vmatprep.mubr.f32.mxu0 %v6133_v0  ;;  %1129 = vmatprep.mubr.f32.mxu1 %v6133_v0 }
  0xe9   :  { %3409 = vmatmul.mubr.msk.f32.gmra.mxu0 %vm163_vm1, %v4707_v53  ;;  %3443 = vmatmul.mubr.msk.f32.gmra.mxu1 %vm163_vm1, %v4718_v54 }
  0xea   :  { %860 = vmatprep.mubr.f32.mxu0 %v6133_v0  ;;  %1135 = vmatprep.mubr.f32.mxu1 %v6133_v0 }
  0xed   :  { %3410 = vmatmul.mubr.msk.f32.gmra.mxu0 %vm163_vm1, %v4718_v54  ;;  %3444 = vmatmul.mubr.msk.f32.gmra.mxu1 %vm163_vm1, %v4729_v55 }
  0xee   :  { %866 = vmatprep.mubr.f32.mxu0 %v6133_v0  ;;  %1141 = vmatprep.mubr.f32.mxu1 %v6133_v0 }
  0xf1   :  { %3411 = vmatmul.mubr.msk.f32.gmra.mxu0 %vm163_vm1, %v4729_v55  ;;  %3445 = vmatmul.mubr.msk.f32.gmra.mxu1 %vm163_vm1, %v4740_v56 }
  0xf2   :  { %872 = vmatprep.mubr.f32.mxu0 %v6133_v0  ;;  %1147 = vmatprep.mubr.f32.mxu1 %v6133_v0 }
  0xf5   :  { %3412 = vmatmul.mubr.msk.f32.gmra.mxu0 %vm163_vm1, %v4740_v56  ;;  %3446 = vmatmul.mubr.msk.f32.gmra.mxu1 %vm163_vm1, %v4751_v57 }
  0xf6   :  { %878 = vmatprep.mubr.f32.mxu0 %v6133_v0  ;;  %1153 = vmatprep.mubr.f32.mxu1 %v6133_v0 }
  0xf9   :  { %3413 = vmatmul.mubr.msk.f32.gmra.mxu0 %vm163_vm1, %v4751_v57  ;;  %3447 = vmatmul.mubr.msk.f32.gmra.mxu1 %vm163_vm1, %v4762_v58 }
  0xfa   :  { %884 = vmatprep.mubr.f32.mxu0 %v6133_v0  ;;  %1159 = vmatprep.mubr.f32.mxu1 %v6133_v0 }
  0xfd   :  { %3414 = vmatmul.mubr.msk.f32.gmra.mxu0 %vm163_vm1, %v4762_v58  ;;  %3448 = vmatmul.mubr.msk.f32.gmra.mxu1 %vm163_vm1, %v4927_v3 }
  0xfe   :  { %890 = vmatprep.mubr.f32.mxu0 %v6133_v0  ;;  %1165 = vmatprep.mubr.f32.mxu1 %v6133_v0 }
 0x101   :  { %3415 = vmatmul.mubr.msk.f32.gmra.mxu0 %vm163_vm1, %v4927_v3  ;;  %3449 = vmatmul.mubr.msk.f32.gmra.mxu1 %vm163_vm1, %v4938_v4 }
 0x102   :  { %1302 = vmatprep.mubr.f32.mxu0 %v6133_v0 }
 0x105   :  { %v309_v5 = vpop.f32.mrf.mxu0  ;;  %v527_v6 = vpop.f32.mrf.mxu1  ;;  %3460 = vmatmul.mubr.msk.f32.vlgmr.msra.gmra.mxu0 %vm163_vm1, %v4514_v30 }
 0x106   :  { %v4947_v7 = vadd.f32 %v527_v6, %v309_v5  ;;  %1308 = vmatprep.mubr.f32.mxu0 %v6133_v0 }
 0x107   :  { %v4950_v8 = vpop.f32.mrf.mxu0  ;;  %v4952_v9 = vpop.f32.mrf.mxu1 }
 0x109   :  { %v315_v10 = vpop.f32.mrf.mxu0  ;;  %v533_v11 = vpop.f32.mrf.mxu1  ;;  %3461 = vmatmul.mubr.msk.f32.gmra.mxu0 %vm163_vm1, %v4539_v35 }
 0x10a   :  { %v4956_v12 = vadd.f32 %v533_v11, %v315_v10  ;;  %1314 = vmatprep.mubr.f32.mxu0 %v6133_v0  ;;  %v1592_v11 = vld [vmem:[#allocation2 + $0x68] sm:$0xff] }
 0x10b   :  { %v4959_v13 = vpop.f32.mrf.mxu0  ;;  %v4961_v14 = vpop.f32.mrf.mxu1 }
 0x10d   :  { %v321_v15 = vpop.f32.mrf.mxu0  ;;  %v539_v16 = vpop.f32.mrf.mxu1  ;;  %3462 = vmatmul.mubr.msk.f32.gmra.mxu0 %vm163_vm1, %v4557_v38 }
 0x10e   :  { %v4965_v17 = vadd.f32 %v539_v16, %v321_v15  ;;  %1320 = vmatprep.mubr.f32.mxu0 %v6133_v0 }
 0x10f   :  { %v4968_v18 = vpop.f32.mrf.mxu0  ;;  %v4970_v19 = vpop.f32.mrf.mxu1 }
 0x111   :  { %v327_v20 = vpop.f32.mrf.mxu0  ;;  %v545_v21 = vpop.f32.mrf.mxu1  ;;  %3463 = vmatmul.mubr.msk.f32.gmra.mxu0 %vm163_vm1, %v4574_v41 }
 0x112   :  { %v4974_v22 = vadd.f32 %v545_v21, %v327_v20  ;;  %1326 = vmatprep.mubr.f32.mxu0 %v6133_v0 }
 0x113   :  { %v4977_v23 = vpop.f32.mrf.mxu0  ;;  %v4979_v24 = vpop.f32.mrf.mxu1 }
 0x115   :  { %v333_v25 = vpop.f32.mrf.mxu0  ;;  %v551_v26 = vpop.f32.mrf.mxu1  ;;  %3464 = vmatmul.mubr.msk.f32.gmra.mxu0 %vm163_vm1, %v4585_v42 }
 0x116   :  { %v4983_v27 = vadd.f32 %v551_v26, %v333_v25  ;;  %1332 = vmatprep.mubr.f32.mxu0 %v6133_v0  ;;  %v1591_v25 = vld [vmem:[#allocation2 + $0x60] sm:$0xff] }
 0x117   :  { %v4986_v28 = vpop.f32.mrf.mxu0  ;;  %v4988_v29 = vpop.f32.mrf.mxu1 }
 0x118   :  { %6137 = vst [vmem:[#allocation13_spill] sm:$0xff] %v4986_v28  ;;  %6138 = vst [vmem:[#allocation14_spill] sm:$0xff] %v4988_v29 }
 0x119   :  { %v339_v30 = vpop.f32.mrf.mxu0  ;;  %v557_v31 = vpop.f32.mrf.mxu1  ;;  %3465 = vmatmul.mubr.msk.f32.gmra.mxu0 %vm163_vm1, %v4597_v43 }
 0x11a   :  { %v4992_v32 = vadd.f32 %v557_v31, %v339_v30  ;;  %1338 = vmatprep.mubr.f32.mxu0 %v6133_v0 }
 0x11b   :  { %v4995_v33 = vpop.f32.mrf.mxu0  ;;  %v4997_v34 = vpop.f32.mrf.mxu1 }
 0x11c   :  { %6139 = vst [vmem:[#allocation15_spill] sm:$0xff] %v4995_v33  ;;  %6140 = vst [vmem:[#allocation16_spill] sm:$0xff] %v4997_v34 }
 0x11d   :  { %v345_v35 = vpop.f32.mrf.mxu0  ;;  %v563_v36 = vpop.f32.mrf.mxu1  ;;  %3466 = vmatmul.mubr.msk.f32.gmra.mxu0 %vm163_vm1, %v4608_v44 }
 0x11e   :  { %v5001_v37 = vadd.f32 %v563_v36, %v345_v35  ;;  %1344 = vmatprep.mubr.f32.mxu0 %v6133_v0 }
 0x11f   :  { %v5004_v38 = vpop.f32.mrf.mxu0  ;;  %v5006_v39 = vpop.f32.mrf.mxu1 }
 0x120   :  { %6141 = vst [vmem:[#allocation17_spill] sm:$0xff] %v5004_v38  ;;  %6142 = vst [vmem:[#allocation18_spill] sm:$0xff] %v5006_v39 }
 0x121   :  { %v351_v41 = vpop.f32.mrf.mxu0  ;;  %v569_v42 = vpop.f32.mrf.mxu1  ;;  %3467 = vmatmul.mubr.msk.f32.gmra.mxu0 %vm163_vm1, %v4619_v45  ;;  %v1593_v45 = vld [vmem:[#allocation2 + $0x70] sm:$0xff] }
 0x122   :  { %v5010_v43 = vadd.f32 %v569_v42, %v351_v41  ;;  %1350 = vmatprep.mubr.f32.mxu0 %v6133_v0  ;;  %1637 = vmatpush1.msra.mxu1 %v1593_v45 }
 0x123   :  { %v5014_v44 = vpop.f32.mrf.mxu0  ;;  %v5016_v59 = vpop.f32.mrf.mxu1  ;;  %1638 = vmatprep.subr.mxu1 %v6133_v0 }
 0x124   :  { %6143 = vst [vmem:[#allocation19_spill] sm:$0xff] %v5014_v44  ;;  %6144 = vst [vmem:[#allocation20_spill] sm:$0xff] %v5016_v59  ;;  %1639 = vmatpush1.msra.mxu1 %v1592_v11 }
 0x125   :  { %v357_v60 = vpop.f32.mrf.mxu0  ;;  %v575_v61 = vpop.f32.mrf.mxu1  ;;  %3468 = vmatmul.mubr.msk.f32.gmra.mxu0 %vm163_vm1, %v4630_v46  ;;  %1640 = vmatprep.subr.mxu1 %v6133_v0 }
 0x126   :  { %v5020_v62 = vadd.f32 %v575_v61, %v357_v60  ;;  %1356 = vmatprep.mubr.f32.mxu0 %v6133_v0  ;;  %1641 = vmatpush1.msra.mxu1 %v1591_v25 }
 0x127   :  { %v5023_v63 = vpop.f32.mrf.mxu0  ;;  %v5025_v1 = vpop.f32.mrf.mxu1  ;;  %1642 = vmatprep.subr.mxu1 %v6133_v0 }
 0x129   :  { %v363_v2 = vpop.f32.mrf.mxu0  ;;  %v581_v5 = vpop.f32.mrf.mxu1  ;;  %3469 = vmatmul.mubr.msk.f32.gmra.mxu0 %vm163_vm1, %v4641_v47 }
 0x12a   :  { %v5030_v6 = vadd.f32 %v581_v5, %v363_v2  ;;  %1362 = vmatprep.mubr.f32.mxu0 %v6133_v0  ;;  %v1589_v2 = vld [vmem:[#allocation2 + $0x50] sm:$0xff] }
 0x12b   :  { %v5033_v46 = vpop.f32.mrf.mxu0  ;;  %v5035_v10 = vpop.f32.mrf.mxu1 }
 0x12d   :  { %v369_v15 = vpop.f32.mrf.mxu0  ;;  %v587_v16 = vpop.f32.mrf.mxu1  ;;  %3470 = vmatmul.mubr.msk.f32.gmra.mxu0 %vm163_vm1, %v4652_v48 }
 0x12e   :  { %v5039_v20 = vadd.f32 %v587_v16, %v369_v15  ;;  %1368 = vmatprep.mubr.f32.mxu0 %v6133_v0  ;;  %v1588_v15 = vld [vmem:[#allocation2 + $0x48] sm:$0xff] }
 0x12f   :  { %v5043_v47 = vpop.f32.mrf.mxu0  ;;  %v5045_v21 = vpop.f32.mrf.mxu1 }
 0x131   :  { %v375_v26 = vpop.f32.mrf.mxu0  ;;  %v593_v30 = vpop.f32.mrf.mxu1  ;;  %3471 = vmatmul.mubr.msk.f32.gmra.mxu0 %vm163_vm1, %v4663_v49  ;;  %v1590_v49 = vld [vmem:[#allocation2 + $0x58] sm:$0xff] }
 0x132   :  { %v5049_v31 = vadd.f32 %v593_v30, %v375_v26  ;;  %1374 = vmatprep.mubr.f32.mxu0 %v6133_v0  ;;  %1643 = vmatpush1.msra.mxu1 %v1590_v49 }
 0x133   :  { %v5053_v48 = vpop.f32.mrf.mxu0  ;;  %v5055_v35 = vpop.f32.mrf.mxu1  ;;  %1644 = vmatprep.subr.mxu1 %v6133_v0 }
 0x134   :  { %1645 = vmatpush1.msra.mxu1 %v1589_v2 }
 0x135   :  { %v381_v36 = vpop.f32.mrf.mxu0  ;;  %v599_v40 = vpop.f32.mrf.mxu1  ;;  %3472 = vmatmul.mubr.msk.f32.gmra.mxu0 %vm163_vm1, %v4674_v50  ;;  %1646 = vmatprep.subr.mxu1 %v6133_v0 }
 0x136   :  { %v5059_v41 = vadd.f32 %v599_v40, %v381_v36  ;;  %1380 = vmatprep.mubr.f32.mxu0 %v6133_v0  ;;  %1647 = vmatpush1.msra.mxu1 %v1588_v15  ;;  %v1586_v40 = vld [vmem:[#allocation2 + $0x38] sm:$0xff] }
 0x137   :  { %v5062_v42 = vpop.f32.mrf.mxu0  ;;  %v5064_v60 = vpop.f32.mrf.mxu1  ;;  %1648 = vmatprep.subr.mxu1 %v6133_v0 }
 0x139   :  { %v387_v61 = vpop.f32.mrf.mxu0  ;;  %v605_v45 = vpop.f32.mrf.mxu1  ;;  %3473 = vmatmul.mubr.msk.f32.gmra.mxu0 %vm163_vm1, %v4685_v51  ;;  %v1587_v51 = vld [vmem:[#allocation2 + $0x40] sm:$0xff] }
 0x13a   :  { %v5069_v5 = vadd.f32 %v605_v45, %v387_v61  ;;  %1386 = vmatprep.mubr.f32.mxu0 %v6133_v0  ;;  %1649 = vmatpush1.msra.mxu1 %v1587_v51 }
 0x13b   :  { %v5072_v50 = vpop.f32.mrf.mxu0  ;;  %v5074_v11 = vpop.f32.mrf.mxu1  ;;  %1650 = vmatprep.subr.mxu1 %v6133_v0 }
 0x13c   :  { %1651 = vmatpush1.msra.mxu1 %v1586_v40 }
 0x13d   :  { %v393_v16 = vpop.f32.mrf.mxu0  ;;  %v611_v25 = vpop.f32.mrf.mxu1  ;;  %3474 = vmatmul.mubr.msk.f32.gmra.mxu0 %vm163_vm1, %v4696_v52  ;;  %1652 = vmatprep.subr.mxu1 %v6133_v0  ;;  %v1585_v52 = vld [vmem:[#allocation2 + $0x30] sm:$0xff] }
 0x13e   :  { %v5080_v26 = vadd.f32 %v611_v25, %v393_v16  ;;  %1392 = vmatprep.mubr.f32.mxu0 %v6133_v0  ;;  %1653 = vmatpush1.msra.mxu1 %v1585_v52  ;;  %v1584_v16 = vld [vmem:[#allocation2 + $0x28] sm:$0xff]  ;;  %v1582_v52 = vld [vmem:[#allocation2 + $0x18] sm:$0xff] }
 0x13f   :  { %v5083_v30 = vpop.f32.mrf.mxu0  ;;  %v5085_v36 = vpop.f32.mrf.mxu1  ;;  %1654 = vmatprep.subr.mxu1 %v6133_v0 }
 0x140   :  { %1655 = vmatpush1.msra.mxu1 %v1584_v16 }
 0x141   :  { %v399_v49 = vpop.f32.mrf.mxu0  ;;  %v617_v61 = vpop.f32.mrf.mxu1  ;;  %3475 = vmatmul.mubr.msk.f32.gmra.mxu0 %vm163_vm1, %v4707_v53  ;;  %1656 = vmatprep.subr.mxu1 %v6133_v0  ;;  %v1583_v53 = vld [vmem:[#allocation2 + $0x20] sm:$0xff] }
 0x142   :  { %v5091_v45 = vadd.f32 %v617_v61, %v399_v49  ;;  %1398 = vmatprep.mubr.f32.mxu0 %v6133_v0  ;;  %1657 = vmatpush1.msra.mxu1 %v1583_v53 }
 0x143   :  { %v5094_v2 = vpop.f32.mrf.mxu0  ;;  %v5096_v15 = vpop.f32.mrf.mxu1  ;;  %1658 = vmatprep.subr.mxu1 %v6133_v0 }
 0x144   :  { %1659 = vmatpush1.msra.mxu1 %v1582_v52  ;;  %v1580_v52 = vld [vmem:[#allocation2 + $0x8] sm:$0xff] }
 0x145   :  { %v405_v25 = vpop.f32.mrf.mxu0  ;;  %v623_v51 = vpop.f32.mrf.mxu1  ;;  %3476 = vmatmul.mubr.msk.f32.gmra.mxu0 %vm163_vm1, %v4718_v54  ;;  %1660 = vmatprep.subr.mxu1 %v6133_v0  ;;  %v1581_v54 = vld [vmem:[#allocation2 + $0x10] sm:$0xff] }
 0x146   :  { %v5102_v40 = vadd.f32 %v623_v51, %v405_v25  ;;  %1404 = vmatprep.mubr.f32.mxu0 %v6133_v0  ;;  %1661 = vmatpush1.msra.mxu1 %v1581_v54 }
 0x147   :  { %v5105_v49 = vpop.f32.mrf.mxu0  ;;  %v5107_v61 = vpop.f32.mrf.mxu1  ;;  %1662 = vmatprep.subr.mxu1 %v6133_v0 }
 0x148   :  { %6145 = vst [vmem:[#allocation21_spill] sm:$0xff] %v5105_v49  ;;  %6146 = vst [vmem:[#allocation22_spill] sm:$0xff] %v5107_v61  ;;  %1663 = vmatpush1.msra.mxu1 %v1580_v52  ;;  %v1596_v52 = vld [vmem:[#allocation2 + $0x88] sm:$0xff] }
 0x149   :  { %v411_v16 = vpop.f32.mrf.mxu0  ;;  %v629_v59 = vpop.f32.mrf.mxu1  ;;  %3477 = vmatmul.mubr.msk.f32.gmra.mxu0 %vm163_vm1, %v4729_v55  ;;  %1664 = vmatprep.subr.mxu1 %v6133_v0  ;;  %v1579_v55 = vld [vmem:[#allocation2] sm:$0xff] }
 0x14a   :  { %v5113_v25 = vadd.f32 %v629_v59, %v411_v16  ;;  %1410 = vmatprep.mubr.f32.mxu0 %v6133_v0  ;;  %1665 = vmatpush1.msra.mxu1 %v1579_v55 }
 0x14b   :  { %v5116_v51 = vpop.f32.mrf.mxu0  ;;  %v5118_v53 = vpop.f32.mrf.mxu1  ;;  %1694 = vmatprep.subr.mxu1 %v6133_v0 }
 0x14c   :  { %6147 = vst [vmem:[#allocation23_spill] sm:$0xff] %v5116_v51  ;;  %6148 = vst [vmem:[#allocation24_spill] sm:$0xff] %v5118_v53  ;;  %1695 = vmatpush2.msra.mxu1 %v1596_v52 }
 0x14d   :  { %v417_v61 = vpop.f32.mrf.mxu0  ;;  %v635_v49 = vpop.f32.mrf.mxu1  ;;  %3478 = vmatmul.mubr.msk.f32.gmra.mxu0 %vm163_vm1, %v4740_v56  ;;  %1696 = vmatprep.subr.mxu1 %v6133_v0  ;;  %v1595_v56 = vld [vmem:[#allocation2 + $0x80] sm:$0xff] }
 0x14e   :  { %v5124_v59 = vadd.f32 %v635_v49, %v417_v61  ;;  %1416 = vmatprep.mubr.f32.mxu0 %v6133_v0  ;;  %1697 = vmatpush2.msra.mxu1 %v1595_v56 }
 0x14f   :  { %v5127_v16 = vpop.f32.mrf.mxu0  ;;  %v5129_v54 = vpop.f32.mrf.mxu1  ;;  %1777 = vmatprep.subr.mxu1 %v6133_v0 }
 0x150   :  { %6149 = vst [vmem:[#allocation25_spill] sm:$0xff] %v5127_v16  ;;  %6150 = vst [vmem:[#allocation26_spill] sm:$0xff] %v5129_v54 }
 0x151   :  { %v423_v53 = vpop.f32.mrf.mxu0  ;;  %v641_v51 = vpop.f32.mrf.mxu1  ;;  %3479 = vmatmul.mubr.msk.f32.gmra.mxu0 %vm163_vm1, %v4751_v57 }
 0x152   :  { %v5135_v49 = vadd.f32 %v641_v51, %v423_v53  ;;  %1422 = vmatprep.mubr.f32.mxu0 %v6133_v0 }
 0x153   :  { %v5138_v61 = vpop.f32.mrf.mxu0  ;;  %v5140_v55 = vpop.f32.mrf.mxu1 }
 0x154   :  { %6151 = vst [vmem:[#allocation27_spill] sm:$0xff] %v5138_v61  ;;  %6152 = vst [vmem:[#allocation28_spill] sm:$0xff] %v5140_v55 }
 0x155   :  { %v429_v52 = vpop.f32.mrf.mxu0  ;;  %v647_v54 = vpop.f32.mrf.mxu1  ;;  %3480 = vmatmul.mubr.msk.f32.gmra.mxu0 %vm163_vm1, %v4762_v58 }
 0x156   :  { %v5145_v57 = vadd.f32 %v647_v54, %v429_v52  ;;  %1428 = vmatprep.mubr.f32.mxu0 %v6133_v0 }
 0x157   :  { %v5148_v51 = vpop.f32.mrf.mxu0  ;;  %v5150_v53 = vpop.f32.mrf.mxu1 }
 0x158   :  { %6153 = vst [vmem:[#allocation29_spill] sm:$0xff] %v5148_v51  ;;  %6154 = vst [vmem:[#allocation30_spill] sm:$0xff] %v5150_v53 }
 0x159   :  { %v435_v56 = vpop.f32.mrf.mxu0  ;;  %v653_v16 = vpop.f32.mrf.mxu1  ;;  %3481 = vmatmul.mubr.msk.f32.gmra.mxu0 %vm163_vm1, %v4927_v3  ;;  %v145_v3 = vld [vmem:[%s6117_s0 + $0xd8] sm:$0xff] }
 0x15a   :  { %v5154_v55 = vadd.f32 %v653_v16, %v435_v56  ;;  %1434 = vmatprep.mubr.f32.mxu0 %v6133_v0 }
 0x15b   :  { %v5157_v61 = vpop.f32.mrf.mxu0  ;;  %v5159_v58 = vpop.f32.mrf.mxu1 }
 0x15c   :  { %6155 = vst [vmem:[#allocation31_spill] sm:$0xff] %v5157_v61  ;;  %6156 = vst [vmem:[#allocation32_spill] sm:$0xff] %v5159_v58 }
 0x15d   :  { %v441_v54 = vpop.f32.mrf.mxu0  ;;  %v659_v52 = vpop.f32.mrf.mxu1  ;;  %3482 = vmatmul.mubr.msk.f32.gmra.mxu0 %vm163_vm1, %v4938_v4 }
 0x15e   :  { %v5163_v51 = vadd.f32 %v659_v52, %v441_v54  ;;  %1440 = vmatprep.mubr.f32.mxu0 %v6133_v0 }
 0x15f   :  { %v5169_v16 = vpop.f32.mrf.mxu0  ;;  %v5171_v56 = vpop.f32.mrf.mxu1 }
 0x160   :  { %6157 = vst [vmem:[#allocation33_spill] sm:$0xff] %v5169_v16  ;;  %6158 = vst [vmem:[#allocation34_spill] sm:$0xff] %v5171_v56 }
 0x161   :  { %v447_v61 = vpop.f32.mrf.mxu0  ;;  %v665_v53 = vpop.f32.mrf.mxu1  ;;  %3483 = vmatmul.mubr.msk.f32.gmra.mxu0 %vm163_vm1, %v145_v3 }
 0x162   :  { %v5174_v58 = vadd.f32 %v665_v53, %v447_v61 }
 0x163   :  { %v5176_v44 = vpop.f32.mrf.mxu0  ;;  %v5178_v4 = vpop.f32.mrf.mxu1 }
 0x164   :  { %6159 = vst [vmem:[#allocation35_spill] sm:$0xff] %v5176_v44  ;;  %6160 = vst [vmem:[#allocation36_spill] sm:$0xff] %v5178_v4 }
 0x165   :  { %v754_v54 = vpop.f32.mrf.mxu0  ;;  %v5180_v52 = vpop.f32.mrf.mxu1 }
 0x166   :  { %v5183_v0 = vadd.f32 %v754_v54, %v4947_v7 }
 0x167   :  { %v5185_v39 = vpop.f32.mrf.mxu0  ;;  %v5187_v16 = vpop.f32.mrf.mxu1 }
 0x169   :  { %v760_v56 = vpop.f32.mrf.mxu0  ;;  %v5194_v53 = vpop.f32.mrf.mxu1 }
 0x16a   :  { %v5190_v38 = vadd.f32 %v760_v56, %v4956_v12 }
 0x16b   :  { %v5192_v61 = vpop.f32.mrf.mxu0  ;;  %v5199_v44 = vpop.f32.mrf.mxu1 }
 0x16d   :  { %v766_v3 = vpop.f32.mrf.mxu0  ;;  %v5206_v33 = vpop.f32.mrf.mxu1 }
 0x16e   :  { %v5197_v4 = vadd.f32 %v766_v3, %v4965_v17 }
 0x16f   :  { %v5201_v7 = vpop.f32.mrf.mxu0  ;;  %v5213_v28 = vpop.f32.mrf.mxu1 }
 0x170   :  { %6161 = vst [vmem:[#allocation37_spill] sm:$0xff] %v5197_v4  ;;  %6162 = vst [vmem:[#allocation38_spill] sm:$0xff] %v5201_v7 }
 0x171   :  { %v772_v54 = vpop.f32.mrf.mxu0  ;;  %v5220_v7 = vpop.f32.mrf.mxu1 }
 0x172   :  { %v5204_v34 = vadd.f32 %v772_v54, %v4974_v22 }
 0x173   :  { %v5208_v12 = vpop.f32.mrf.mxu0 }
 0x174   :  { %6163 = vst [vmem:[#allocation39_spill] sm:$0xff] %v5204_v34  ;;  %6164 = vst [vmem:[#allocation40_spill] sm:$0xff] %v5208_v12  ;;  %v5227_v12 = vpop.f32.mrf.mxu1 }
 0x175   :  { %v778_v56 = vpop.f32.mrf.mxu0 }
 0x176   :  { %v5211_v29 = vadd.f32 %v778_v56, %v4983_v27 }
 0x177   :  { %v5215_v17 = vpop.f32.mrf.mxu0 }
 0x178   :  { %6165 = vst [vmem:[#allocation41_spill] sm:$0xff] %v5211_v29  ;;  %6166 = vst [vmem:[#allocation42_spill] sm:$0xff] %v5215_v17  ;;  %v5234_v17 = vpop.f32.mrf.mxu1 }
 0x179   :  { %v784_v3 = vpop.f32.mrf.mxu0  ;;  %6172 = vst [vmem:[#allocation48_spill] sm:$0xff] %v5234_v17 }
 0x17a   :  { %v5218_v4 = vadd.f32 %v784_v3, %v4992_v32 }
 0x17b   :  { %v5222_v22 = vpop.f32.mrf.mxu0 }
 0x17c   :  { %6167 = vst [vmem:[#allocation43_spill] sm:$0xff] %v5218_v4  ;;  %6168 = vst [vmem:[#allocation44_spill] sm:$0xff] %v5222_v22  ;;  %v578_v4 = vadd.f32 %v5025_v1, %v5023_v63 }
 0x17d   :  { %v790_v54 = vpop.f32.mrf.mxu0 }
 0x17e   :  { %v5225_v34 = vadd.f32 %v790_v54, %v5001_v37  ;;  %v5243_v37 = vpop.f32.mrf.mxu1 }
 0x17f   :  { %v5229_v27 = vpop.f32.mrf.mxu0 }
 0x180   :  { %6169 = vst [vmem:[#allocation45_spill] sm:$0xff] %v5225_v34  ;;  %6170 = vst [vmem:[#allocation46_spill] sm:$0xff] %v5229_v27 }
 0x181   :  { %v796_v56 = vpop.f32.mrf.mxu0 }
 0x182   :  { %v5232_v29 = vadd.f32 %v796_v56, %v5010_v43  ;;  %v584_v43 = vadd.f32 %v5035_v10, %v5033_v46 }
 0x183   :  { %v5236_v32 = vpop.f32.mrf.mxu0 }
 0x184   :  { %6171 = vst [vmem:[#allocation47_spill] sm:$0xff] %v5232_v29  ;;  %6173 = vst [vmem:[#allocation49_spill] sm:$0xff] %v5236_v32  ;;  %v5252_v29 = vpop.f32.mrf.mxu1 }
 0x185   :  { %v802_v3 = vpop.f32.mrf.mxu0 }
 0x186   :  { %v5241_v22 = vadd.f32 %v802_v3, %v5020_v62  ;;  %v590_v62 = vadd.f32 %v5045_v21, %v5043_v47 }
 0x187   :  { %v804_v54 = vpop.f32.mrf.mxu0 }
 0x188   :  { %v5245_v34 = vadd.f32 %v804_v54, %v578_v4  ;;  %v5261_v4 = vpop.f32.mrf.mxu1 }
 0x189   :  { %v808_v27 = vpop.f32.mrf.mxu0 }
 0x18a   :  { %v5250_v56 = vadd.f32 %v808_v27, %v5030_v6  ;;  %v596_v6 = vadd.f32 %v5055_v35, %v5053_v48  ;;  %v5270_v27 = vpop.f32.mrf.mxu1 }
 0x18b   :  { %v810_v32 = vpop.f32.mrf.mxu0 }
 0x18c   :  { %v5254_v17 = vadd.f32 %v810_v32, %v584_v43 }
 0x18d   :  { %v814_v63 = vpop.f32.mrf.mxu0 }
 0x18e   :  { %v5259_v1 = vadd.f32 %v814_v63, %v5039_v20  ;;  %v602_v20 = vadd.f32 %v5064_v60, %v5062_v42  ;;  %v5279_v63 = vpop.f32.mrf.mxu1 }
 0x18f   :  { %v816_v3 = vpop.f32.mrf.mxu0 }
 0x190   :  { %v5263_v54 = vadd.f32 %v816_v3, %v590_v62 }
 0x191   :  { %v820_v46 = vpop.f32.mrf.mxu0 }
 0x192   :  { %v5268_v10 = vadd.f32 %v820_v46, %v5049_v31  ;;  %v608_v31 = vadd.f32 %v5074_v11, %v5072_v50  ;;  %v5288_v46 = vpop.f32.mrf.mxu1 }
 0x193   :  { %v822_v32 = vpop.f32.mrf.mxu0 }
 0x194   :  { %v5272_v43 = vadd.f32 %v822_v32, %v596_v6 }
 0x195   :  { %v826_v47 = vpop.f32.mrf.mxu0 }
 0x196   :  { %v5277_v21 = vadd.f32 %v826_v47, %v5059_v41  ;;  %v614_v41 = vadd.f32 %v5085_v36, %v5083_v30  ;;  %v5297_v47 = vpop.f32.mrf.mxu1 }
 0x197   :  { %v828_v62 = vpop.f32.mrf.mxu0 }
 0x198   :  { %v5281_v3 = vadd.f32 %v828_v62, %v602_v20 }
 0x199   :  { %v832_v48 = vpop.f32.mrf.mxu0 }
 0x19a   :  { %v5286_v35 = vadd.f32 %v832_v48, %v5069_v5  ;;  %v620_v5 = vadd.f32 %v5096_v15, %v5094_v2  ;;  %v5306_v48 = vpop.f32.mrf.mxu1 }
 0x19b   :  { %v834_v6 = vpop.f32.mrf.mxu0 }
 0x19c   :  { %v5290_v32 = vadd.f32 %v834_v6, %v608_v31  ;;  %v5313_v36 = vpop.f32.mrf.mxu1 }
 0x19d   :  { %v838_v42 = vpop.f32.mrf.mxu0 }
 0x19e   :  { %v5295_v60 = vadd.f32 %v838_v42, %v5080_v26  ;;  %v5320_v2 = vpop.f32.mrf.mxu1 }
 0x19f   :  { %v840_v20 = vpop.f32.mrf.mxu0 }
 0x1a0   :  { %v5299_v62 = vadd.f32 %v840_v20, %v614_v41 }
 0x1a1   :  { %v844_v50 = vpop.f32.mrf.mxu0 }
 0x1a2   :  { %v5304_v11 = vadd.f32 %v844_v50, %v5091_v45 }
 0x1a3   :  { %v846_v31 = vpop.f32.mrf.mxu0 }
 0x1a4   :  { %v5308_v6 = vadd.f32 %v846_v31, %v620_v5  ;;  %v5327_v5 = vpop.f32.mrf.mxu1 }
 0x1a5   :  { %v850_v30 = vpop.f32.mrf.mxu0 }
 0x1a6   :  { %v5311_v26 = vadd.f32 %v850_v30, %v5102_v40 }
 0x1a7   :  { %v5315_v42 = vpop.f32.mrf.mxu0 }
 0x1a8   :  { %6174 = vst [vmem:[#allocation50_spill] sm:$0xff] %v5311_v26  ;;  %6175 = vst [vmem:[#allocation51_spill] sm:$0xff] %v5315_v42  ;;  %v5334_v26 = vpop.f32.mrf.mxu1 }
 0x1a9   :  { %v856_v41 = vpop.f32.mrf.mxu0 }
 0x1aa   :  { %v5318_v20 = vadd.f32 %v856_v41, %v5113_v25 }
 0x1ab   :  { %v5322_v45 = vpop.f32.mrf.mxu0 }
 0x1ac   :  { %6176 = vst [vmem:[#allocation52_spill] sm:$0xff] %v5318_v20  ;;  %6177 = vst [vmem:[#allocation53_spill] sm:$0xff] %v5322_v45  ;;  %v5341_v45 = vpop.f32.mrf.mxu1 }
 0x1ad   :  { %v862_v15 = vpop.f32.mrf.mxu0 }
 0x1ae   :  { %v5325_v50 = vadd.f32 %v862_v15, %v5124_v59 }
 0x1af   :  { %v5329_v40 = vpop.f32.mrf.mxu0 }
 0x1b0   :  { %6178 = vst [vmem:[#allocation54_spill] sm:$0xff] %v5325_v50  ;;  %6179 = vst [vmem:[#allocation55_spill] sm:$0xff] %v5329_v40  ;;  %v5348_v40 = vpop.f32.mrf.mxu1 }
 0x1b1   :  { %v868_v31 = vpop.f32.mrf.mxu0 }
 0x1b2   :  { %v5332_v30 = vadd.f32 %v868_v31, %v5135_v49  ;;  %v6135_v31 = vlaneseq  ;;  %v5355_v42 = vpop.f32.mrf.mxu1 }
 0x1b3   :  { %v5336_v25 = vpop.f32.mrf.mxu0 }
 0x1b4   :  { %6180 = vst [vmem:[#allocation56_spill] sm:$0xff] %v5332_v30  ;;  %6181 = vst [vmem:[#allocation57_spill] sm:$0xff] %v5336_v25 }
 0x1b5   :  { %v874_v41 = vpop.f32.mrf.mxu0 }
 0x1b6   :  { %v5339_v20 = vadd.f32 %v874_v41, %v5145_v57  ;;  %v1498_v41 = vshrl.u32 %v6135_v31, 7  ;;  %v1495_v31 = vld [vmem:[%s6119_s2] sm:$0x3] }
 0x1b7   :  { %v5343_v59 = vpop.f32.mrf.mxu0 }
 0x1b8   :  { %6182 = vst [vmem:[#allocation58_spill] sm:$0xff] %v5339_v20  ;;  %6183 = vst [vmem:[#allocation59_spill] sm:$0xff] %v5343_v59 }
 0x1b9   :  { %v880_v15 = vpop.f32.mrf.mxu0 }
 0x1ba   :  { %v5346_v50 = vadd.f32 %v880_v15, %v5154_v55  ;;  %v530_v55 = vadd.f32 %v4952_v9, %v4950_v8  ;;  %v1172_v8 = vadd.f32 %v5180_v52, %v5183_v0 }
 0x1bb   :  { %v5350_v49 = vpop.f32.mrf.mxu0 }
 0x1bc   :  { %6184 = vst [vmem:[#allocation60_spill] sm:$0xff] %v5346_v50  ;;  %6185 = vst [vmem:[#allocation61_spill] sm:$0xff] %v5350_v49  ;;  %v5365_v50 = vpop.f32.mrf.mxu1 }
 0x1bd   :  { %v886_v30 = vpop.f32.mrf.mxu0 }
 0x1be   :  { %v5353_v25 = vadd.f32 %v886_v30, %v5163_v51  ;;  %v536_v51 = vadd.f32 %v4961_v14, %v4959_v13  ;;  %v898_v30 = vadd.f32 %v5185_v39, %v530_v55  ;;  %v1174_v13 = vadd.f32 %v5194_v53, %v5190_v38  ;;  %v6190_v38 = vld [vmem:[#allocation38_spill] sm:$0xff] }
 0x1bf   :  { %v5357_v57 = vpop.f32.mrf.mxu0  ;;  %v542_v55 = vadd.f32 %v4970_v19, %v4968_v18  ;;  %v6191_v19 = vld [vmem:[#allocation37_spill] sm:$0xff] }
 0x1c0   :  { %6186 = vst [vmem:[#allocation62_spill] sm:$0xff] %v5353_v25  ;;  %6187 = vst [vmem:[#allocation63_spill] sm:$0xff] %v5357_v57  ;;  %v1499_v25 = vsub.s32 0, %v1498_v41  ;;  %v900_v9 = vadd.f32 %v5192_v61, %v536_v51  ;;  %v548_v51 = vadd.f32 %v4979_v24, %v4977_v23 }
 0x1c1   :  { %v892_v20 = vpop.f32.mrf.mxu0  ;;  %v902_v53 = vadd.f32 %v6190_v38, %v542_v55 }
 0x1c2   :  { %v5363_v15 = vadd.f32 %v892_v20, %v5174_v58  ;;  %v1503_v58 = vsub.s32 1, %v1498_v41  ;;  %v5378_v20 = vpop.f32.mrf.mxu1  ;;  %v5383_v39 = vrot.slane %v1495_v31, %v1499_v25  ;;  %v1175_v0 = vadd.f32 %v5199_v44, %v900_v9 }
 0x1c3   :  { %v5367_v49 = vpop.f32.mrf.mxu0  ;;  %v1176_v44 = vadd.f32 %v5206_v33, %v6191_v19 }
 0x1c4   :  { %6188 = vst [vmem:[#allocation64_spill] sm:$0xff] %v5363_v15  ;;  %6189 = vst [vmem:[#allocation65_spill] sm:$0xff] %v5367_v49  ;;  %v1173_v49 = vadd.f32 %v5187_v16, %v898_v30  ;;  %v5388_v61 = vrot.slane %v1495_v31, %v1503_v58  ;;  %v5392_v16 = vpop.f32.mrf.mxu1  ;;  %v6192_v31 = vld [vmem:[#allocation40_spill] sm:$0xff]  ;;  %v1177_v58 = vadd.f32 %v5213_v28, %v902_v53 }
 0x1c5   :  { %v1304_v57 = vpop.f32.mrf.mxu0  ;;  %v6198_v28 = vld [vmem:[#allocation16_spill] sm:$0xff] }
 0x1c6   :  { %v1447_v14 = vadd.f32 %v1304_v57, %v1172_v8  ;;  %v5404_v24 = vpop.f32.mrf.mxu1 }
 0x1c7   :  { %v1306_v15 = vpop.f32.mrf.mxu0 }
 0x1c8   :  { %v1448_v52 = vadd.f32 %v1306_v15, %v1173_v49  ;;  %v1507_v25 = vadd.f32 %v5383_v39, %v1447_v14  ;;  %v904_v15 = vadd.f32 %v6192_v31, %v548_v51  ;;  %v6195_v51 = vld [vmem:[#allocation13_spill] sm:$0xff]  ;;  %v5418_v19 = vpop.f32.mrf.mxu1 }
 0x1c9   :  { %v1310_v59 = vpop.f32.mrf.mxu0 }
 0x1ca   :  { %v1449_v41 = vadd.f32 %v1310_v59, %v1174_v13  ;;  %v1508_v59 = vadd.f32 %v5388_v61, %v1448_v52  ;;  %v6194_v13 = vld [vmem:[#allocation39_spill] sm:$0xff]  ;;  %v6196_v52 = vld [vmem:[#allocation14_spill] sm:$0xff]  ;;  %v1179_v38 = vadd.f32 %v5227_v12, %v904_v15 }
 0x1cb   :  { %v1312_v30 = vpop.f32.mrf.mxu0  ;;  %v1178_v14 = vadd.f32 %v5220_v7, %v6194_v13 }
 0x1cc   :  { %v1509_v57 = vadd.f32 %v5383_v39, %v1449_v41  ;;  %v1450_v18 = vadd.f32 %v1312_v30, %v1175_v0  ;;  %v1774_v41 = vld [vmem:[#allocation4 + $0x78] sm:$0xff]  ;;  %v554_v30 = vadd.f32 %v6196_v52, %v6195_v51  ;;  %v6203_v51 = vld [vmem:[#allocation44_spill] sm:$0xff] }
 0x1cd   :  { %v1316_v49 = vpop.f32.mrf.mxu0 }
 0x1ce   :  { %v5401_v8 = vmax.f32 %v1507_v25, %v1509_v57  ;;  %v1510_v23 = vadd.f32 %v5388_v61, %v1450_v18  ;;  %v1451_v33 = vadd.f32 %v1316_v49, %v1176_v44  ;;  %v6197_v18 = vld [vmem:[#allocation15_spill] sm:$0xff]  ;;  %v1773_v44 = vld [vmem:[#allocation4 + $0x70] sm:$0xff]  ;;  %v6199_v49 = vld [vmem:[#allocation42_spill] sm:$0xff] }
 0x1cf   :  { %v1318_v9 = vpop.f32.mrf.mxu0  ;;  %v560_v53 = vadd.f32 %v6198_v28, %v6197_v18  ;;  %v906_v31 = vadd.f32 %v6199_v49, %v554_v30 }
 0x1d0   :  { %6193 = vst [vmem:[#allocation38_spill] sm:$0xff] %v5401_v8  ;;  %v5409_v55 = vmax.f32 %v1508_v59, %v1510_v23  ;;  %v1452_v25 = vadd.f32 %v1318_v9, %v1177_v58  ;;  %v1511_v59 = vadd.f32 %v5383_v39, %v1451_v33  ;;  %v6200_v23 = vld [vmem:[#allocation41_spill] sm:$0xff]  ;;  %v6201_v9 = vld [vmem:[#allocation48_spill] sm:$0xff]  ;;  %v5432_v33 = vpop.f32.mrf.mxu1 }
 0x1d1   :  { %v1322_v0 = vpop.f32.mrf.mxu0  ;;  %v1180_v58 = vadd.f32 %v6201_v9, %v6200_v23  ;;  %v908_v52 = vadd.f32 %v6203_v51, %v560_v53 }
 0x1d2   :  { %v1453_v57 = vadd.f32 %v1322_v0, %v1178_v14  ;;  %3484 = vmatprep.mubr.msk.f32.mxu1 %vm1597_vm2, %v5409_v55  ;;  %v6202_v14 = vmov 0.0   ;;  %v1772_v0 = vld [vmem:[#allocation4 + $0x68] sm:$0xff]  ;;  %v1512_v18 = vadd.f32 %v5388_v61, %v1452_v25  ;;  %v6205_v25 = vld [vmem:[#allocation17_spill] sm:$0xff] }
 0x1d3   :  { %v1324_v7 = vpop.f32.mrf.mxu0  ;;  %1699 = vmatmul.mubr.f32.vlgmr.msra.gmra.mxu1 %v5401_v8  ;;  %v1183_v9 = vadd.f32 %v5261_v4, %v908_v52 }
 0x1d4   :  { %v1513_v12 = vadd.f32 %v5383_v39, %v1453_v57  ;;  %v1454_v15 = vadd.f32 %v1324_v7, %v1179_v38  ;;  %1778 = vmatpush1.msra.mxu1 %v1774_v41  ;;  %v1771_v41 = vld [vmem:[#allocation4 + $0x60] sm:$0xff]  ;;  %v1181_v57 = vadd.f32 %v5243_v37, %v906_v31  ;;  %v6208_v37 = vld [vmem:[#allocation20_spill] sm:$0xff] }
 0x1d5   :  { %v1328_v13 = vpop.f32.mrf.mxu0  ;;  %1779 = vmatprep.subr.mxu1 %v6202_v14  ;;  %v6204_v7 = vld [vmem:[#allocation43_spill] sm:$0xff] }
 0x1d6   :  { %v1514_v28 = vadd.f32 %v5388_v61, %v1454_v15  ;;  %v5430_v30 = vmax.f32 %v1511_v59, %v1513_v12  ;;  %1780 = vmatpush1.msra.mxu1 %v1773_v44  ;;  %v1182_v49 = vadd.f32 %v5252_v29, %v6204_v7  ;;  %v1455_v53 = vadd.f32 %v1328_v13, %v1180_v58  ;;  %v6206_v15 = vld [vmem:[#allocation18_spill] sm:$0xff]  ;;  %v6207_v29 = vld [vmem:[#allocation19_spill] sm:$0xff]  ;;  %v5448_v58 = vpop.f32.mrf.mxu1 }
 0x1d7   :  { %v1330_v38 = vpop.f32.mrf.mxu0  ;;  %1781 = vmatprep.subr.mxu1 %v6202_v14  ;;  %v566_v59 = vadd.f32 %v6206_v15, %v6205_v25  ;;  %v1770_v44 = vld [vmem:[#allocation4 + $0x58] sm:$0xff]  ;;  %v572_v31 = vadd.f32 %v6208_v37, %v6207_v29  ;;  %v6211_v25 = vld [vmem:[#allocation49_spill] sm:$0xff] }
 0x1d8   :  { %v5438_v23 = vmax.f32 %v1512_v18, %v1514_v28  ;;  %1782 = vmatpush1.msra.mxu1 %v1772_v0  ;;  %v1456_v51 = vadd.f32 %v1330_v38, %v1181_v57  ;;  %v1769_v0 = vld [vmem:[#allocation4 + $0x50] sm:$0xff]  ;;  %v6209_v18 = vld [vmem:[#allocation46_spill] sm:$0xff]  ;;  %v1515_v4 = vadd.f32 %v5383_v39, %v1455_v53  ;;  %v5463_v53 = vpop.f32.mrf.mxu1 }
 0x1d9   :  { %v1334_v12 = vpop.f32.mrf.mxu0  ;;  %1783 = vmatprep.subr.mxu1 %v6202_v14  ;;  %v910_v28 = vadd.f32 %v6209_v18, %v566_v59  ;;  %v912_v15 = vadd.f32 %v6211_v25, %v572_v31  ;;  %v1766_v18 = vld [vmem:[#allocation4 + $0x38] sm:$0xff] }
 0x1da   :  { %v1457_v8 = vadd.f32 %v1334_v12, %v1182_v49  ;;  %3485 = vmatprep.mubr.msk.f32.mxu1 %vm1597_vm2, %v5438_v23  ;;  %1784 = vmatpush1.msra.mxu1 %v1771_v41  ;;  %v6210_v41 = vld [vmem:[#allocation45_spill] sm:$0xff]  ;;  %v1768_v49 = vld [vmem:[#allocation4 + $0x48] sm:$0xff]  ;;  %v1516_v12 = vadd.f32 %v5388_v61, %v1456_v51 }
 0x1db   :  { %v1336_v13 = vpop.f32.mrf.mxu0  ;;  %1704 = vmatmul.mubr.f32.gmra.mxu1 %v5430_v30  ;;  %1785 = vmatprep.subr.mxu1 %v6202_v14  ;;  %v1184_v57 = vadd.f32 %v5270_v27, %v6210_v41  ;;  %v1185_v27 = vadd.f32 %v5279_v63, %v910_v28  ;;  %v5475_v63 = vpop.f32.mrf.mxu1 }
 0x1dc   :  { %v1517_v52 = vadd.f32 %v5383_v39, %v1457_v8  ;;  %v1458_v38 = vadd.f32 %v1336_v13, %v1183_v9  ;;  %1786 = vmatpush1.msra.mxu1 %v1770_v44  ;;  %v1767_v44 = vld [vmem:[#allocation4 + $0x40] sm:$0xff] }
 0x1dd   :  { %v1340_v7 = vpop.f32.mrf.mxu0  ;;  %1787 = vmatprep.subr.mxu1 %v6202_v14  ;;  %v6212_v9 = vld [vmem:[#allocation47_spill] sm:$0xff] }
 0x1de   :  { %v1518_v29 = vadd.f32 %v5388_v61, %v1458_v38  ;;  %v5461_v59 = vmax.f32 %v1515_v4, %v1517_v52  ;;  %1788 = vmatpush1.msra.mxu1 %v1769_v0  ;;  %v1186_v37 = vadd.f32 %v5288_v46, %v6212_v9  ;;  %v1459_v31 = vadd.f32 %v1340_v7, %v1184_v57  ;;  %v1765_v46 = vld [vmem:[#allocation4 + $0x30] sm:$0xff]  ;;  %v1764_v7 = vld [vmem:[#allocation4 + $0x28] sm:$0xff] }
 0x1df   :  { %v1342_v8 = vpop.f32.mrf.mxu0  ;;  %1789 = vmatprep.subr.mxu1 %v6202_v14  ;;  %v1187_v0 = vadd.f32 %v5297_v47, %v912_v15  ;;  %v1190_v9 = vadd.f32 %v5320_v2, %v5250_v56 }
 0x1e0   :  { %v5469_v13 = vmax.f32 %v1516_v12, %v1518_v29  ;;  %1790 = vmatpush1.msra.mxu1 %v1768_v49  ;;  %v1460_v4 = vadd.f32 %v1342_v8, %v1185_v27  ;;  %v1519_v38 = vadd.f32 %v5383_v39, %v1459_v31  ;;  %v1188_v49 = vadd.f32 %v5306_v48, %v5241_v22  ;;  %v5488_v29 = vpop.f32.mrf.mxu1  ;;  %v1762_v31 = vld [vmem:[#allocation4 + $0x18] sm:$0xff] }
 0x1e1   :  { %v1346_v51 = vpop.f32.mrf.mxu0  ;;  %1791 = vmatprep.subr.mxu1 %v6202_v14  ;;  %v1189_v27 = vadd.f32 %v5313_v36, %v5245_v34  ;;  %v1761_v36 = vld [vmem:[#allocation4 + $0x10] sm:$0xff] }
 0x1e2   :  { %v1461_v52 = vadd.f32 %v1346_v51, %v1186_v37  ;;  %3486 = vmatprep.mubr.msk.f32.mxu1 %vm1597_vm2, %v5469_v13  ;;  %1792 = vmatpush1.msra.mxu1 %v1767_v44  ;;  %v1520_v25 = vadd.f32 %v5388_v61, %v1460_v4  ;;  %v1763_v44 = vld [vmem:[#allocation4 + $0x20] sm:$0xff]  ;;  %v1191_v51 = vadd.f32 %v5327_v5, %v5254_v17  ;;  %v5502_v34 = vpop.f32.mrf.mxu1  ;;  %v1760_v5 = vld [vmem:[#allocation4 + $0x8] sm:$0xff] }
 0x1e3   :  { %v1348_v28 = vpop.f32.mrf.mxu0  ;;  %1709 = vmatmul.mubr.f32.gmra.mxu1 %v5461_v59  ;;  %1793 = vmatprep.subr.mxu1 %v6202_v14 }
 0x1e4   :  { %v1521_v41 = vadd.f32 %v5383_v39, %v1461_v52  ;;  %v1462_v57 = vadd.f32 %v1348_v28, %v1187_v0  ;;  %1794 = vmatpush1.msra.mxu1 %v1766_v18  ;;  %v1192_v28 = vadd.f32 %v5334_v26, %v5259_v1 }
 0x1e5   :  { %v1352_v47 = vpop.f32.mrf.mxu0  ;;  %1795 = vmatprep.subr.mxu1 %v6202_v14 }
 0x1e6   :  { %v1522_v15 = vadd.f32 %v5388_v61, %v1462_v57  ;;  %v5486_v12 = vmax.f32 %v1519_v38, %v1521_v41  ;;  %1796 = vmatpush1.msra.mxu1 %v1765_v46  ;;  %v1463_v48 = vadd.f32 %v1352_v47, %v1188_v49  ;;  %v5515_v57 = vpop.f32.mrf.mxu1  ;;  %v1193_v49 = vadd.f32 %v5341_v45, %v5263_v54  ;;  %v1775_v45 = vld [vmem:[#allocation4 + $0x80] sm:$0xff] }
 0x1e7   :  { %v1354_v8 = vpop.f32.mrf.mxu0  ;;  %1797 = vmatprep.subr.mxu1 %v6202_v14 }
 0x1e8   :  { %v5495_v22 = vmax.f32 %v1520_v25, %v1522_v15  ;;  %1798 = vmatpush1.msra.mxu1 %v1764_v7  ;;  %v1464_v18 = vadd.f32 %v1354_v8, %v1189_v27  ;;  %v1523_v2 = vadd.f32 %v5383_v39, %v1463_v48  ;;  %v1759_v7 = vld [vmem:[#allocation4] sm:$0xff]  ;;  %v1194_v25 = vadd.f32 %v5348_v40, %v5268_v10  ;;  %v1776_v8 = vld [vmem:[#allocation4 + $0x88] sm:$0xff]  ;;  %v5529_v54 = vpop.f32.mrf.mxu1 }
 0x1e9   :  { %v1358_v37 = vpop.f32.mrf.mxu0  ;;  %1799 = vmatprep.subr.mxu1 %v6202_v14 }
 0x1ea   :  { %v1465_v0 = vadd.f32 %v1358_v37, %v1190_v9  ;;  %3487 = vmatprep.mubr.msk.f32.mxu1 %vm1597_vm2, %v5495_v22  ;;  %1800 = vmatpush1.msra.mxu1 %v1763_v44  ;;  %v1524_v46 = vadd.f32 %v5388_v61, %v1464_v18  ;;  %v1195_v44 = vadd.f32 %v5355_v42, %v5272_v43 }
 0x1eb   :  { %v1360_v56 = vpop.f32.mrf.mxu0  ;;  %1714 = vmatmul.mubr.f32.gmra.mxu1 %v5486_v12  ;;  %1801 = vmatprep.subr.mxu1 %v6202_v14  ;;  %v1196_v42 = vadd.f32 %v5365_v50, %v5277_v21  ;;  %v1199_v50 = vadd.f32 %v5404_v24, %v5290_v32 }
 0x1ec   :  { %v1525_v4 = vadd.f32 %v5383_v39, %v1465_v0  ;;  %v1466_v52 = vadd.f32 %v1360_v56, %v1191_v51  ;;  %1802 = vmatpush1.msra.mxu1 %v1762_v31  ;;  %v5542_v0 = vpop.f32.mrf.mxu1 }
 0x1ed   :  { %v1364_v17 = vpop.f32.mrf.mxu0  ;;  %1803 = vmatprep.subr.mxu1 %v6202_v14 }
 0x1ee   :  { %v1526_v38 = vadd.f32 %v5388_v61, %v1466_v52  ;;  %v5513_v41 = vmax.f32 %v1523_v2, %v1525_v4  ;;  %1804 = vmatpush1.msra.mxu1 %v1761_v36  ;;  %v1467_v26 = vadd.f32 %v1364_v17, %v1192_v28  ;;  %v1197_v36 = vadd.f32 %v5378_v20, %v5281_v3  ;;  %v5554_v28 = vpop.f32.mrf.mxu1 }
 0x1ef   :  { %v1366_v47 = vpop.f32.mrf.mxu0  ;;  %1805 = vmatprep.subr.mxu1 %v6202_v14  ;;  %v1198_v2 = vadd.f32 %v5392_v16, %v5286_v35 }
 0x1f0   :  { %v5522_v1 = vmax.f32 %v1524_v46, %v1526_v38  ;;  %1806 = vmatpush1.msra.mxu1 %v1760_v5  ;;  %v1468_v27 = vadd.f32 %v1366_v47, %v1193_v49  ;;  %v1527_v40 = vadd.f32 %v5383_v39, %v1467_v26  ;;  %v1200_v38 = vadd.f32 %v5418_v19, %v5295_v60  ;;  %v6214_v60 = vld [vmem:[#allocation22_spill] sm:$0xff] }
 0x1f1   :  { %v1370_v15 = vpop.f32.mrf.mxu0  ;;  %1807 = vmatprep.subr.mxu1 %v6202_v14  ;;  %v1202_v26 = vadd.f32 %v5448_v58, %v5304_v11  ;;  %v6217_v58 = vld [vmem:[#allocation51_spill] sm:$0xff] }
 0x1f2   :  { %v1469_v9 = vadd.f32 %v1370_v15, %v1194_v25  ;;  %3488 = vmatprep.mubr.msk.f32.mxu1 %vm1597_vm2, %v5522_v1  ;;  %1808 = vmatpush1.msra.mxu1 %v1759_v7  ;;  %v1528_v31 = vadd.f32 %v5388_v61, %v1468_v27  ;;  %v1145_v7 = vpop.f32.mrf.mxu1  ;;  %v1201_v25 = vadd.f32 %v5432_v33, %v5299_v62  ;;  %v6213_v27 = vld [vmem:[#allocation21_spill] sm:$0xff]  ;;  %v6216_v62 = vld [vmem:[#allocation24_spill] sm:$0xff] }
 0x1f3   :  { %v1372_v10 = vpop.f32.mrf.mxu0  ;;  %1719 = vmatmul.mubr.f32.gmra.mxu1 %v5513_v41  ;;  %1837 = vmatprep.subr.mxu1 %v6202_v14  ;;  %v626_v19 = vadd.f32 %v6214_v60, %v6213_v27 }
 0x1f4   :  { %v1529_v48 = vadd.f32 %v5383_v39, %v1469_v9  ;;  %v1470_v37 = vadd.f32 %v1372_v10, %v1195_v44  ;;  %1838 = vmatpush2.msra.mxu1 %v1776_v8  ;;  %v1203_v9 = vadd.f32 %v5463_v53, %v5308_v6  ;;  %v6218_v6 = vld [vmem:[#allocation50_spill] sm:$0xff] }
 0x1f5   :  { %v1376_v43 = vpop.f32.mrf.mxu0  ;;  %1839 = vmatprep.subr.mxu1 %v6202_v14  ;;  %v1204_v53 = vadd.f32 %v5475_v63, %v6218_v6  ;;  %v6228_v6 = vld [vmem:[#allocation56_spill] sm:$0xff] }
 0x1f6   :  { %v1530_v51 = vadd.f32 %v5388_v61, %v1470_v37  ;;  %v5540_v18 = vmax.f32 %v1527_v40, %v1529_v48  ;;  %1840 = vmatpush2.msra.mxu1 %v1775_v45  ;;  %v1471_v52 = vadd.f32 %v1376_v43, %v1196_v42  ;;  %v6215_v40 = vld [vmem:[#allocation23_spill] sm:$0xff]  ;;  %v1149_v48 = vpop.f32.mrf.mxu1  ;;  %v930_v37 = vadd.f32 %v6217_v58, %v626_v19 }
 0x1f7   :  { %v1378_v56 = vpop.f32.mrf.mxu0  ;;  %v632_v33 = vadd.f32 %v6216_v62, %v6215_v40  ;;  %v6227_v62 = vld [vmem:[#allocation57_spill] sm:$0xff] }
 0x1f8   :  { %v5548_v4 = vmax.f32 %v1528_v31, %v1530_v51  ;;  %v1472_v17 = vadd.f32 %v1378_v56, %v1197_v36  ;;  %v1531_v3 = vadd.f32 %v5383_v39, %v1471_v52  ;;  %v6219_v56 = vld [vmem:[#allocation53_spill] sm:$0xff] }
 0x1f9   :  { %v1382_v21 = vpop.f32.mrf.mxu0  ;;  %v932_v36 = vadd.f32 %v6219_v56, %v632_v33 }
 0x1fa   :  { %v1473_v5 = vadd.f32 %v1382_v21, %v1198_v2  ;;  %3489 = vmatprep.mubr.msk.f32.mxu1 %vm1597_vm2, %v5548_v4  ;;  %v1532_v32 = vadd.f32 %v5388_v61, %v1472_v17 }
 0x1fb   :  { %v1384_v46 = vpop.f32.mrf.mxu0  ;;  %1724 = vmatmul.mubr.f32.gmra.mxu1 %v5540_v18 }
 0x1fc   :  { %v1533_v35 = vadd.f32 %v5383_v39, %v1473_v5  ;;  %v1474_v20 = vadd.f32 %v1384_v46, %v1199_v50  ;;  %v1151_v50 = vpop.f32.mrf.mxu1  ;;  %v1205_v5 = vadd.f32 %v5488_v29, %v930_v37  ;;  %v6220_v46 = vld [vmem:[#allocation52_spill] sm:$0xff] }
 0x1fd   :  { %v1388_v16 = vpop.f32.mrf.mxu0 }
 0x1fe   :  { %v1534_v24 = vadd.f32 %v5388_v61, %v1474_v20  ;;  %v5563_v47 = vmax.f32 %v1531_v3, %v1533_v35  ;;  %v1475_v8 = vadd.f32 %v1388_v16, %v1200_v38  ;;  %v1206_v3 = vadd.f32 %v5502_v34, %v6220_v46  ;;  %v6221_v16 = vld [vmem:[#allocation25_spill] sm:$0xff]  ;;  %v6222_v38 = vld [vmem:[#allocation26_spill] sm:$0xff]  ;;  %v6225_v34 = vld [vmem:[#allocation55_spill] sm:$0xff] }
 0x1ff   :  { %v1390_v49 = vpop.f32.mrf.mxu0 }
 0x200   :  { %v5569_v15 = vmax.f32 %v1532_v32, %v1534_v24  ;;  %v1476_v10 = vadd.f32 %v1390_v49, %v1201_v25  ;;  %v1535_v43 = vadd.f32 %v5383_v39, %v1475_v8  ;;  %v638_v32 = vadd.f32 %v6222_v38, %v6221_v16  ;;  %v6224_v8 = vld [vmem:[#allocation28_spill] sm:$0xff] }
 0x201   :  { %v1394_v44 = vpop.f32.mrf.mxu0  ;;  %v1207_v24 = vadd.f32 %v5515_v57, %v932_v36  ;;  %v6226_v57 = vld [vmem:[#allocation54_spill] sm:$0xff]  ;;  %v6229_v36 = vld [vmem:[#allocation29_spill] sm:$0xff] }
 0x202   :  { %v1477_v45 = vadd.f32 %v1394_v44, %v1202_v26  ;;  %3490 = vmatprep.mubr.msk.f32.mxu1 %vm1597_vm2, %v5569_v15  ;;  %v1536_v2 = vadd.f32 %v5388_v61, %v1476_v10  ;;  %v6223_v26 = vld [vmem:[#allocation27_spill] sm:$0xff]  ;;  %v1155_v44 = vpop.f32.mrf.mxu1  ;;  %v934_v60 = vadd.f32 %v6225_v34, %v638_v32 }
 0x203   :  { %v1396_v11 = vpop.f32.mrf.mxu0  ;;  %1729 = vmatmul.mubr.f32.gmra.mxu1 %v5563_v47  ;;  %v644_v29 = vadd.f32 %v6224_v8, %v6223_v26  ;;  %v6235_v8 = vld [vmem:[#allocation61_spill] sm:$0xff] }
 0x204   :  { %v1537_v42 = vadd.f32 %v5383_v39, %v1477_v45  ;;  %v1478_v31 = vadd.f32 %v1396_v11, %v1203_v9  ;;  %v1208_v45 = vadd.f32 %v5529_v54, %v6226_v57  ;;  %v6236_v57 = vld [vmem:[#allocation60_spill] sm:$0xff] }
 0x205   :  { %v1400_v51 = vpop.f32.mrf.mxu0  ;;  %v936_v33 = vadd.f32 %v6227_v62, %v644_v29 }
 0x206   :  { %v1538_v52 = vadd.f32 %v5388_v61, %v1478_v31  ;;  %v5588_v21 = vmax.f32 %v1535_v43, %v1537_v42  ;;  %v1479_v20 = vadd.f32 %v1400_v51, %v1204_v53  ;;  %v1157_v43 = vpop.f32.mrf.mxu1  ;;  %v1209_v31 = vadd.f32 %v5542_v0, %v934_v60 }
 0x207   :  { %v1402_v17 = vpop.f32.mrf.mxu0  ;;  %v1210_v53 = vadd.f32 %v5554_v28, %v6228_v6  ;;  %v6233_v28 = vld [vmem:[#allocation59_spill] sm:$0xff] }
 0x208   :  { %v5593_v35 = vmax.f32 %v1536_v2, %v1538_v52  ;;  %v1480_v49 = vadd.f32 %v1402_v17, %v1205_v5  ;;  %v1539_v19 = vadd.f32 %v5383_v39, %v1479_v20  ;;  %v6230_v2 = vld [vmem:[#allocation30_spill] sm:$0xff]  ;;  %v1211_v17 = vadd.f32 %v1145_v7, %v936_v33  ;;  %v6232_v20 = vld [vmem:[#allocation32_spill] sm:$0xff]  ;;  %v1161_v0 = vpop.f32.mrf.mxu1 }
 0x209   :  { %v1406_v63 = vpop.f32.mrf.mxu0  ;;  %v650_v52 = vadd.f32 %v6230_v2, %v6229_v36  ;;  %v6234_v7 = vld [vmem:[#allocation58_spill] sm:$0xff] }
 0x20a   :  { %v1481_v25 = vadd.f32 %v1406_v63, %v1206_v3  ;;  %3491 = vmatprep.mubr.msk.f32.mxu1 %vm1597_vm2, %v5593_v35  ;;  %v1540_v11 = vadd.f32 %v5388_v61, %v1480_v49  ;;  %v6231_v3 = vld [vmem:[#allocation31_spill] sm:$0xff] }
 0x20b   :  { %v1408_v27 = vpop.f32.mrf.mxu0  ;;  %1734 = vmatmul.mubr.f32.gmra.mxu1 %v5588_v21  ;;  %v656_v63 = vadd.f32 %v6232_v20, %v6231_v3  ;;  %v938_v38 = vadd.f32 %v6233_v28, %v650_v52  ;;  %v6243_v20 = vld [vmem:[#allocation65_spill] sm:$0xff] }
 0x20c   :  { %v1541_v9 = vadd.f32 %v5383_v39, %v1481_v25  ;;  %v1482_v10 = vadd.f32 %v1408_v27, %v1207_v24  ;;  %v1212_v25 = vadd.f32 %v1149_v48, %v6234_v7  ;;  %v6238_v48 = vld [vmem:[#allocation34_spill] sm:$0xff]  ;;  %v6244_v7 = vld [vmem:[#allocation64_spill] sm:$0xff] }
 0x20d   :  { %v1412_v40 = vpop.f32.mrf.mxu0  ;;  %v940_v29 = vadd.f32 %v6235_v8, %v656_v63 }
 0x20e   :  { %v5610_v58 = vmax.f32 %v1539_v19, %v1541_v9  ;;  %v1542_v37 = vadd.f32 %v5388_v61, %v1482_v10  ;;  %v1483_v56 = vadd.f32 %v1412_v40, %v1208_v45  ;;  %v1163_v19 = vpop.f32.mrf.mxu1  ;;  %v1213_v10 = vadd.f32 %v1151_v50, %v938_v38 }
 0x20f   :  { %v1414_v42 = vpop.f32.mrf.mxu0  ;;  %v1214_v45 = vadd.f32 %v1155_v44, %v6236_v57  ;;  %v6241_v44 = vld [vmem:[#allocation63_spill] sm:$0xff] }
 0x210   :  { %v5616_v51 = vmax.f32 %v1540_v11, %v1542_v37  ;;  %v1484_v5 = vadd.f32 %v1414_v42, %v1209_v31  ;;  %v1543_v32 = vadd.f32 %v5383_v39, %v1483_v56  ;;  %v6237_v11 = vld [vmem:[#allocation33_spill] sm:$0xff]  ;;  %v1215_v42 = vadd.f32 %v1157_v43, %v940_v29  ;;  %v6240_v56 = vld [vmem:[#allocation36_spill] sm:$0xff]  ;;  %v1167_v36 = vpop.f32.mrf.mxu1  ;;  %v6242_v43 = vld [vmem:[#allocation62_spill] sm:$0xff] }
 0x211   :  { %v1418_v54 = vpop.f32.mrf.mxu0  ;;  %v662_v37 = vadd.f32 %v6238_v48, %v6237_v11 }
 0x212   :  { %v1485_v46 = vadd.f32 %v1418_v54, %v1210_v53  ;;  %3492 = vmatprep.mubr.msk.f32.mxu1 %vm1597_vm2, %v5616_v51  ;;  %v1544_v27 = vadd.f32 %v5388_v61, %v1484_v5  ;;  %v6239_v53 = vld [vmem:[#allocation35_spill] sm:$0xff] }
 0x213   :  { %v1420_v16 = vpop.f32.mrf.mxu0  ;;  %1739 = vmatmul.mubr.f32.gmra.mxu1 %v5610_v58  ;;  %v668_v54 = vadd.f32 %v6240_v56, %v6239_v53  ;;  %v942_v2 = vadd.f32 %v6241_v44, %v662_v37  ;;  %v3515_v37 = vld [vmem:[%s6122_s5 + $0x80] sm:$0xff] }
 0x214   :  { %v1545_v24 = vadd.f32 %v5383_v39, %v1485_v46  ;;  %v1486_v49 = vadd.f32 %v1420_v16, %v1211_v17  ;;  %v1216_v46 = vadd.f32 %v1161_v0, %v6242_v43 }
 0x215   :  { %v1424_v26 = vpop.f32.mrf.mxu0  ;;  %v944_v63 = vadd.f32 %v6243_v20, %v668_v54 }
 0x216   :  { %v5631_v34 = vmax.f32 %v1543_v32, %v1545_v24  ;;  %v1546_v60 = vadd.f32 %v5388_v61, %v1486_v49  ;;  %v1487_v62 = vadd.f32 %v1424_v26, %v1212_v25  ;;  %v1169_v32 = vpop.f32.mrf.mxu1  ;;  %v1217_v49 = vadd.f32 %v1163_v19, %v942_v2 }
 0x217   :  { %v1426_v9 = vpop.f32.mrf.mxu0  ;;  %v1218_v25 = vadd.f32 %v1167_v36, %v6244_v7 }
 0x218   :  { %v5635_v40 = vmax.f32 %v1544_v27, %v1546_v60  ;;  %v1488_v31 = vadd.f32 %v1426_v9, %v1213_v10  ;;  %v1547_v52 = vadd.f32 %v5383_v39, %v1487_v62  ;;  %v1219_v27 = vadd.f32 %v1169_v32, %v944_v63  ;;  %v3516_v10 = vld [vmem:[%s6122_s5 + $0x88] sm:$0xff] }
 0x219   :  { %v1430_v33 = vpop.f32.mrf.mxu0  ;;  %3787 = vmatprep.subr.mxu0 %v3516_v10 }
 0x21a   :  { %v1489_v6 = vadd.f32 %v1430_v33, %v1214_v45  ;;  %3493 = vmatprep.mubr.msk.f32.mxu1 %vm1597_vm2, %v5635_v40  ;;  %v1548_v16 = vadd.f32 %v5388_v61, %v1488_v31  ;;  %3788 = vmatpush3.msra.mxu0 %v3516_v10  ;;  %v3540_v10 = vld [vmem:[%s6122_s5 + $0xc8] sm:$0xff] }
 0x21b   :  { %v1432_v50 = vpop.f32.mrf.mxu0  ;;  %1744 = vmatmul.mubr.f32.gmra.mxu1 %v5631_v34  ;;  %3789 = vmatprep.subr.mxu0 %v3515_v37 }
 0x21c   :  { %v1549_v17 = vadd.f32 %v5383_v39, %v1489_v6  ;;  %v1490_v5 = vadd.f32 %v1432_v50, %v1215_v42  ;;  %3790 = vmatpush3.msra.mxu0 %v3515_v37 }
 0x21d   :  { %v1436_v3 = vpop.f32.mrf.mxu0 }
 0x21e   :  { %v1575_v28 = vmax.f32 %v1547_v52, %v1549_v17  ;;  %v1550_v38 = vadd.f32 %v5388_v61, %v1490_v5  ;;  %v1491_v8 = vadd.f32 %v1436_v3, %v1216_v46 }
 0x21f   :  { %v1438_v24 = vpop.f32.mrf.mxu0 }
 0x220   :  { %v1576_v26 = vmax.f32 %v1548_v16, %v1550_v38  ;;  %v1492_v60 = vadd.f32 %v1438_v24, %v1217_v49  ;;  %v1551_v57 = vadd.f32 %v5383_v39, %v1491_v8 }
 0x221   :  { %v1442_v29 = vpop.f32.mrf.mxu0 }
 0x222   :  { %v1493_v9 = vadd.f32 %v1442_v29, %v1218_v25  ;;  %3494 = vmatprep.mubr.msk.f32.mxu1 %vm1597_vm2, %v1576_v26  ;;  %v1552_v62 = vadd.f32 %v5388_v61, %v1492_v60  ;;  %v3557_v29 = vld [vmem:[%s6122_s5 + $0x110] sm:$0xff] }
 0x223   :  { %v1444_v0 = vpop.f32.mrf.mxu0  ;;  %1749 = vmatmul.mubr.f32.gmra.mxu1 %v1575_v28 }
 0x224   :  { %v1553_v19 = vadd.f32 %v5383_v39, %v1493_v9  ;;  %v1494_v45 = vadd.f32 %v1444_v0, %v1219_v27  ;;  %v6245_v39 = vld [vmem:[#allocation38_spill] sm:$0xff] }
 0x225   :  { %v3556_v9 = vld [vmem:[%s6122_s5 + $0x108] sm:$0xff] }
 0x226   :  { %v1577_v33 = vmax.f32 %v1551_v57, %v1553_v19  ;;  %v1554_v11 = vadd.f32 %v5388_v61, %v1494_v45  ;;  %v3514_v61 = vld [vmem:[%s6122_s5 + $0x78] sm:$0xff]  ;;  %v3555_v57 = vld [vmem:[%s6122_s5 + $0x100] sm:$0xff] }
 0x227   :  { %3791 = vmatprep.subr.mxu0 %v3514_v61 }
 0x228   :  { %v1578_v48 = vmax.f32 %v1552_v62, %v1554_v11  ;;  %3792 = vmatpush3.msra.mxu0 %v3514_v61  ;;  %v3539_v62 = vld [vmem:[%s6122_s5 + $0xc0] sm:$0xff]  ;;  %v3554_v11 = vld [vmem:[%s6122_s5 + $0xf8] sm:$0xff]  ;;  %v3553_v61 = vld [vmem:[%s6122_s5 + $0xf0] sm:$0xff] }
 0x22a   :  { %3495 = vmatprep.mubr.msk.f32.mxu1 %vm1597_vm2, %v1578_v48 }
 0x22b   :  { %1754 = vmatmul.mubr.f32.gmra.mxu1 %v1577_v33 }
 0x22c   :  { %3496 = vmatprep.mubr.msk.f32.mxu1 %vm1597_vm2, %v5409_v55  ;;  %v3513_v55 = vld [vmem:[%s6122_s5 + $0x70] sm:$0xff] }
 0x22d   :  { %3793 = vmatprep.subr.mxu0 %v3513_v55 }
 0x22e   :  { %3794 = vmatpush3.msra.mxu0 %v3513_v55 }
 0x22f   :  { %1842 = vmatmul.mubr.f32.vlgmr.msra.gmra.mxu1 %v6245_v39 }
 0x230   :  { %3497 = vmatprep.mubr.msk.f32.mxu1 %vm1597_vm2, %v5438_v23  ;;  %v3511_v23 = vld [vmem:[%s6122_s5 + $0x60] sm:$0xff] }
 0x233   :  { %1847 = vmatmul.mubr.f32.gmra.mxu1 %v5430_v30  ;;  %v3512_v30 = vld [vmem:[%s6122_s5 + $0x68] sm:$0xff] }
 0x234   :  { %3498 = vmatprep.mubr.msk.f32.mxu1 %vm1597_vm2, %v5469_v13  ;;  %3795 = vmatprep.subr.mxu0 %v3512_v30  ;;  %v1922_v13 = vld [vmem:[%s6122_s5 + $0x40] sm:$0xff] }
 0x235   :  { %3796 = vmatpush3.msra.mxu0 %v3512_v30  ;;  %3817 = vmatprep.subr.mxu1 %v1922_v13  ;;  %v3537_v30 = vld [vmem:[%s6122_s5 + $0xb0] sm:$0xff] }
 0x236   :  { %3797 = vmatprep.subr.mxu0 %v3511_v23  ;;  %3818 = vmatpush3.msra.mxu1 %v1922_v13 }
 0x237   :  { %1852 = vmatmul.mubr.f32.gmra.mxu1 %v5461_v59  ;;  %3798 = vmatpush3.msra.mxu0 %v3511_v23  ;;  %v3510_v59 = vld [vmem:[%s6122_s5 + $0x58] sm:$0xff]  ;;  %v3552_v23 = vld [vmem:[%s6122_s5 + $0xe8] sm:$0xff] }
 0x238   :  { %3499 = vmatprep.mubr.msk.f32.mxu1 %vm1597_vm2, %v5495_v22  ;;  %3799 = vmatprep.subr.mxu0 %v3510_v59  ;;  %v1920_v22 = vld [vmem:[%s6122_s5 + $0x30] sm:$0xff] }
 0x239   :  { %3800 = vmatpush3.msra.mxu0 %v3510_v59 }
 0x23b   :  { %1857 = vmatmul.mubr.f32.gmra.mxu1 %v5486_v12  ;;  %v1921_v12 = vld [vmem:[%s6122_s5 + $0x38] sm:$0xff] }
 0x23c   :  { %3500 = vmatprep.mubr.msk.f32.mxu1 %vm1597_vm2, %v5522_v1  ;;  %3819 = vmatprep.subr.mxu1 %v1921_v12  ;;  %v1918_v1 = vld [vmem:[%s6122_s5 + $0x20] sm:$0xff] }
 0x23d   :  { %3820 = vmatpush3.msra.mxu1 %v1921_v12  ;;  %v3536_v12 = vld [vmem:[%s6122_s5 + $0xa8] sm:$0xff] }
 0x23e   :  { %3821 = vmatprep.subr.mxu1 %v1920_v22 }
 0x23f   :  { %1862 = vmatmul.mubr.f32.gmra.mxu1 %v5513_v41  ;;  %v1919_v41 = vld [vmem:[%s6122_s5 + $0x28] sm:$0xff] }
 0x240   :  { %3501 = vmatprep.mubr.msk.f32.mxu1 %vm1597_vm2, %v5548_v4  ;;  %3822 = vmatpush3.msra.mxu1 %v1920_v22  ;;  %v1916_v4 = vld [vmem:[%s6122_s5 + $0x10] sm:$0xff] }
 0x241   :  { %3823 = vmatprep.subr.mxu1 %v1919_v41 }
 0x242   :  { %3824 = vmatpush3.msra.mxu1 %v1919_v41  ;;  %v3551_v41 = vld [vmem:[%s6122_s5 + $0xe0] sm:$0xff] }
 0x243   :  { %1867 = vmatmul.mubr.f32.gmra.mxu1 %v5540_v18  ;;  %3825 = vmatprep.subr.mxu1 %v1918_v1  ;;  %v1917_v18 = vld [vmem:[%s6122_s5 + $0x18] sm:$0xff] }
 0x244   :  { %3502 = vmatprep.mubr.msk.f32.mxu1 %vm1597_vm2, %v5569_v15  ;;  %3826 = vmatpush3.msra.mxu1 %v1918_v1  ;;  %v1915_v15 = vld [vmem:[%s6122_s5 + $0x8] sm:$0xff]  ;;  %v3535_v1 = vld [vmem:[%s6122_s5 + $0xa0] sm:$0xff] }
 0x245   :  { %3827 = vmatprep.subr.mxu1 %v1917_v18 }
 0x246   :  { %3828 = vmatpush3.msra.mxu1 %v1917_v18 }
 0x247   :  { %1872 = vmatmul.mubr.f32.gmra.mxu1 %v5563_v47  ;;  %v3509_v47 = vld [vmem:[%s6122_s5 + $0x50] sm:$0xff]  ;;  %3829 = vmatprep.subr.mxu1 %v1916_v4 }
 0x248   :  { %3503 = vmatprep.mubr.msk.f32.mxu1 %vm1597_vm2, %v5593_v35  ;;  %3801 = vmatprep.subr.mxu0 %v3509_v47  ;;  %v3508_v35 = vld [vmem:[%s6122_s5 + $0x48] sm:$0xff] }
 0x249   :  { %3830 = vmatpush3.msra.mxu1 %v1916_v4  ;;  %3802 = vmatpush3.msra.mxu0 %v3509_v47  ;;  %v3550_v47 = vld [vmem:[%s6122_s5 + $0xd8] sm:$0xff] }
 0x24a   :  { %3831 = vmatprep.subr.mxu1 %v1915_v15  ;;  %3803 = vmatprep.subr.mxu0 %v3508_v35 }
 0x24b   :  { %1877 = vmatmul.mubr.f32.gmra.mxu1 %v5588_v21  ;;  %v1914_v21 = vld [vmem:[%s6122_s5] sm:$0xff]  ;;  %3804 = vmatpush3.msra.mxu0 %v3508_v35 }
 0x24c   :  { %3504 = vmatprep.mubr.msk.f32.mxu1 %vm1597_vm2, %v5616_v51  ;;  %3832 = vmatpush3.msra.mxu1 %v1915_v15  ;;  %v3541_v51 = vld [vmem:[%s6122_s5 + $0xd0] sm:$0xff] }
 0x24d   :  { %3833 = vmatprep.subr.mxu1 %v1914_v21  ;;  %3847 = vmatprep.subr.mxu0 %v3541_v51 }
 0x24e   :  { %3834 = vmatpush3.msra.mxu1 %v1914_v21  ;;  %v3534_v21 = vld [vmem:[%s6122_s5 + $0x98] sm:$0xff] }
 0x24f   :  { %1882 = vmatmul.mubr.f32.gmra.mxu1 %v5610_v58  ;;  %v3558_v58 = vld [vmem:[%s6122_s5 + $0x118] sm:$0xff] }
 0x250   :  { %3505 = vmatprep.mubr.msk.f32.mxu1 %vm1597_vm2, %v5635_v40  ;;  %3877 = vmatprep.subr.mxu1 %v3558_v58 }
 0x253   :  { %1887 = vmatmul.mubr.f32.gmra.mxu1 %v5631_v34 }
 0x254   :  { %3506 = vmatprep.mubr.msk.f32.mxu1 %vm1597_vm2, %v1576_v26 }
 0x257   :  { %1892 = vmatmul.mubr.f32.gmra.mxu1 %v1575_v28 }
 0x258   :  { %3507 = vmatprep.mubr.msk.f32.mxu1 %vm1597_vm2, %v1578_v48  ;;  %v3538_v48 = vld [vmem:[%s6122_s5 + $0xb8] sm:$0xff] }
 0x25b   :  { %1897 = vmatmul.mubr.f32.gmra.mxu1 %v1577_v33 }
 0x293   :  { %v1700_v34 = vpop.f32.mrf.mxu1 }
 0x295   :  { %v1702_v40 = vpop.f32.mrf.mxu1 }
 0x296   :  { %v3575_v40 = vld [vmem:[%s6122_s5 + $0x160] sm:$0xff] }
 0x29b   :  { %v1705_v42 = vpop.f32.mrf.mxu1 }
 0x29d   :  { %v1707_v31 = vpop.f32.mrf.mxu1 }
 0x2a3   :  { %v1710_v6 = vpop.f32.mrf.mxu1 }
 0x2a5   :  { %v1712_v53 = vpop.f32.mrf.mxu1 }
 0x2ab   :  { %v1715_v56 = vpop.f32.mrf.mxu1 }
 0x2ad   :  { %v1717_v54 = vpop.f32.mrf.mxu1 }
 0x2ae   :  { %v3574_v54 = vld [vmem:[%s6122_s5 + $0x158] sm:$0xff] }
 0x2b3   :  { %v1720_v36 = vpop.f32.mrf.mxu1 }
 0x2b5   :  { %v1722_v50 = vpop.f32.mrf.mxu1 }
 0x2b6   :  { %v3573_v50 = vld [vmem:[%s6122_s5 + $0x150] sm:$0xff] }
 0x2bb   :  { %v5750_v44 = vpop.f32.mrf.mxu1 }
 0x2bd   :  { %v1727_v2 = vpop.f32.mrf.mxu1 }
 0x2c3   :  { %v5752_v52 = vpop.f32.mrf.mxu1 }
 0x2c5   :  { %v1732_v17 = vpop.f32.mrf.mxu1 }
 0x2cb   :  { %v5754_v5 = vpop.f32.mrf.mxu1 }
 0x2cd   :  { %v1737_v43 = vpop.f32.mrf.mxu1 }
 0x2d3   :  { %v5756_v46 = vpop.f32.mrf.mxu1 }
 0x2d5   :  { %v1742_v3 = vpop.f32.mrf.mxu1 }
 0x2d6   :  { %v3570_v3 = vld [vmem:[%s6122_s5 + $0x138] sm:$0xff] }
 0x2db   :  { %v5758_v20 = vpop.f32.mrf.mxu1 }
 0x2dd   :  { %v1747_v63 = vpop.f32.mrf.mxu1 }
 0x2de   :  { %v3568_v63 = vld [vmem:[%s6122_s5 + $0x128] sm:$0xff] }
 0x2e3   :  { %v5760_v16 = vpop.f32.mrf.mxu1 }
 0x2e5   :  { %v1752_v28 = vpop.f32.mrf.mxu1 }
 0x2eb   :  { %v5762_v38 = vpop.f32.mrf.mxu1 }
 0x2ed   :  { %v1757_v32 = vpop.f32.mrf.mxu1 }
 0x2ee   :  { %v2583_v32 = vld [vmem:[%s6124_s7 + $0x78] sm:$0xff] }
 0x2ef   :  { %v1843_v24 = vpop.f32.mrf.mxu1 }
 0x2f0   :  { %v1902_v49 = vmax.f32 %v1700_v34, %v1843_v24  ;;  %v2684_v24 = vld [vmem:[%s6125_s8 + $0x78] sm:$0xff] }
 0x2f1   :  { %v1845_v7 = vpop.f32.mrf.mxu1 }
 0x2f2   :  { %3835 = vmatprep.mubr.msk.f32.mxu1 %vm1933_vm3, %v1902_v49  ;;  %v2582_v49 = vld [vmem:[%s6124_s7 + $0x70] sm:$0xff]  ;;  %v2581_v7 = vld [vmem:[%s6124_s7 + $0x68] sm:$0xff] }
 0x2f3   :  { %v1848_v25 = vpop.f32.mrf.mxu1 }
 0x2f4   :  { %v1903_v26 = vmax.f32 %v1705_v42, %v1848_v25  ;;  %v2682_v25 = vld [vmem:[%s6125_s8 + $0x68] sm:$0xff] }
 0x2f5   :  { %v1850_v8 = vpop.f32.mrf.mxu1 }
 0x2f6   :  { %3805 = vmatprep.mubr.msk.f32.mxu0 %vm1933_vm3, %v1903_v26  ;;  %3836 = vmatmul.mubr.msk.f32.vlgmr.msra.gmra.mxu1 %vm1933_vm3, %v1903_v26  ;;  %v2580_v26 = vld [vmem:[%s6124_s7 + $0x60] sm:$0xff] }
 0x2f7   :  { %v1853_v27 = vpop.f32.mrf.mxu1  ;;  %3878 = vmatpush3.msra.mxu1 %v3558_v58  ;;  %v2681_v8 = vld [vmem:[%s6125_s8 + $0x60] sm:$0xff] }
 0x2f8   :  { %v5770_v60 = vmax.f32 %v1710_v6, %v1853_v27  ;;  %3879 = vmatprep.subr.mxu1 %v3557_v29  ;;  %v2680_v27 = vld [vmem:[%s6125_s8 + $0x58] sm:$0xff] }
 0x2f9   :  { %v1855_v0 = vpop.f32.mrf.mxu1  ;;  %3880 = vmatpush3.msra.mxu1 %v3557_v29  ;;  %v2579_v29 = vld [vmem:[%s6124_s7 + $0x58] sm:$0xff] }
 0x2fa   :  { %3806 = vmatmul.mubr.msk.f32.vlgmr.msra.gmra.mxu0 %vm1933_vm3, %v5770_v60  ;;  %3838 = vmatprep.mubr.msk.f32.mxu1 %vm1933_vm3, %v5770_v60  ;;  %v2577_v0 = vld [vmem:[%s6124_s7 + $0x48] sm:$0xff] }
 0x2fb   :  { %v1858_v19 = vpop.f32.mrf.mxu1  ;;  %3848 = vmatpush3.msra.mxu0 %v3541_v51  ;;  %3881 = vmatprep.subr.mxu1 %v3556_v9  ;;  %v3533_v51 = vld [vmem:[%s6122_s5 + $0x90] sm:$0xff] }
 0x2fc   :  { %v5785_v45 = vmax.f32 %v1715_v56, %v1858_v19  ;;  %3849 = vmatprep.subr.mxu0 %v3540_v10  ;;  %3882 = vmatpush3.msra.mxu1 %v3556_v9  ;;  %v2679_v9 = vld [vmem:[%s6125_s8 + $0x50] sm:$0xff]  ;;  %v2677_v19 = vld [vmem:[%s6125_s8 + $0x40] sm:$0xff] }
 0x2fd   :  { %v1860_v33 = vpop.f32.mrf.mxu1  ;;  %3850 = vmatpush3.msra.mxu0 %v3540_v10  ;;  %3883 = vmatprep.subr.mxu1 %v3555_v57  ;;  %v2678_v10 = vld [vmem:[%s6125_s8 + $0x48] sm:$0xff] }
 0x2fe   :  { %3808 = vmatprep.mubr.msk.f32.mxu0 %vm1933_vm3, %v5785_v45  ;;  %3839 = vmatmul.mubr.msk.f32.gmra.mxu1 %vm1933_vm3, %v5785_v45  ;;  %v2574_v33 = vld [vmem:[%s6124_s7 + $0x30] sm:$0xff] }
 0x2ff   :  { %v1863_v37 = vpop.f32.mrf.mxu1  ;;  %3851 = vmatprep.subr.mxu0 %v3539_v62  ;;  %3884 = vmatpush3.msra.mxu1 %v3555_v57  ;;  %v2576_v57 = vld [vmem:[%s6124_s7 + $0x40] sm:$0xff] }
 0x300   :  { %v5800_v39 = vmax.f32 %v1720_v36, %v1863_v37  ;;  %3852 = vmatpush3.msra.mxu0 %v3539_v62  ;;  %3885 = vmatprep.subr.mxu1 %v3554_v11  ;;  %v2676_v62 = vld [vmem:[%s6125_s8 + $0x38] sm:$0xff]  ;;  %v2674_v37 = vld [vmem:[%s6125_s8 + $0x28] sm:$0xff] }
 0x301   :  { %v1865_v55 = vpop.f32.mrf.mxu1  ;;  %3853 = vmatprep.subr.mxu0 %v3538_v48  ;;  %3886 = vmatpush3.msra.mxu1 %v3554_v11  ;;  %v2675_v11 = vld [vmem:[%s6125_s8 + $0x30] sm:$0xff] }
 0x302   :  { %3809 = vmatmul.mubr.msk.f32.gmra.mxu0 %vm1933_vm3, %v5800_v39  ;;  %3841 = vmatprep.mubr.msk.f32.mxu1 %vm1933_vm3, %v5800_v39  ;;  %v2571_v55 = vld [vmem:[%s6124_s7 + $0x18] sm:$0xff] }
 0x303   :  { %v1868_v59 = vpop.f32.mrf.mxu1  ;;  %3854 = vmatpush3.msra.mxu0 %v3538_v48  ;;  %3887 = vmatprep.subr.mxu1 %v3553_v61  ;;  %v2573_v48 = vld [vmem:[%s6124_s7 + $0x28] sm:$0xff] }
 0x304   :  { %v5816_v13 = vmax.f32 %v5750_v44, %v1868_v59  ;;  %3855 = vmatprep.subr.mxu0 %v3537_v30  ;;  %3888 = vmatpush3.msra.mxu1 %v3553_v61  ;;  %v2673_v61 = vld [vmem:[%s6125_s8 + $0x20] sm:$0xff]  ;;  %v2671_v59 = vld [vmem:[%s6125_s8 + $0x10] sm:$0xff] }
 0x305   :  { %v1870_v22 = vpop.f32.mrf.mxu1  ;;  %3856 = vmatpush3.msra.mxu0 %v3537_v30  ;;  %3889 = vmatprep.subr.mxu1 %v3552_v23  ;;  %v2672_v30 = vld [vmem:[%s6125_s8 + $0x18] sm:$0xff] }
 0x306   :  { %3811 = vmatprep.mubr.msk.f32.mxu0 %vm1933_vm3, %v5816_v13  ;;  %3842 = vmatmul.mubr.msk.f32.gmra.mxu1 %vm1933_vm3, %v5816_v13  ;;  %v2568_v22 = vld [vmem:[%s6124_s7] sm:$0xff] }
 0x307   :  { %v1873_v18 = vpop.f32.mrf.mxu1  ;;  %3857 = vmatprep.subr.mxu0 %v3536_v12  ;;  %3890 = vmatpush3.msra.mxu1 %v3552_v23  ;;  %v2570_v23 = vld [vmem:[%s6124_s7 + $0x10] sm:$0xff] }
 0x308   :  { %v5832_v4 = vmax.f32 %v5752_v52, %v1873_v18  ;;  %3858 = vmatpush3.msra.mxu0 %v3536_v12  ;;  %3891 = vmatprep.subr.mxu1 %v3551_v41  ;;  %v3572_v52 = vld [vmem:[%s6122_s5 + $0x148] sm:$0xff] }
 0x309   :  { %v1875_v15 = vpop.f32.mrf.mxu1  ;;  %3859 = vmatprep.subr.mxu0 %v3535_v1  ;;  %3892 = vmatpush3.msra.mxu1 %v3551_v41  ;;  %v2670_v12 = vld [vmem:[%s6125_s8 + $0x8] sm:$0xff]  ;;  %v2669_v41 = vld [vmem:[%s6125_s8] sm:$0xff] }
 0x30a   :  { %3812 = vmatmul.mubr.msk.f32.gmra.mxu0 %vm1933_vm3, %v5832_v4  ;;  %3844 = vmatprep.mubr.msk.f32.mxu1 %vm1933_vm3, %v5832_v4 }
 0x30b   :  { %v1878_v35 = vpop.f32.mrf.mxu1  ;;  %3860 = vmatpush3.msra.mxu0 %v3535_v1  ;;  %3893 = vmatprep.subr.mxu1 %v3550_v47 }
 0x30c   :  { %v5845_v58 = vmax.f32 %v5754_v5, %v1878_v35  ;;  %3861 = vmatprep.subr.mxu0 %v3534_v21  ;;  %3894 = vmatpush3.msra.mxu1 %v3550_v47  ;;  %v3571_v5 = vld [vmem:[%s6122_s5 + $0x140] sm:$0xff] }
 0x30d   :  { %v1880_v34 = vpop.f32.mrf.mxu1  ;;  %3862 = vmatpush3.msra.mxu0 %v3534_v21  ;;  %3937 = vmatprep.subr.mxu1 %v2583_v32 }
 0x30e   :  { %3814 = vmatprep.mubr.msk.f32.mxu0 %vm1933_vm3, %v5845_v58  ;;  %3845 = vmatmul.mubr.msk.f32.gmra.mxu1 %vm1933_vm3, %v5845_v58 }
 0x30f   :  { %v1883_v42 = vpop.f32.mrf.mxu1  ;;  %3895 = vmatprep.mubr.msk.f32.mxu1 %vm1933_vm3, %v5785_v45  ;;  %3863 = vmatprep.subr.mxu0 %v3533_v51 }
 0x310   :  { %v1910_v31 = vmax.f32 %v5756_v46, %v1883_v42  ;;  %3864 = vmatpush3.msra.mxu0 %v3533_v51 }
 0x311   :  { %v1885_v6 = vpop.f32.mrf.mxu1  ;;  %3907 = vmatprep.subr.mxu0 %v3575_v40 }
 0x312   :  { %3815 = vmatmul.mubr.msk.f32.gmra.mxu0 %vm1933_vm3, %v1910_v31  ;;  %3896 = vmatmul.mubr.msk.f32.vlgmr.msra.gmra.mxu1 %vm1933_vm3, %v5800_v39 }
 0x313   :  { %v1888_v53 = vpop.f32.mrf.mxu1  ;;  %3865 = vmatprep.mubr.msk.f32.mxu0 %vm1933_vm3, %v5770_v60  ;;  %3898 = vmatprep.mubr.msk.f32.mxu1 %vm1933_vm3, %v5816_v13  ;;  %v2578_v60 = vld [vmem:[%s6124_s7 + $0x50] sm:$0xff] }
 0x314   :  { %v1911_v2 = vmax.f32 %v5758_v20, %v1888_v53  ;;  %v3569_v20 = vld [vmem:[%s6122_s5 + $0x130] sm:$0xff]  ;;  %3938 = vmatpush3.msra.mxu1 %v2583_v32 }
 0x315   :  { %v1890_v56 = vpop.f32.mrf.mxu1  ;;  %3939 = vmatprep.subr.mxu1 %v2582_v49 }
 0x316   :  { %3866 = vmatmul.mubr.msk.f32.vlgmr.msra.gmra.mxu0 %vm1933_vm3, %v5785_v45  ;;  %3899 = vmatmul.mubr.msk.f32.gmra.mxu1 %vm1933_vm3, %v5832_v4  ;;  %v2575_v45 = vld [vmem:[%s6124_s7 + $0x38] sm:$0xff] }
 0x317   :  { %3908 = vmatpush3.msra.mxu0 %v3575_v40  ;;  %v1893_v36 = vpop.f32.mrf.mxu1  ;;  %3868 = vmatprep.mubr.msk.f32.mxu0 %vm1933_vm3, %v5800_v39 }
 0x318   :  { %3901 = vmatprep.mubr.msk.f32.mxu1 %vm1933_vm3, %v5845_v58  ;;  %3909 = vmatprep.subr.mxu0 %v3574_v54  ;;  %v1912_v46 = vmax.f32 %v5760_v16, %v1893_v36  ;;  %v3567_v16 = vld [vmem:[%s6122_s5 + $0x120] sm:$0xff] }
 0x319   :  { %3910 = vmatpush3.msra.mxu0 %v3574_v54  ;;  %v1895_v44 = vpop.f32.mrf.mxu1  ;;  %3940 = vmatpush3.msra.mxu1 %v2582_v49 }
 0x31a   :  { %3911 = vmatprep.subr.mxu0 %v3573_v50  ;;  %3869 = vmatmul.mubr.msk.f32.gmra.mxu0 %vm1933_vm3, %v5816_v13 }
 0x31b   :  { %3902 = vmatmul.mubr.msk.f32.gmra.mxu1 %vm1933_vm3, %v1910_v31  ;;  %3912 = vmatpush3.msra.mxu0 %v3573_v50  ;;  %v1898_v17 = vpop.f32.mrf.mxu1 }
 0x31c   :  { %3871 = vmatprep.mubr.msk.f32.mxu0 %vm1933_vm3, %v5832_v4  ;;  %3904 = vmatprep.mubr.msk.f32.mxu1 %vm1933_vm3, %v1911_v2  ;;  %v1913_v28 = vmax.f32 %v5762_v38, %v1898_v17  ;;  %v2683_v38 = vld [vmem:[%s6125_s8 + $0x70] sm:$0xff] }
 0x31d   :  { %3913 = vmatprep.subr.mxu0 %v3572_v52  ;;  %v1900_v43 = vpop.f32.mrf.mxu1  ;;  %3941 = vmatprep.subr.mxu1 %v2581_v7 }
 0x31e   :  { %3914 = vmatpush3.msra.mxu0 %v3572_v52  ;;  %3942 = vmatpush3.msra.mxu1 %v2581_v7 }
 0x31f   :  { %3915 = vmatprep.subr.mxu0 %v3571_v5  ;;  %3872 = vmatmul.mubr.msk.f32.gmra.mxu0 %vm1933_vm3, %v5845_v58 }
 0x320   :  { %3905 = vmatmul.mubr.msk.f32.gmra.mxu1 %vm1933_vm3, %v1912_v46  ;;  %3916 = vmatpush3.msra.mxu0 %v3571_v5 }
 0x321   :  { %3874 = vmatprep.mubr.msk.f32.mxu0 %vm1933_vm3, %v1910_v31  ;;  %3917 = vmatprep.subr.mxu0 %v3570_v3 }
 0x322   :  { %3918 = vmatpush3.msra.mxu0 %v3570_v3  ;;  %3943 = vmatprep.subr.mxu1 %v2580_v26 }
 0x323   :  { %3919 = vmatprep.subr.mxu0 %v3569_v20  ;;  %3875 = vmatmul.mubr.msk.f32.gmra.mxu0 %vm1933_vm3, %v1911_v2 }
 0x324   :  { %3920 = vmatpush3.msra.mxu0 %v3569_v20  ;;  %3925 = vmatprep.mubr.msk.f32.mxu0 %vm1933_vm3, %v5800_v39  ;;  %v2572_v39 = vld [vmem:[%s6124_s7 + $0x20] sm:$0xff] }
 0x325   :  { %3921 = vmatprep.subr.mxu0 %v3568_v63  ;;  %3944 = vmatpush3.msra.mxu1 %v2580_v26 }
 0x326   :  { %3922 = vmatpush3.msra.mxu0 %v3568_v63  ;;  %3945 = vmatprep.subr.mxu1 %v2579_v29 }
 0x327   :  { %3923 = vmatprep.subr.mxu0 %v3567_v16  ;;  %3946 = vmatpush3.msra.mxu1 %v2579_v29 }
 0x328   :  { %3924 = vmatpush3.msra.mxu0 %v3567_v16  ;;  %3947 = vmatprep.subr.mxu1 %v2578_v60 }
 0x329   :  { %3926 = vmatmul.mubr.msk.f32.vlgmr.msra.gmra.mxu0 %vm1933_vm3, %v5816_v13  ;;  %3975 = vmatprep.subr.mxu0 %v2684_v24  ;;  %v2569_v13 = vld [vmem:[%s6124_s7 + $0x8] sm:$0xff] }
 0x32a   :  { %3928 = vmatprep.mubr.msk.f32.mxu0 %vm1933_vm3, %v5832_v4  ;;  %3976 = vmatpush3.msra.mxu0 %v2684_v24 }
 0x32b   :  { %3977 = vmatprep.subr.mxu0 %v2683_v38  ;;  %3948 = vmatpush3.msra.mxu1 %v2578_v60 }
 0x32c   :  { %3978 = vmatpush3.msra.mxu0 %v2683_v38  ;;  %3949 = vmatprep.subr.mxu1 %v2577_v0 }
 0x32d   :  { %3929 = vmatmul.mubr.msk.f32.gmra.mxu0 %vm1933_vm3, %v5845_v58  ;;  %3979 = vmatprep.subr.mxu0 %v2682_v25 }
 0x32e   :  { %3931 = vmatprep.mubr.msk.f32.mxu0 %vm1933_vm3, %v1910_v31  ;;  %3980 = vmatpush3.msra.mxu0 %v2682_v25 }
 0x32f   :  { %3981 = vmatprep.subr.mxu0 %v2681_v8  ;;  %3950 = vmatpush3.msra.mxu1 %v2577_v0  ;;  %v3584_v0 = vld [vmem:[%s6123_s6] ss:$0 sm:$0xff] }
 0x330   :  { %3982 = vmatpush3.msra.mxu0 %v2681_v8  ;;  %3951 = vmatprep.subr.mxu1 %v2576_v57 }
 0x331   :  { %3932 = vmatmul.mubr.msk.f32.gmra.mxu0 %vm1933_vm3, %v1911_v2  ;;  %3983 = vmatprep.subr.mxu0 %v2680_v27 }
 0x332   :  { %3934 = vmatprep.mubr.msk.f32.mxu0 %vm1933_vm3, %v1912_v46  ;;  %3984 = vmatpush3.msra.mxu0 %v2680_v27 }
 0x333   :  { %3985 = vmatprep.subr.mxu0 %v2679_v9  ;;  %3952 = vmatpush3.msra.mxu1 %v2576_v57 }
 0x334   :  { %3986 = vmatpush3.msra.mxu0 %v2679_v9  ;;  %3953 = vmatprep.subr.mxu1 %v2575_v45 }
 0x335   :  { %3935 = vmatmul.mubr.msk.f32.gmra.mxu0 %vm1933_vm3, %v1913_v28  ;;  %3987 = vmatprep.subr.mxu0 %v2678_v10 }
 0x336   :  { %3988 = vmatpush3.msra.mxu0 %v2678_v10  ;;  %3954 = vmatpush3.msra.mxu1 %v2575_v45 }
 0x337   :  { %3989 = vmatprep.subr.mxu0 %v2677_v19  ;;  %3955 = vmatprep.subr.mxu1 %v2574_v33 }
 0x338   :  { %3990 = vmatpush3.msra.mxu0 %v2677_v19  ;;  %3956 = vmatpush3.msra.mxu1 %v2574_v33 }
 0x339   :  { %3991 = vmatprep.subr.mxu0 %v2676_v62  ;;  %3957 = vmatprep.subr.mxu1 %v2573_v48 }
 0x33a   :  { %3992 = vmatpush3.msra.mxu0 %v2676_v62  ;;  %3958 = vmatpush3.msra.mxu1 %v2573_v48 }
 0x33b   :  { %3993 = vmatprep.subr.mxu0 %v2675_v11  ;;  %3959 = vmatprep.subr.mxu1 %v2572_v39 }
 0x33c   :  { %3994 = vmatpush3.msra.mxu0 %v2675_v11  ;;  %3960 = vmatpush3.msra.mxu1 %v2572_v39 }
 0x33d   :  { %3995 = vmatprep.subr.mxu0 %v2674_v37  ;;  %3961 = vmatprep.subr.mxu1 %v2571_v55 }
 0x33e   :  { %3996 = vmatpush3.msra.mxu0 %v2674_v37  ;;  %3962 = vmatpush3.msra.mxu1 %v2571_v55 }
 0x33f   :  { %3997 = vmatprep.subr.mxu0 %v2673_v61  ;;  %3963 = vmatprep.subr.mxu1 %v2570_v23 }
 0x340   :  { %3998 = vmatpush3.msra.mxu0 %v2673_v61  ;;  %3964 = vmatpush3.msra.mxu1 %v2570_v23 }
 0x341   :  { %3999 = vmatprep.subr.mxu0 %v2672_v30  ;;  %3965 = vmatprep.subr.mxu1 %v2569_v13 }
 0x342   :  { %4000 = vmatpush3.msra.mxu0 %v2672_v30  ;;  %3966 = vmatpush3.msra.mxu1 %v2569_v13 }
 0x343   :  { %4001 = vmatprep.subr.mxu0 %v2671_v59  ;;  %3967 = vmatprep.subr.mxu1 %v2568_v22 }
 0x344   :  { %4002 = vmatpush3.msra.mxu0 %v2671_v59  ;;  %3968 = vmatpush3.msra.mxu1 %v2568_v22 }
 0x345   :  { %4003 = vmatprep.subr.mxu0 %v2670_v12  ;;  %4013 = vmatprep.subr.mxu1 %v6202_v14 }
 0x346   :  { %4004 = vmatpush3.msra.mxu0 %v2670_v12 }
 0x347   :  { %4005 = vmatprep.subr.mxu0 %v2669_v41 }
 0x348   :  { %4006 = vmatpush3.msra.mxu0 %v2669_v41 }
 0x349   :  { %4051 = vmatprep.subr.mxu0 %v6202_v14 }
 0x3b6   :  { %v3837_v1 = vpop.f32.mrf.mxu1 }
 0x3b8   :  { %v2132_v4 = vpop.f32.mrf.mxu1 }
 0x3ba   :  { %v3807_v18 = vpop.f32.mrf.mxu0 }
 0x3bb   :  { %v2138_v46 = vadd.f32 %v3837_v1, %v3807_v18 }
 0x3bc   :  { %v2024_v47 = vpop.f32.mrf.mxu0 }
 0x3bd   :  { %v2133_v20 = vadd.f32 %v2132_v4, %v2024_v47 }
 0x3be   :  { %v3840_v15 = vpop.f32.mrf.mxu1 }
 0x3c0   :  { %v2142_v35 = vpop.f32.mrf.mxu1 }
 0x3c2   :  { %v3810_v21 = vpop.f32.mrf.mxu0 }
 0x3c3   :  { %v2148_v32 = vadd.f32 %v3840_v15, %v3810_v21 }
 0x3c4   :  { %v2034_v58 = vpop.f32.mrf.mxu0 }
 0x3c5   :  { %v2143_v49 = vadd.f32 %v2142_v35, %v2034_v58 }
 0x3c6   :  { %v3843_v51 = vpop.f32.mrf.mxu1 }
 0x3c8   :  { %v2152_v40 = vpop.f32.mrf.mxu1 }
 0x3ca   :  { %v3813_v34 = vpop.f32.mrf.mxu0 }
 0x3cb   :  { %v2158_v8 = vadd.f32 %v3843_v51, %v3813_v34 }
 0x3cc   :  { %v2044_v42 = vpop.f32.mrf.mxu0 }
 0x3cd   :  { %v2153_v9 = vadd.f32 %v2152_v40, %v2044_v42  ;;  %v2789_v42 = vld [vmem:[#allocation6 + $0x38] sm:$0xff] }
 0x3ce   :  { %v3846_v31 = vpop.f32.mrf.mxu1 }
 0x3d0   :  { %v2162_v53 = vpop.f32.mrf.mxu1 }
 0x3d2   :  { %v3816_v6 = vpop.f32.mrf.mxu0  ;;  %v3897_v36 = vpop.f32.mrf.mxu1 }
 0x3d3   :  { %v2168_v33 = vadd.f32 %v3846_v31, %v3816_v6  ;;  %v2956_v31 = vld [vmem:[#allocation6 + $0xb8] sm:$0xff] }
 0x3d4   :  { %v2054_v56 = vpop.f32.mrf.mxu0  ;;  %v2376_v2 = vpop.f32.mrf.mxu1 }
 0x3d5   :  { %v2163_v30 = vadd.f32 %v2162_v53, %v2054_v56 }
 0x3d6   :  { %v3867_v54 = vpop.f32.mrf.mxu0  ;;  %v3900_v5 = vpop.f32.mrf.mxu1 }
 0x3d7   :  { %v2290_v63 = vadd.f32 %v3867_v54, %v2138_v46 }
 0x3d8   :  { %v2250_v50 = vpop.f32.mrf.mxu0  ;;  %v2386_v16 = vpop.f32.mrf.mxu1 }
 0x3d9   :  { %v2289_v24 = vadd.f32 %v2250_v50, %v2133_v20  ;;  %v2416_v25 = vadd.f32 %v3897_v36, %v2290_v63  ;;  %v2788_v50 = vld [vmem:[#allocation6 + $0x30] sm:$0xff]  ;;  %v2785_v20 = vld [vmem:[#allocation6 + $0x18] sm:$0xff] }
 0x3da   :  { %v3870_v44 = vpop.f32.mrf.mxu0  ;;  %v2784_v63 = vld [vmem:[#allocation6 + $0x10] sm:$0xff] }
 0x3db   :  { %v2292_v38 = vadd.f32 %v3870_v44, %v2148_v32  ;;  %v3903_v7 = vpop.f32.mrf.mxu1  ;;  %v2415_v60 = vadd.f32 %v2376_v2, %v2289_v24  ;;  %v2954_v32 = vld [vmem:[#allocation6 + $0xa8] sm:$0xff]  ;;  %v2782_v24 = vld [vmem:[#allocation6] sm:$0xff] }
 0x3dc   :  { %v2260_v52 = vpop.f32.mrf.mxu0 }
 0x3dd   :  { %v2291_v29 = vadd.f32 %v2260_v52, %v2143_v49  ;;  %v2396_v57 = vpop.f32.mrf.mxu1  ;;  %v2418_v62 = vadd.f32 %v3900_v5, %v2292_v38  ;;  %v2953_v49 = vld [vmem:[#allocation6 + $0xa0] sm:$0xff]  ;;  %v2952_v38 = vld [vmem:[#allocation6 + $0x98] sm:$0xff] }
 0x3df   :  { %v3873_v17 = vpop.f32.mrf.mxu0  ;;  %v2417_v55 = vadd.f32 %v2386_v16, %v2291_v29  ;;  %v2955_v16 = vld [vmem:[#allocation6 + $0xb0] sm:$0xff] }
 0x3e0   :  { %v2294_v19 = vadd.f32 %v3873_v17, %v2158_v8  ;;  %v3906_v59 = vpop.f32.mrf.mxu1  ;;  %v2787_v17 = vld [vmem:[#allocation6 + $0x28] sm:$0xff] }
 0x3e1   :  { %v2270_v43 = vpop.f32.mrf.mxu0 }
 0x3e2   :  { %v2293_v11 = vadd.f32 %v2270_v43, %v2153_v9  ;;  %v2420_v22 = vadd.f32 %v3903_v7, %v2294_v19  ;;  %v2406_v58 = vpop.f32.mrf.mxu1  ;;  %v2951_v7 = vld [vmem:[#allocation6 + $0x90] sm:$0xff] }
 0x3e3   :  { %v3876_v3 = vpop.f32.mrf.mxu0 }
 0x3e4   :  { %v2296_v13 = vadd.f32 %v3876_v3, %v2168_v33  ;;  %v2419_v4 = vadd.f32 %v2396_v57, %v2293_v11  ;;  %v2786_v3 = vld [vmem:[#allocation6 + $0x20] sm:$0xff]  ;;  %v2871_v57 = vld [vmem:[#allocation6 + $0x68] sm:$0xff] }
 0x3e5   :  { %v2280_v28 = vpop.f32.mrf.mxu0 }
 0x3e6   :  { %v2295_v1 = vadd.f32 %v2280_v28, %v2163_v30  ;;  %v2422_v40 = vadd.f32 %v3906_v59, %v2296_v13  ;;  %v2783_v28 = vld [vmem:[#allocation6 + $0x8] sm:$0xff]  ;;  %v3038_v59 = vld [vmem:[#allocation6 + $0xf0] sm:$0xff] }
 0x3e7   :  { %v3037_v13 = vld [vmem:[#allocation6 + $0xe8] sm:$0xff] }
 0x3e8   :  { %v2421_v53 = vadd.f32 %v2406_v58, %v2295_v1  ;;  %v3033_v1 = vld [vmem:[#allocation6 + $0xc8] sm:$0xff]  ;;  %v3125_v58 = vld [vmem:[#allocation7 + $0x58] sm:$0xff] }
 0x3e9   :  { %v3927_v26 = vpop.f32.mrf.mxu0 }
 0x3ea   :  { %v2542_v27 = vadd.f32 %v3927_v26, %v2416_v25  ;;  %v2950_v25 = vld [vmem:[#allocation6 + $0x88] sm:$0xff]  ;;  %v2949_v26 = vld [vmem:[#allocation6 + $0x80] sm:$0xff] }
 0x3eb   :  { %v2502_v10 = vpop.f32.mrf.mxu0 }
 0x3ec   :  { %v2541_v45 = vadd.f32 %v2502_v10, %v2415_v60  ;;  %v2557_v37 = vadd.f32 %v3584_v0, %v2542_v27  ;;  %v2872_v10 = vld [vmem:[#allocation6 + $0x70] sm:$0xff] }
 0x3ed   :  { %v3930_v48 = vpop.f32.mrf.mxu0 }
 0x3ee   :  { %v2556_v39 = vadd.f32 %v3584_v0, %v2541_v45  ;;  %v2544_v61 = vadd.f32 %v3930_v48, %v2418_v62  ;;  %v2870_v62 = vld [vmem:[#allocation6 + $0x60] sm:$0xff] }
 0x3ef   :  { %v2512_v23 = vpop.f32.mrf.mxu0 }
 0x3f0   :  { %v2543_v12 = vadd.f32 %v2512_v23, %v2417_v55  ;;  %v2564_v41 = vmax.f32 %v2556_v39, %v2557_v37  ;;  %v2559_v47 = vadd.f32 %v3584_v0, %v2544_v61  ;;  %v2869_v37 = vld [vmem:[#allocation6 + $0x58] sm:$0xff]  ;;  %v2868_v39 = vld [vmem:[#allocation6 + $0x50] sm:$0xff]  ;;  %v2867_v61 = vld [vmem:[#allocation6 + $0x48] sm:$0xff] }
 0x3f1   :  { %v3933_v18 = vpop.f32.mrf.mxu0  ;;  %v2866_v55 = vld [vmem:[#allocation6 + $0x40] sm:$0xff]  ;;  %v3039_v23 = vld [vmem:[#allocation6 + $0xf8] sm:$0xff] }
 0x3f2   :  { %v2558_v15 = vadd.f32 %v3584_v0, %v2543_v12  ;;  %v2546_v21 = vadd.f32 %v3933_v18, %v2420_v22  ;;  %3969 = vmatprep.mubr.f32.mxu1 %v2564_v41  ;;  %4007 = vmatprep.mubr.f32.mxu0 %v2564_v41  ;;  %v3036_v12 = vld [vmem:[#allocation6 + $0xe0] sm:$0xff]  ;;  %v3035_v22 = vld [vmem:[#allocation6 + $0xd8] sm:$0xff]  ;;  %v3034_v41 = vld [vmem:[#allocation6 + $0xd0] sm:$0xff] }
 0x3f3   :  { %v2522_v35 = vpop.f32.mrf.mxu0  ;;  %v3032_v18 = vld [vmem:[#allocation6 + $0xc0] sm:$0xff] }
 0x3f4   :  { %v2565_v51 = vmax.f32 %v2558_v15, %v2559_v47  ;;  %v2545_v34 = vadd.f32 %v2522_v35, %v2419_v4  ;;  %v2561_v56 = vadd.f32 %v3584_v0, %v2546_v21  ;;  %v3129_v47 = vld [vmem:[#allocation7 + $0x78] sm:$0xff]  ;;  %v3128_v15 = vld [vmem:[#allocation7 + $0x70] sm:$0xff]  ;;  %v3127_v21 = vld [vmem:[#allocation7 + $0x68] sm:$0xff] }
 0x3f5   :  { %v3936_v6 = vpop.f32.mrf.mxu0  ;;  %v3126_v35 = vld [vmem:[#allocation7 + $0x60] sm:$0xff] }
 0x3f6   :  { %v2560_v54 = vadd.f32 %v3584_v0, %v2545_v34  ;;  %v2548_v36 = vadd.f32 %v3936_v6, %v2422_v40  ;;  %3970 = vmatmul.mubr.f32.vlgmr.msra.gmra.mxu1 %v2565_v51  ;;  %4008 = vmatmul.mubr.f32.vlgmr.msra.gmra.mxu0 %v2565_v51  ;;  %v3124_v51 = vld [vmem:[#allocation7 + $0x50] sm:$0xff]  ;;  %v3123_v34 = vld [vmem:[#allocation7 + $0x48] sm:$0xff]  ;;  %v3122_v40 = vld [vmem:[#allocation7 + $0x40] sm:$0xff] }
 0x3f7   :  { %v2532_v44 = vpop.f32.mrf.mxu0  ;;  %4014 = vmatpush3.msra.mxu1 %v2789_v42  ;;  %4052 = vmatpush3.msra.mxu0 %v2956_v31  ;;  %v3121_v42 = vld [vmem:[#allocation7 + $0x38] sm:$0xff]  ;;  %v3120_v31 = vld [vmem:[#allocation7 + $0x30] sm:$0xff]  ;;  %v3119_v6 = vld [vmem:[#allocation7 + $0x28] sm:$0xff] }
 0x3f8   :  { %v2547_v2 = vadd.f32 %v2532_v44, %v2421_v53  ;;  %v2566_v52 = vmax.f32 %v2560_v54, %v2561_v56  ;;  %4015 = vmatprep.subr.mxu1 %v6202_v14  ;;  %4053 = vmatprep.subr.mxu0 %v6202_v14  ;;  %v2563_v5 = vadd.f32 %v3584_v0, %v2548_v36  ;;  %v3118_v53 = vld [vmem:[#allocation7 + $0x20] sm:$0xff]  ;;  %v3117_v56 = vld [vmem:[#allocation7 + $0x18] sm:$0xff]  ;;  %v3116_v54 = vld [vmem:[#allocation7 + $0x10] sm:$0xff] }
 0x3f9   :  { %4016 = vmatpush3.msra.mxu1 %v2788_v50  ;;  %4054 = vmatpush3.msra.mxu0 %v2955_v16  ;;  %v3115_v36 = vld [vmem:[#allocation7 + $0x8] sm:$0xff]  ;;  %v3114_v50 = vld [vmem:[#allocation7] sm:$0xff]  ;;  %v3222_v44 = vld [vmem:[#allocation9 + $0x78] sm:$0xff] }
 0x3fa   :  { %v2562_v43 = vadd.f32 %v3584_v0, %v2547_v2  ;;  %3972 = vmatprep.mubr.f32.mxu1 %v2566_v52  ;;  %4010 = vmatprep.mubr.f32.mxu0 %v2566_v52  ;;  %v2873_v0 = vld [vmem:[#allocation6 + $0x78] sm:$0xff]  ;;  %v3221_v2 = vld [vmem:[#allocation9 + $0x70] sm:$0xff]  ;;  %v3220_v52 = vld [vmem:[#allocation9 + $0x68] sm:$0xff] }
 0x3fb   :  { %4017 = vmatprep.subr.mxu1 %v6202_v14  ;;  %4055 = vmatprep.subr.mxu0 %v6202_v14  ;;  %v3212_v16 = vld [vmem:[#allocation9 + $0x28] sm:$0xff] }
 0x3fc   :  { %v2567_v46 = vmax.f32 %v2562_v43, %v2563_v5  ;;  %4018 = vmatpush3.msra.mxu1 %v2787_v17  ;;  %4056 = vmatpush3.msra.mxu0 %v2954_v32  ;;  %v3219_v17 = vld [vmem:[#allocation9 + $0x60] sm:$0xff]  ;;  %v3218_v5 = vld [vmem:[#allocation9 + $0x58] sm:$0xff]  ;;  %v3217_v43 = vld [vmem:[#allocation9 + $0x50] sm:$0xff] }
 0x3fd   :  { %4019 = vmatprep.subr.mxu1 %v6202_v14  ;;  %4057 = vmatprep.subr.mxu0 %v6202_v14  ;;  %v3210_v32 = vld [vmem:[#allocation9 + $0x18] sm:$0xff] }
 0x3fe   :  { %3973 = vmatmul.mubr.f32.gmra.mxu1 %v2567_v46  ;;  %4011 = vmatmul.mubr.f32.gmra.mxu0 %v2567_v46  ;;  %v3216_v46 = vld [vmem:[#allocation9 + $0x48] sm:$0xff] }
 0x3ff   :  { %4020 = vmatpush3.msra.mxu1 %v2786_v3  ;;  %4029 = vmatprep.mubr.msk.f32.mxu1 %vm4286_vm4, %v6202_v14  ;;  %v3215_v3 = vld [vmem:[#allocation9 + $0x40] sm:$0xff] }
 0x400   :  { %4021 = vmatprep.subr.mxu1 %v6202_v14  ;;  %4058 = vmatpush3.msra.mxu0 %v2953_v49 }
 0x401   :  { %4022 = vmatpush3.msra.mxu1 %v2785_v20  ;;  %4067 = vmatprep.mubr.msk.f32.mxu0 %vm4286_vm4, %v6202_v14  ;;  %v3214_v20 = vld [vmem:[#allocation9 + $0x38] sm:$0xff] }
 0x402   :  { %4023 = vmatprep.subr.mxu1 %v6202_v14  ;;  %4059 = vmatprep.subr.mxu0 %v6202_v14 }
 0x403   :  { %4024 = vmatpush3.msra.mxu1 %v2784_v63  ;;  %4060 = vmatpush3.msra.mxu0 %v2952_v38  ;;  %v3213_v63 = vld [vmem:[#allocation9 + $0x30] sm:$0xff] }
 0x404   :  { %4025 = vmatprep.subr.mxu1 %v6202_v14  ;;  %4061 = vmatprep.subr.mxu0 %v6202_v14 }
 0x405   :  { %4026 = vmatpush3.msra.mxu1 %v2783_v28  ;;  %4062 = vmatpush3.msra.mxu0 %v2951_v7  ;;  %v3211_v28 = vld [vmem:[#allocation9 + $0x20] sm:$0xff] }
 0x406   :  { %4027 = vmatprep.subr.mxu1 %v6202_v14  ;;  %4063 = vmatprep.subr.mxu0 %v6202_v14 }
 0x407   :  { %4028 = vmatpush3.msra.mxu1 %v2782_v24  ;;  %4064 = vmatpush3.msra.mxu0 %v2950_v25  ;;  %v3209_v24 = vld [vmem:[#allocation9 + $0x10] sm:$0xff] }
 0x408   :  { %4032 = vmatprep.subr.mxu1 %v6202_v14  ;;  %4065 = vmatprep.subr.mxu0 %v6202_v14 }
 0x409   :  { %4066 = vmatpush3.msra.mxu0 %v2949_v26 }
 0x40a   :  { %4089 = vmatprep.subr.mxu0 %v6202_v14 }
 0x4b6   :  { %v3971_v8 = vpop.f32.mrf.mxu1  ;;  %v4009_v29 = vpop.f32.mrf.mxu0 }
 0x4b7   :  { %v2771_v30 = vmax.f32 %v3971_v8, %v4009_v29  ;;  %v3585_v29 = vld [vmem:[%s6127_s10] ss:$0 sm:$0xff] }
 0x4b8   :  { %v2650_v27 = vpop.f32.mrf.mxu1  ;;  %v2751_v60 = vpop.f32.mrf.mxu0 }
 0x4b9   :  { %v2770_v9 = vmax.f32 %v2650_v27, %v2751_v60 }
 0x4bb   :  { %4030 = vmatmul.mubr.msk.f32.vlgmr.msra.gmra.mxu1 %vm2790_vm5, %v2770_v9 }
 0x4bc   :  { %4033 = vmatpush3.msra.mxu1 %v2873_v0  ;;  %4048 = vmatprep.mubr.msk.f32.mxu1 %vm4286_vm4, %v6202_v14 }
 0x4bd   :  { %4034 = vmatprep.subr.mxu1 %v6202_v14 }
 0x4be   :  { %4035 = vmatpush3.msra.mxu1 %v2872_v10  ;;  %v3974_v19 = vpop.f32.mrf.mxu1  ;;  %v4012_v45 = vpop.f32.mrf.mxu0 }
 0x4bf   :  { %4036 = vmatprep.subr.mxu1 %v6202_v14  ;;  %v2773_v4 = vmax.f32 %v3974_v19, %v4012_v45  ;;  %v3208_v19 = vld [vmem:[#allocation9 + $0x8] sm:$0xff]  ;;  %v3207_v45 = vld [vmem:[#allocation9] sm:$0xff] }
 0x4c0   :  { %4037 = vmatpush3.msra.mxu1 %v2871_v57  ;;  %v2660_v33 = vpop.f32.mrf.mxu1  ;;  %v2761_v11 = vpop.f32.mrf.mxu0 }
 0x4c1   :  { %v2772_v48 = vmax.f32 %v2660_v33, %v2761_v11  ;;  %4038 = vmatprep.subr.mxu1 %v6202_v14 }
 0x4c2   :  { %4039 = vmatpush3.msra.mxu1 %v2870_v62  ;;  %v3590_v62 = vld [vmem:[%s6129_s12] ss:$0 sm:$0xff] }
 0x4c3   :  { %4040 = vmatprep.subr.mxu1 %v6202_v14  ;;  %4068 = vmatmul.mubr.msk.f32.vlgmr.msra.gmra.mxu0 %vm2790_vm5, %v2772_v48 }
 0x4c4   :  { %4041 = vmatpush3.msra.mxu1 %v2869_v37  ;;  %4121 = vmatprep.mubr.msk.f32.mxu0 %vm4286_vm4, %v6202_v14  ;;  %v6246_v37 = vlaneseq }
 0x4c5   :  { %4042 = vmatprep.subr.mxu1 %v6202_v14  ;;  %4090 = vmatpush3.msra.mxu0 %v3129_v47 }
 0x4c6   :  { %4043 = vmatpush3.msra.mxu1 %v2868_v39  ;;  %4091 = vmatprep.subr.mxu0 %v6202_v14  ;;  %v3301_v39 = vand.u32 127, %v6246_v37 }
 0x4c7   :  { %4044 = vmatprep.subr.mxu1 %v6202_v14  ;;  %4092 = vmatpush3.msra.mxu0 %v3128_v15 }
 0x4c8   :  { %4045 = vmatpush3.msra.mxu1 %v2867_v61  ;;  %4093 = vmatprep.subr.mxu0 %v6202_v14  ;;  %v3591_v61 = vld [vmem:[%s6131_s14] ss:$0 sm:$0xff]  ;;  %vm3302_vm6 = vcmp.lt.s32.totalorder %v3301_v39, 10 }
 0x4c9   :  { %4046 = vmatprep.subr.mxu1 %v6202_v14  ;;  %4094 = vmatpush3.msra.mxu0 %v3127_v21 }
 0x4ca   :  { %4047 = vmatpush3.msra.mxu1 %v2866_v55  ;;  %4095 = vmatprep.subr.mxu0 %v6202_v14 }
 0x4cb   :  { %4049 = vmatmul.mubr.msk.f32.vlgmr.msra.gmra.mxu1 %vm2790_vm5, %v2771_v30  ;;  %4070 = vmatprep.subr.mxu1 %v6202_v14 }
 0x4cc   :  { %4071 = vmatpush3.msra.mxu1 %v3039_v23  ;;  %4086 = vmatprep.mubr.msk.f32.mxu1 %vm4286_vm4, %v6202_v14 }
 0x4cd   :  { %4072 = vmatprep.subr.mxu1 %v6202_v14  ;;  %4096 = vmatpush3.msra.mxu0 %v3126_v35 }
 0x4ce   :  { %4073 = vmatpush3.msra.mxu1 %v3038_v59  ;;  %4097 = vmatprep.subr.mxu0 %v6202_v14 }
 0x4cf   :  { %4074 = vmatprep.subr.mxu1 %v6202_v14  ;;  %4098 = vmatpush3.msra.mxu0 %v3125_v58 }
 0x4d0   :  { %4075 = vmatpush3.msra.mxu1 %v3037_v13  ;;  %4099 = vmatprep.subr.mxu0 %v6202_v14 }
 0x4d1   :  { %4076 = vmatprep.subr.mxu1 %v6202_v14  ;;  %4100 = vmatpush3.msra.mxu0 %v3124_v51 }
 0x4d2   :  { %4077 = vmatpush3.msra.mxu1 %v3036_v12  ;;  %4101 = vmatprep.subr.mxu0 %v6202_v14 }
 0x4d3   :  { %4078 = vmatprep.subr.mxu1 %v6202_v14  ;;  %4102 = vmatpush3.msra.mxu0 %v3123_v34 }
 0x4d4   :  { %4079 = vmatpush3.msra.mxu1 %v3035_v22  ;;  %4103 = vmatprep.subr.mxu0 %v6202_v14 }
 0x4d5   :  { %4080 = vmatprep.subr.mxu1 %v6202_v14  ;;  %4104 = vmatpush3.msra.mxu0 %v3122_v40 }
 0x4d6   :  { %4081 = vmatpush3.msra.mxu1 %v3034_v41  ;;  %4105 = vmatprep.subr.mxu0 %v6202_v14 }
 0x4d7   :  { %4082 = vmatprep.subr.mxu1 %v6202_v14  ;;  %4106 = vmatpush3.msra.mxu0 %v3121_v42 }
 0x4d8   :  { %4083 = vmatpush3.msra.mxu1 %v3033_v1  ;;  %4107 = vmatprep.subr.mxu0 %v6202_v14 }
 0x4d9   :  { %4084 = vmatprep.subr.mxu1 %v6202_v14  ;;  %4108 = vmatpush3.msra.mxu0 %v3120_v31 }
 0x4da   :  { %4085 = vmatpush3.msra.mxu1 %v3032_v18  ;;  %4109 = vmatprep.subr.mxu0 %v6202_v14 }
 0x4db   :  { %4087 = vmatmul.mubr.msk.f32.vlgmr.msra.gmra.mxu1 %vm2790_vm5, %v2773_v4  ;;  %4124 = vmatprep.subr.mxu1 %v6202_v14 }
 0x4dc   :  { %4156 = vmatprep.mubr.msk.f32.mxu1 %vm4286_vm4, %v6202_v14  ;;  %4110 = vmatpush3.msra.mxu0 %v3119_v6 }
 0x4dd   :  { %4111 = vmatprep.subr.mxu0 %v6202_v14  ;;  %4125 = vmatpush3.msra.mxu1 %v3222_v44 }
 0x4de   :  { %4112 = vmatpush3.msra.mxu0 %v3118_v53  ;;  %4126 = vmatprep.subr.mxu1 %v6202_v14 }
 0x4df   :  { %4113 = vmatprep.subr.mxu0 %v6202_v14  ;;  %4127 = vmatpush3.msra.mxu1 %v3221_v2 }
 0x4e0   :  { %4114 = vmatpush3.msra.mxu0 %v3117_v56  ;;  %4128 = vmatprep.subr.mxu1 %v6202_v14 }
 0x4e1   :  { %4115 = vmatprep.subr.mxu0 %v6202_v14  ;;  %4129 = vmatpush3.msra.mxu1 %v3220_v52 }
 0x4e2   :  { %4116 = vmatpush3.msra.mxu0 %v3116_v54  ;;  %4130 = vmatprep.subr.mxu1 %v6202_v14 }
 0x4e3   :  { %4117 = vmatprep.subr.mxu0 %v6202_v14  ;;  %4131 = vmatpush3.msra.mxu1 %v3219_v17 }
 0x4e4   :  { %4118 = vmatpush3.msra.mxu0 %v3115_v36  ;;  %4132 = vmatprep.subr.mxu1 %v6202_v14 }
 0x4e5   :  { %4119 = vmatprep.subr.mxu0 %v6202_v14  ;;  %4133 = vmatpush3.msra.mxu1 %v3218_v5 }
 0x4e6   :  { %4120 = vmatpush3.msra.mxu0 %v3114_v50  ;;  %4134 = vmatprep.subr.mxu1 %v6202_v14 }
 0x4e7   :  { %4135 = vmatpush3.msra.mxu1 %v3217_v43 }
 0x4e8   :  { %4136 = vmatprep.subr.mxu1 %v6202_v14 }
 0x4e9   :  { %4137 = vmatpush3.msra.mxu1 %v3216_v46 }
 0x4ea   :  { %4138 = vmatprep.subr.mxu1 %v6202_v14 }
 0x4eb   :  { %4139 = vmatpush3.msra.mxu1 %v3215_v3 }
 0x4ec   :  { %4140 = vmatprep.subr.mxu1 %v6202_v14 }
 0x4ed   :  { %4141 = vmatpush3.msra.mxu1 %v3214_v20 }
 0x4ee   :  { %4142 = vmatprep.subr.mxu1 %v6202_v14 }
 0x4ef   :  { %4143 = vmatpush3.msra.mxu1 %v3213_v63 }
 0x4f0   :  { %4144 = vmatprep.subr.mxu1 %v6202_v14 }
 0x4f1   :  { %4145 = vmatpush3.msra.mxu1 %v3212_v16 }
 0x4f2   :  { %4146 = vmatprep.subr.mxu1 %v6202_v14 }
 0x4f3   :  { %4147 = vmatpush3.msra.mxu1 %v3211_v28 }
 0x4f4   :  { %4148 = vmatprep.subr.mxu1 %v6202_v14 }
 0x4f5   :  { %4149 = vmatpush3.msra.mxu1 %v3210_v32 }
 0x4f6   :  { %4150 = vmatprep.subr.mxu1 %v6202_v14 }
 0x4f7   :  { %4151 = vmatpush3.msra.mxu1 %v3209_v24 }
 0x4f8   :  { %4152 = vmatprep.subr.mxu1 %v6202_v14 }
 0x4f9   :  { %4153 = vmatpush3.msra.mxu1 %v3208_v19 }
 0x4fa   :  { %4154 = vmatprep.subr.mxu1 %v6202_v14 }
 0x4fb   :  { %4155 = vmatpush3.msra.mxu1 %v3207_v45 }
 0x57b   :  { %v2860_v49 = vpop.f32.mrf.mxu1 }
 0x57c   :  { %v2864_v27 = vadd.f32 %v3585_v29, %v2860_v49 }
 0x57d   :  { %v4031_v38 = vpop.f32.mrf.mxu1 }
 0x583   :  { %v3026_v7 = vpop.f32.mrf.mxu0 }
 0x585   :  { %v4069_v25 = vpop.f32.mrf.mxu0 }
 0x58b   :  { %v2943_v26 = vpop.f32.mrf.mxu1 }
 0x58c   :  { %v2947_v60 = vadd.f32 %v2943_v26, %v2864_v27 }
 0x58d   :  { %v4050_v8 = vpop.f32.mrf.mxu1 }
 0x58e   :  { %v3030_v9 = vadd.f32 %v3026_v7, %v2947_v60 }
 0x59b   :  { %v3109_v0 = vpop.f32.mrf.mxu1 }
 0x59c   :  { %v3113_v10 = vadd.f32 %v3109_v0, %v3030_v9 }
 0x59d   :  { %v4088_v57 = vpop.f32.mrf.mxu1 }
 0x59e   :  { %4122 = vmatmul.mubr.f32.vlgmr.msra.gmra.mxu0 %v3113_v10 }
 0x65e   :  { %v3203_v33 = vpop.f32.mrf.mxu0 }
 0x65f   :  { %v3204_v11 = vadd.f32 %v3590_v62, %v3203_v33 }
 0x660   :  { %v4123_v48 = vpop.f32.mrf.mxu0 }
 0x661   :  { %4157 = vmatmul.mubr.f32.vlgmr.msra.gmra.mxu1 %v3204_v11 }
 0x721   :  { %v3296_v55 = vpop.f32.mrf.mxu1 }
 0x722   :  { %v3297_v30 = vadd.f32 %v3591_v61, %v3296_v55 }
 0x723   :  { %v4158_v14 = vpop.f32.mrf.mxu1 }
 0x724   :  { %v3303_v23 = vsel %vm3302_vm6, %v3297_v30, -1e+30 }
 0x725   :  { %3304 = vmax.xlane.f32.xlu0 %v3303_v23 }
 0x7ae   :  { %v3305_v59 = vpop.xlane.xlu0 %3304 }
 0x7af   :  { %v3306_v13 = vsub.f32 %v3303_v23, %v3305_v59 }
 0x7b1   :  { %v3307_v12 = vmul.f32 1.442695, %v3306_v13 }
 0x7b3   :  { %4168 = vpow2.f32 %v3307_v12 }
 0x7c0   :  { %v4169_v22 = vpop.eup %4168 }
 0x7c1   :  { %3309 = vadd.xlane.f32.xlu0 %v4169_v22 }
 0x84a   :  { %v3310_v41 = vpop.xlane.xlu0 %3309 }
 0x84b   :  { %4170 = vlog2.f32 %v3310_v41 }
 0x858   :  { %v4171_v1 = vpop.eup %4170 }
 0x859   :  { %v3312_v18 = vmul.f32 0.6931472, %v4171_v1 }
 0x85b   :  { %v3313_v4 = vsub.f32 %v3306_v13, %v3312_v18 }
 0x85d   :  { %3314 = vst [vmem:[%s6132_s15] sm:$0xff] %v3313_v4 }
 0x85e   :  { %3319 = vsyncpa [#allocation3], 1 }
 0x85f   :  { %3320 = vsyncpa [#allocation5], 1 }
 0x860   :  { %3321 = vsyncpa [#allocation8], 1 }

</bundles_post_ra>
